<compile_context>
chip_gen: v7x
topology: tpu7x:2x2x1
jax: 0.10.0
libtpu: 0.0.40
codegen_flags: <defaults>
</compile_context>

<pallas_src>
import functools

import jax
import jax.numpy as jnp
from jax.experimental import pallas as pl
from jax.experimental.pallas import tpu as pltpu


# ----------------------------- geometry ----------------------------------- #
IN_CH = 3                     # input image channels
HW = 16                       # spatial size (H == W)
CONV_CH = 8                   # stand-in backbone conv channels
FEAT = 1000                   # backbone feature dim (torchvision convention)
FEAT_PAD = 1024               # 1000 -> 1024 : lane-dense feature dim
FEAT_TILE = 512               # per-grid-step slice of FEAT_PAD (2 steps)
HEAD_PAD = 128                # out_features -> 128 : lane-dense logits
B_PAD = 8                     # pad batch to the f32 sublane minimum
K_FC = HW * HW * CONV_CH      # 2048 : flattened conv activations (fc K dim)


# ------------------------------ kernel ------------------------------------- #
def fc_head_kernel(h_ref, fcw_ref, fcb_ref, ow_ref, o_ref):
    """Fused Linear(2048->FEAT_TILE slice)+bias+ReLU and partial head matmul.

    Grid axis 0 splits the padded feature dim in two (parallel -> one slice
    per TensorCore on v7x).  Each step emits the partial logits contributed
    by its feature slice; the wrapper sums the two partials.
    """
    # bf16 x bf16 -> f32 on the MXU.
    fc = jnp.dot(h_ref[...], fcw_ref[...], preferred_element_type=jnp.float32)
    feats = jnp.maximum(fc + fcb_ref[...], 0.0)
    partial = jnp.dot(feats.astype(ow_ref.dtype), ow_ref[...],
                      preferred_element_type=jnp.float32)
    o_ref[0] = partial.astype(o_ref.dtype)


# ------------------------------ wrappers ------------------------------------ #
def fc_and_head(h_bf16, fc_w, fc_b, out_w):
    """Single pallas_call: fc + ReLU + head, split over the feature dim."""
    n_f = FEAT_PAD // FEAT_TILE                      # 2
    return pl.pallas_call(
        fc_head_kernel,
        out_shape=jax.ShapeDtypeStruct((n_f, B_PAD, HEAD_PAD), jnp.float32),
        grid_spec=pltpu.PrefetchScalarGridSpec(
            num_scalar_prefetch=0,
            grid=(n_f,),
            in_specs=[
                pl.BlockSpec((B_PAD, K_FC), lambda f: (0, 0)),        # activations
                pl.BlockSpec((K_FC, FEAT_TILE), lambda f: (0, f)),    # fc_w slice
                pl.BlockSpec((1, FEAT_TILE), lambda f: (0, f)),       # fc_b slice
                pl.BlockSpec((FEAT_TILE, HEAD_PAD), lambda f: (f, 0)),  # out_w slice
            ],
            out_specs=pl.BlockSpec((1, B_PAD, HEAD_PAD), lambda f: (f, 0, 0)),
        ),
        compiler_params=pltpu.CompilerParams(
            # Feature slices are independent -> shard across v7x's two cores.
            dimension_semantics=("parallel",),
            # Actual footprint ~4.4 MiB double-buffered; 16 MiB budget.
            vmem_limit_bytes=16 * 1024 * 1024,
        ),
    )(h_bf16, fc_w, fc_b, out_w)


def _backbone_conv(x_nhwc, conv_w_flat, conv_b):
    """Stand-in backbone conv3x3(same)+ReLU+flatten as one small XLA fusion.

    Per perf review: this is <1 MFLOP, so a dedicated pallas_call costs more
    in dispatch + HBM round-trip than the compute; XLA fuses im2col + the
    (B*H*W,27)x(27,8) einsum + ReLU + flatten + bf16 cast.
    """
    B, H, W, _ = x_nhwc.shape
    xp = jnp.pad(x_nhwc, ((0, 0), (1, 1), (1, 1), (0, 0)))
    taps = [xp[:, kh:kh + H, kw:kw + W, :] for kh in range(3) for kw in range(3)]
    patches = jnp.concatenate(taps, axis=-1)                 # (B,H,W,27)
    act = jnp.einsum("bhwt,tc->bhwc", patches, conv_w_flat) + conv_b
    act = jnp.maximum(act, 0.0)
    return act.reshape(B, H * W * CONV_CH)                   # NHWC flatten


# --------------------------- model definition ------------------------------- #
def init_params(key, out_features=7):
    """Stand-in backbone + head params, pre-padded / pre-cast for TPU."""
    ks = jax.random.split(key, 6)
    s = 0.05
    conv_w = s * jax.random.normal(ks[0], (3, 3, IN_CH, CONV_CH), jnp.float32)
    conv_b = s * jax.random.normal(ks[1], (CONV_CH,), jnp.float32)
    fc_w = s * jax.random.normal(ks[2], (K_FC, FEAT), jnp.float32)
    fc_b = s * jax.random.normal(ks[3], (FEAT,), jnp.float32)
    out_w = s * jax.random.normal(ks[4], (FEAT, out_features), jnp.float32)
    out_b = s * jax.random.normal(ks[5], (out_features,), jnp.float32)

    return {
        # backbone conv, flattened for the im2col einsum (tap order kh, kw, cin)
        "conv_w": conv_w.reshape(9 * IN_CH, CONV_CH),
        "conv_b": conv_b,
        # big weights: zero-padded to lane-dense widths, stored bf16
        "fc_w": jnp.pad(fc_w, ((0, 0), (0, FEAT_PAD - FEAT))).astype(jnp.bfloat16),
        "fc_b": jnp.pad(fc_b, (0, FEAT_PAD - FEAT)).reshape(1, FEAT_PAD),
        # module's own head: nn.Linear(1000, out_features), zero-padded
        "out_w": jnp.pad(out_w, ((0, FEAT_PAD - FEAT),
                                 (0, HEAD_PAD - out_features))).astype(jnp.bfloat16),
        "out_b": jnp.pad(out_b, (0, HEAD_PAD - out_features)).reshape(1, HEAD_PAD),
    }


@functools.partial(jax.jit, static_argnames=("out_features",))
def skin_distinction_forward(params, x_nchw, out_features=7):
    """forward(x): x -> backbone -> Linear(1000, out_features)."""
    B = x_nchw.shape[0]
    assert B <= B_PAD

    # NCHW (PyTorch) -> NHWC (TPU channels-last); pad batch to 8.
    x = jnp.transpose(x_nchw, (0, 2, 3, 1)).astype(jnp.float32)
    x = jnp.pad(x, ((0, B_PAD - B), (0, 0), (0, 0), (0, 0)))

    # stand-in backbone (XLA fusion), cast bf16 for the MXU
    h = _backbone_conv(x, params["conv_w"], params["conv_b"]).astype(jnp.bfloat16)

    # fused Linear(2048,1000)+ReLU -> Linear(1000,out_features)  (Pallas)
    partials = fc_and_head(h, params["fc_w"], params["fc_b"], params["out_w"])
    logits_pad = partials[0] + partials[1] + params["out_b"]

    return logits_pad[:B, :out_features]


def reference_forward(params, x_nchw, out_features=7):
    """Pure-JAX reference (same bf16 weights, f32 activations) for sanity."""
    x = jnp.transpose(x_nchw, (0, 2, 3, 1)).astype(jnp.float32)
    h = _backbone_conv(x, params["conv_w"], params["conv_b"])
    fc = h @ params["fc_w"].astype(jnp.float32) + params["fc_b"]
    feats = jnp.maximum(fc, 0.0)
    logits = feats @ params["out_w"].astype(jnp.float32) + params["out_b"]
    return logits[:, :out_features]


# --------------------------------- main ------------------------------------- #
if __name__ == "__main__":
    key = jax.random.PRNGKey(0)
    pkey, xkey = jax.random.split(key)

    B, C, H, W = 2, IN_CH, HW, HW
    out_features = 7

    params = init_params(pkey, out_features=out_features)
    x = jax.random.normal(xkey, (B, C, H, W), jnp.float32)

    logits = skin_distinction_forward(params, x, out_features=out_features)
    jax.block_until_ready(logits)

    assert logits.shape == (B, out_features), logits.shape
    assert bool(jnp.all(jnp.isfinite(logits)))

    ref = reference_forward(params, x, out_features=out_features)
    max_err = float(jnp.max(jnp.abs(logits - ref)))
    assert max_err < 5e-2, f"max_err={max_err}"

    print("KERNEL_OK")
</pallas_src>

<mosaic_0001>
module attributes {stable_mosaic.version = 11 : i64} {
  func.func @fc_head_kernel(%arg0: i32, %arg1: memref<8x2048xbf16, #tpu.memory_space<vmem>>, %arg2: memref<2048x512xbf16, #tpu.memory_space<vmem>>, %arg3: memref<1x512xf32, #tpu.memory_space<vmem>>, %arg4: memref<512x128xbf16, #tpu.memory_space<vmem>>, %arg5: memref<1x8x128xf32, #tpu.memory_space<vmem>>) attributes {dimension_semantics = [#tpu.dimension_semantics<parallel>], iteration_bounds = array<i64: 2>, scalar_prefetch = 0 : i64, scratch_operands = 0 : i64, tpu.core_type = #tpu.core_type<tc>, window_params = [{pipeline_mode = #tpu.pipeline_mode<synchronous>, transform_indices = @transform_0, window_bounds = array<i64: 8, 2048>}, {transform_indices = @transform_1, window_bounds = array<i64: 2048, 512>}, {transform_indices = @transform_2, window_bounds = array<i64: 1, 512>}, {transform_indices = @transform_3, window_bounds = array<i64: 512, 128>}, {transform_indices = @transform_4, window_bounds = array<i64: 1, 8, 128>}]} {
    %c0 = arith.constant 0 : index
    %c0_0 = arith.constant 0 : index
    %0 = vector.load %arg1[%c0, %c0_0] : memref<8x2048xbf16, #tpu.memory_space<vmem>>, vector<8x2048xbf16>
    %c0_1 = arith.constant 0 : index
    %c0_2 = arith.constant 0 : index
    %1 = vector.load %arg2[%c0_1, %c0_2] : memref<2048x512xbf16, #tpu.memory_space<vmem>>, vector<2048x512xbf16>
    %cst = arith.constant dense<0.000000e+00> : vector<8x512xf32>
    %2 = tpu.matmul %0, %1, %cst {dimension_numbers = #tpu.dot_dimension_numbers<[1], [0], [0], [1], [0, 0, 1, 1], [], []>} : vector<8x2048xbf16>, vector<2048x512xbf16>, vector<8x512xf32> -> vector<8x512xf32>
    %c0_3 = arith.constant 0 : index
    %c0_4 = arith.constant 0 : index
    %3 = vector.load %arg3[%c0_3, %c0_4] : memref<1x512xf32, #tpu.memory_space<vmem>>, vector<1x512xf32>
    %4 = vector.broadcast %3 : vector<1x512xf32> to vector<8x512xf32>
    %5 = arith.addf %2, %4 : vector<8x512xf32>
    %cst_5 = arith.constant 0.000000e+00 : f32
    %6 = vector.broadcast %cst_5 : f32 to vector<8x512xf32>
    %7 = arith.maximumf %5, %6 : vector<8x512xf32>
    %8 = arith.truncf %7 : vector<8x512xf32> to vector<8x512xbf16>
    %c0_6 = arith.constant 0 : index
    %c0_7 = arith.constant 0 : index
    %9 = vector.load %arg4[%c0_6, %c0_7] : memref<512x128xbf16, #tpu.memory_space<vmem>>, vector<512x128xbf16>
    %cst_8 = arith.constant dense<0.000000e+00> : vector<8x128xf32>
    %10 = tpu.matmul %8, %9, %cst_8 {dimension_numbers = #tpu.dot_dimension_numbers<[1], [0], [0], [1], [0, 0, 1, 1], [], []>} : vector<8x512xbf16>, vector<512x128xbf16>, vector<8x128xf32> -> vector<8x128xf32>
    %c0_9 = arith.constant 0 : index
    %c0_10 = arith.constant 0 : index
    %c0_11 = arith.constant 0 : index
    %11 = vector.load %arg5[%c0_9, %c0_10, %c0_11] : memref<1x8x128xf32, #tpu.memory_space<vmem>>, vector<1x8x128xf32>
    %12 = vector.shape_cast %11 : vector<1x8x128xf32> to vector<8x128xf32>
    %13 = vector.shape_cast %10 : vector<8x128xf32> to vector<1x8x128xf32>
    tpu.vector_store %arg5[%c0_9, %c0_10, %c0_11], %13 {strides = array<i32>} : memref<1x8x128xf32, #tpu.memory_space<vmem>>, vector<1x8x128xf32>,
    return
  }
  func.func @transform_0(%arg0: i32) -> (i32, i32) {
    %c0_i32 = arith.constant 0 : i32
    %c0_i32_0 = arith.constant 0 : i32
    %c0_i32_1 = arith.constant 0 : i32
    return %c0_i32, %c0_i32_0 : i32, i32
  }
  func.func @transform_1(%arg0: i32) -> (i32, i32) {
    %c0_i32 = arith.constant 0 : i32
    %c0_i32_0 = arith.constant 0 : i32
    return %c0_i32, %arg0 : i32, i32
  }
  func.func @transform_2(%arg0: i32) -> (i32, i32) {
    %c0_i32 = arith.constant 0 : i32
    %c0_i32_0 = arith.constant 0 : i32
    return %c0_i32, %arg0 : i32, i32
  }
  func.func @transform_3(%arg0: i32) -> (i32, i32) {
    %c0_i32 = arith.constant 0 : i32
    %c0_i32_0 = arith.constant 0 : i32
    return %arg0, %c0_i32 : i32, i32
  }
  func.func @transform_4(%arg0: i32) -> (i32, i32, i32) {
    %c0_i32 = arith.constant 0 : i32
    %c0_i32_0 = arith.constant 0 : i32
    %c0_i32_1 = arith.constant 0 : i32
    return %arg0, %c0_i32, %c0_i32_0 : i32, i32, i32
  }
}

</mosaic_0001>

<bundles_post_ra>
// kernel: skin_distinction_forward.1
= control target key start
LH: loop header
LB: loop body
LE: loop exit
PB: predicated region body
PF: predicated region fallthrough
CT: control target
= control target key end

     0   :  { %s7089_s15 = smov 0   ;;  %s7091_s16 = smov 0   ;;  %s8799_s0 = inlined_call_operand.vmem [shape: bf16[8,2048], index: 0, kind: input, shape index: {}]   ;;  %s8800_s1 = inlined_call_operand.vmem [shape: bf16[2048,1024], index: 1, kind: input, shape index: {}]   ;;  %s8801_s2 = inlined_call_operand.vmem [shape: f32[1,1024], index: 2, kind: input, shape index: {}]   ;;  %s8802_s3 = inlined_call_operand.vmem [shape: bf16[1024,128], index: 3, kind: input, shape index: {}]   ;;  %s8803_s4 = inlined_call_operand.vmem [shape: f32[2,8,128], index: 4, kind: output, shape index: {}]  }
   0x1   :  { %s7093_s17 = smov 0  }
   0x2 LB: > { %s7105_s18 = sadd.s32 4294967295, %s7062_s17   ;;  %s7108_s19 = sadd.s32 1, %s7062_s17   ;;  %s7062_s17 = sphi %s7093_s17, %s8806_s17   ;;  %s7058_s16 = sphi %s7091_s16, %s8805_s16   ;;  %s7054_s15 = sphi %s7089_s15, %s8804_s15  }
   0x3   : > { %s39_s20 = ssub.s32 %s7062_s17, %s7108_s19  ;;  %s42_s21 = sadd.s32 1, %s7058_s16 }
   0x4   : > { %p40_p0 = scmp.eq.s32.totalorder %s39_s20, 0  ;;  %p49_p1 = scmp.ne.s32.totalorder %s7058_s16, %s7054_s15 }
   0x5   : > { %p50_p2 = scmp.eq.s32.totalorder %s7062_s17, 0  ;;  %p5523_p4 = scmp.ge.s32.totalorder %s7062_s17, 2 }
   0x6   : > { %s7117_s22 = scalar_select %p40_p0, %s7058_s16, %s42_s21  }
   0x7   : > { %p51_p3 = por %p50_p2, %p49_p1  ;;  %156 = sbr.rel (%p5523_p4) target bundleno = 274 (0x112), region = 20 }
   0xe   : > { %159 = sbr.rel (!%p51_p3) target bundleno = 274 (0x112), region = 24  ;;  %s161_s23 = sand.u32 (%p51_p3), 1, %s7058_s16  }
   0xf   : > { %s6095_s24 = sshll.u32 (%p51_p3), %s7062_s17, 4  ;;  %s5524_s25 = sshll.u32 (%p51_p3), %s161_s23, 12 }
  0x10   : > { %s7125_s28 = scalar_lea.vmem (%p51_p3), %s8800_s1, %s6095_s24  ;;  %s7130_s29 = scalar_lea.vmem (%p51_p3), [#allocation2], %s5524_s25 }
  0x11   : > { %v179_v0 = vld [vmem:[%s7125_s28] sm:$0xff] (%p51_p3)  ;;  %v181_v1 = vld [vmem:[%s7125_s28 + $0x8] sm:$0xff] (%p51_p3) }
  0x12   : > { %v183_v2 = vld [vmem:[%s7125_s28 + $0x20] sm:$0xff] (%p51_p3)  ;;  %180 = vst [vmem:[%s7130_s29] sm:$0xff] (%p51_p3), %v179_v0  ;;  %182 = vst [vmem:[%s7130_s29 + $0x8] sm:$0xff] (%p51_p3), %v181_v1  ;;  %v185_v3 = vld [vmem:[%s7125_s28 + $0x28] sm:$0xff] (%p51_p3) }
  0x13   : > { %184 = vst [vmem:[%s7130_s29 + $0x10] sm:$0xff] (%p51_p3), %v183_v2  ;;  %v187_v4 = vld [vmem:[%s7125_s28 + $0x40] sm:$0xff] (%p51_p3)  ;;  %v189_v5 = vld [vmem:[%s7125_s28 + $0x48] sm:$0xff] (%p51_p3)  ;;  %186 = vst [vmem:[%s7130_s29 + $0x18] sm:$0xff] (%p51_p3), %v185_v3 }
  0x14   : > { %188 = vst [vmem:[%s7130_s29 + $0x20] sm:$0xff] (%p51_p3), %v187_v4  ;;  %190 = vst [vmem:[%s7130_s29 + $0x28] sm:$0xff] (%p51_p3), %v189_v5  ;;  %v191_v6 = vld [vmem:[%s7125_s28 + $0x60] sm:$0xff] (%p51_p3)  ;;  %v193_v7 = vld [vmem:[%s7125_s28 + $0x68] sm:$0xff] (%p51_p3) }
  0x15   : > { %v195_v8 = vld [vmem:[%s7125_s28 + $0x80] sm:$0xff]  ;;  %192 = vst [vmem:[%s7130_s29 + $0x30] sm:$0xff] %v191_v6  ;;  %194 = vst [vmem:[%s7130_s29 + $0x38] sm:$0xff] %v193_v7  ;;  %v197_v9 = vld [vmem:[%s7125_s28 + $0x88] sm:$0xff] }
  0x16   : > { %196 = vst [vmem:[%s7130_s29 + $0x40] sm:$0xff] %v195_v8  ;;  %v199_v10 = vld [vmem:[%s7125_s28 + $0xa0] sm:$0xff]  ;;  %v201_v11 = vld [vmem:[%s7125_s28 + $0xa8] sm:$0xff]  ;;  %198 = vst [vmem:[%s7130_s29 + $0x48] sm:$0xff] %v197_v9 }
  0x17   : > { %200 = vst [vmem:[%s7130_s29 + $0x50] sm:$0xff] %v199_v10  ;;  %202 = vst [vmem:[%s7130_s29 + $0x58] sm:$0xff] %v201_v11  ;;  %v203_v12 = vld [vmem:[%s7125_s28 + $0xc0] sm:$0xff]  ;;  %v205_v13 = vld [vmem:[%s7125_s28 + $0xc8] sm:$0xff] }
  0x18   : > { %v207_v14 = vld [vmem:[%s7125_s28 + $0xe0] sm:$0xff]  ;;  %204 = vst [vmem:[%s7130_s29 + $0x60] sm:$0xff] %v203_v12  ;;  %206 = vst [vmem:[%s7130_s29 + $0x68] sm:$0xff] %v205_v13  ;;  %v209_v15 = vld [vmem:[%s7125_s28 + $0xe8] sm:$0xff] }
  0x19   : > { %208 = vst [vmem:[%s7130_s29 + $0x70] sm:$0xff] %v207_v14  ;;  %v211_v16 = vld [vmem:[%s7125_s28 + $0x100] sm:$0xff]  ;;  %v213_v17 = vld [vmem:[%s7125_s28 + $0x108] sm:$0xff]  ;;  %210 = vst [vmem:[%s7130_s29 + $0x78] sm:$0xff] %v209_v15 }
  0x1a   : > { %212 = vst [vmem:[%s7130_s29 + $0x80] sm:$0xff] %v211_v16  ;;  %214 = vst [vmem:[%s7130_s29 + $0x88] sm:$0xff] %v213_v17  ;;  %v215_v18 = vld [vmem:[%s7125_s28 + $0x120] sm:$0xff]  ;;  %v217_v19 = vld [vmem:[%s7125_s28 + $0x128] sm:$0xff] }
  0x1b   : > { %v219_v20 = vld [vmem:[%s7125_s28 + $0x140] sm:$0xff]  ;;  %216 = vst [vmem:[%s7130_s29 + $0x90] sm:$0xff] %v215_v18  ;;  %218 = vst [vmem:[%s7130_s29 + $0x98] sm:$0xff] %v217_v19  ;;  %v221_v21 = vld [vmem:[%s7125_s28 + $0x148] sm:$0xff] }
  0x1c   : > { %220 = vst [vmem:[%s7130_s29 + $0xa0] sm:$0xff] %v219_v20  ;;  %v223_v22 = vld [vmem:[%s7125_s28 + $0x160] sm:$0xff]  ;;  %v225_v23 = vld [vmem:[%s7125_s28 + $0x168] sm:$0xff]  ;;  %222 = vst [vmem:[%s7130_s29 + $0xa8] sm:$0xff] %v221_v21 }
  0x1d   : > { %224 = vst [vmem:[%s7130_s29 + $0xb0] sm:$0xff] %v223_v22  ;;  %226 = vst [vmem:[%s7130_s29 + $0xb8] sm:$0xff] %v225_v23  ;;  %v227_v24 = vld [vmem:[%s7125_s28 + $0x180] sm:$0xff]  ;;  %v229_v25 = vld [vmem:[%s7125_s28 + $0x188] sm:$0xff] }
  0x1e   : > { %v231_v26 = vld [vmem:[%s7125_s28 + $0x1a0] sm:$0xff]  ;;  %228 = vst [vmem:[%s7130_s29 + $0xc0] sm:$0xff] %v227_v24  ;;  %230 = vst [vmem:[%s7130_s29 + $0xc8] sm:$0xff] %v229_v25  ;;  %v233_v27 = vld [vmem:[%s7125_s28 + $0x1a8] sm:$0xff] }
  0x1f   : > { %232 = vst [vmem:[%s7130_s29 + $0xd0] sm:$0xff] %v231_v26  ;;  %v235_v28 = vld [vmem:[%s7125_s28 + $0x1c0] sm:$0xff]  ;;  %v237_v29 = vld [vmem:[%s7125_s28 + $0x1c8] sm:$0xff]  ;;  %234 = vst [vmem:[%s7130_s29 + $0xd8] sm:$0xff] %v233_v27 }
  0x20   : > { %236 = vst [vmem:[%s7130_s29 + $0xe0] sm:$0xff] %v235_v28  ;;  %238 = vst [vmem:[%s7130_s29 + $0xe8] sm:$0xff] %v237_v29  ;;  %v239_v30 = vld [vmem:[%s7125_s28 + $0x1e0] sm:$0xff]  ;;  %v241_v31 = vld [vmem:[%s7125_s28 + $0x1e8] sm:$0xff] }
  0x21   : > { %v243_v32 = vld [vmem:[%s7125_s28 + $0x200] sm:$0xff]  ;;  %240 = vst [vmem:[%s7130_s29 + $0xf0] sm:$0xff] %v239_v30  ;;  %242 = vst [vmem:[%s7130_s29 + $0xf8] sm:$0xff] %v241_v31  ;;  %v245_v33 = vld [vmem:[%s7125_s28 + $0x208] sm:$0xff] }
  0x22   : > { %244 = vst [vmem:[%s7130_s29 + $0x100] sm:$0xff] %v243_v32  ;;  %v247_v34 = vld [vmem:[%s7125_s28 + $0x220] sm:$0xff]  ;;  %v249_v35 = vld [vmem:[%s7125_s28 + $0x228] sm:$0xff]  ;;  %246 = vst [vmem:[%s7130_s29 + $0x108] sm:$0xff] %v245_v33 }
  0x23   : > { %248 = vst [vmem:[%s7130_s29 + $0x110] sm:$0xff] %v247_v34  ;;  %250 = vst [vmem:[%s7130_s29 + $0x118] sm:$0xff] %v249_v35  ;;  %v251_v36 = vld [vmem:[%s7125_s28 + $0x240] sm:$0xff]  ;;  %v253_v37 = vld [vmem:[%s7125_s28 + $0x248] sm:$0xff] }
  0x24   : > { %v255_v38 = vld [vmem:[%s7125_s28 + $0x260] sm:$0xff]  ;;  %252 = vst [vmem:[%s7130_s29 + $0x120] sm:$0xff] %v251_v36  ;;  %254 = vst [vmem:[%s7130_s29 + $0x128] sm:$0xff] %v253_v37  ;;  %v257_v39 = vld [vmem:[%s7125_s28 + $0x268] sm:$0xff] }
  0x25   : > { %256 = vst [vmem:[%s7130_s29 + $0x130] sm:$0xff] %v255_v38  ;;  %v259_v40 = vld [vmem:[%s7125_s28 + $0x280] sm:$0xff]  ;;  %v261_v41 = vld [vmem:[%s7125_s28 + $0x288] sm:$0xff]  ;;  %258 = vst [vmem:[%s7130_s29 + $0x138] sm:$0xff] %v257_v39 }
  0x26   : > { %260 = vst [vmem:[%s7130_s29 + $0x140] sm:$0xff] %v259_v40  ;;  %262 = vst [vmem:[%s7130_s29 + $0x148] sm:$0xff] %v261_v41  ;;  %v263_v42 = vld [vmem:[%s7125_s28 + $0x2a0] sm:$0xff]  ;;  %v265_v43 = vld [vmem:[%s7125_s28 + $0x2a8] sm:$0xff] }
  0x27   : > { %v267_v44 = vld [vmem:[%s7125_s28 + $0x2c0] sm:$0xff]  ;;  %264 = vst [vmem:[%s7130_s29 + $0x150] sm:$0xff] %v263_v42  ;;  %266 = vst [vmem:[%s7130_s29 + $0x158] sm:$0xff] %v265_v43  ;;  %v269_v45 = vld [vmem:[%s7125_s28 + $0x2c8] sm:$0xff] }
  0x28   : > { %268 = vst [vmem:[%s7130_s29 + $0x160] sm:$0xff] %v267_v44  ;;  %v271_v46 = vld [vmem:[%s7125_s28 + $0x2e0] sm:$0xff]  ;;  %v273_v47 = vld [vmem:[%s7125_s28 + $0x2e8] sm:$0xff]  ;;  %270 = vst [vmem:[%s7130_s29 + $0x168] sm:$0xff] %v269_v45 }
  0x29   : > { %272 = vst [vmem:[%s7130_s29 + $0x170] sm:$0xff] %v271_v46  ;;  %274 = vst [vmem:[%s7130_s29 + $0x178] sm:$0xff] %v273_v47  ;;  %v275_v48 = vld [vmem:[%s7125_s28 + $0x300] sm:$0xff]  ;;  %v277_v49 = vld [vmem:[%s7125_s28 + $0x308] sm:$0xff] }
  0x2a   : > { %v279_v50 = vld [vmem:[%s7125_s28 + $0x320] sm:$0xff]  ;;  %276 = vst [vmem:[%s7130_s29 + $0x180] sm:$0xff] %v275_v48  ;;  %278 = vst [vmem:[%s7130_s29 + $0x188] sm:$0xff] %v277_v49  ;;  %v281_v51 = vld [vmem:[%s7125_s28 + $0x328] sm:$0xff] }
  0x2b   : > { %280 = vst [vmem:[%s7130_s29 + $0x190] sm:$0xff] %v279_v50  ;;  %v283_v52 = vld [vmem:[%s7125_s28 + $0x340] sm:$0xff]  ;;  %v285_v53 = vld [vmem:[%s7125_s28 + $0x348] sm:$0xff]  ;;  %282 = vst [vmem:[%s7130_s29 + $0x198] sm:$0xff] %v281_v51 }
  0x2c   : > { %284 = vst [vmem:[%s7130_s29 + $0x1a0] sm:$0xff] %v283_v52  ;;  %286 = vst [vmem:[%s7130_s29 + $0x1a8] sm:$0xff] %v285_v53  ;;  %v287_v54 = vld [vmem:[%s7125_s28 + $0x360] sm:$0xff]  ;;  %v289_v55 = vld [vmem:[%s7125_s28 + $0x368] sm:$0xff] }
  0x2d   : > { %v291_v56 = vld [vmem:[%s7125_s28 + $0x380] sm:$0xff]  ;;  %288 = vst [vmem:[%s7130_s29 + $0x1b0] sm:$0xff] %v287_v54  ;;  %290 = vst [vmem:[%s7130_s29 + $0x1b8] sm:$0xff] %v289_v55  ;;  %v293_v57 = vld [vmem:[%s7125_s28 + $0x388] sm:$0xff] }
  0x2e   : > { %292 = vst [vmem:[%s7130_s29 + $0x1c0] sm:$0xff] %v291_v56  ;;  %v295_v58 = vld [vmem:[%s7125_s28 + $0x3a0] sm:$0xff]  ;;  %v297_v59 = vld [vmem:[%s7125_s28 + $0x3a8] sm:$0xff]  ;;  %294 = vst [vmem:[%s7130_s29 + $0x1c8] sm:$0xff] %v293_v57 }
  0x2f   : > { %296 = vst [vmem:[%s7130_s29 + $0x1d0] sm:$0xff] %v295_v58  ;;  %298 = vst [vmem:[%s7130_s29 + $0x1d8] sm:$0xff] %v297_v59  ;;  %v299_v60 = vld [vmem:[%s7125_s28 + $0x3c0] sm:$0xff]  ;;  %v301_v61 = vld [vmem:[%s7125_s28 + $0x3c8] sm:$0xff] }
  0x30   : > { %v303_v62 = vld [vmem:[%s7125_s28 + $0x3e0] sm:$0xff]  ;;  %300 = vst [vmem:[%s7130_s29 + $0x1e0] sm:$0xff] %v299_v60  ;;  %302 = vst [vmem:[%s7130_s29 + $0x1e8] sm:$0xff] %v301_v61  ;;  %v305_v63 = vld [vmem:[%s7125_s28 + $0x3e8] sm:$0xff] }
  0x31   : > { %304 = vst [vmem:[%s7130_s29 + $0x1f0] sm:$0xff] %v303_v62  ;;  %v307_v0 = vld [vmem:[%s7125_s28 + $0x400] sm:$0xff]  ;;  %v309_v1 = vld [vmem:[%s7125_s28 + $0x408] sm:$0xff]  ;;  %306 = vst [vmem:[%s7130_s29 + $0x1f8] sm:$0xff] %v305_v63 }
  0x32   : > { %308 = vst [vmem:[%s7130_s29 + $0x200] sm:$0xff] %v307_v0  ;;  %310 = vst [vmem:[%s7130_s29 + $0x208] sm:$0xff] %v309_v1  ;;  %v311_v2 = vld [vmem:[%s7125_s28 + $0x420] sm:$0xff]  ;;  %v313_v3 = vld [vmem:[%s7125_s28 + $0x428] sm:$0xff] }
  0x33   : > { %v315_v4 = vld [vmem:[%s7125_s28 + $0x440] sm:$0xff]  ;;  %312 = vst [vmem:[%s7130_s29 + $0x210] sm:$0xff] %v311_v2  ;;  %314 = vst [vmem:[%s7130_s29 + $0x218] sm:$0xff] %v313_v3  ;;  %v317_v5 = vld [vmem:[%s7125_s28 + $0x448] sm:$0xff] }
  0x34   : > { %316 = vst [vmem:[%s7130_s29 + $0x220] sm:$0xff] %v315_v4  ;;  %v319_v6 = vld [vmem:[%s7125_s28 + $0x460] sm:$0xff]  ;;  %v321_v7 = vld [vmem:[%s7125_s28 + $0x468] sm:$0xff]  ;;  %318 = vst [vmem:[%s7130_s29 + $0x228] sm:$0xff] %v317_v5 }
  0x35   : > { %320 = vst [vmem:[%s7130_s29 + $0x230] sm:$0xff] %v319_v6  ;;  %322 = vst [vmem:[%s7130_s29 + $0x238] sm:$0xff] %v321_v7  ;;  %v323_v8 = vld [vmem:[%s7125_s28 + $0x480] sm:$0xff]  ;;  %v325_v9 = vld [vmem:[%s7125_s28 + $0x488] sm:$0xff] }
  0x36   : > { %v327_v10 = vld [vmem:[%s7125_s28 + $0x4a0] sm:$0xff]  ;;  %324 = vst [vmem:[%s7130_s29 + $0x240] sm:$0xff] %v323_v8  ;;  %326 = vst [vmem:[%s7130_s29 + $0x248] sm:$0xff] %v325_v9  ;;  %v329_v11 = vld [vmem:[%s7125_s28 + $0x4a8] sm:$0xff] }
  0x37   : > { %328 = vst [vmem:[%s7130_s29 + $0x250] sm:$0xff] %v327_v10  ;;  %v331_v12 = vld [vmem:[%s7125_s28 + $0x4c0] sm:$0xff]  ;;  %v333_v13 = vld [vmem:[%s7125_s28 + $0x4c8] sm:$0xff]  ;;  %330 = vst [vmem:[%s7130_s29 + $0x258] sm:$0xff] %v329_v11 }
  0x38   : > { %332 = vst [vmem:[%s7130_s29 + $0x260] sm:$0xff] %v331_v12  ;;  %334 = vst [vmem:[%s7130_s29 + $0x268] sm:$0xff] %v333_v13  ;;  %v335_v14 = vld [vmem:[%s7125_s28 + $0x4e0] sm:$0xff]  ;;  %v337_v15 = vld [vmem:[%s7125_s28 + $0x4e8] sm:$0xff] }
  0x39   : > { %v339_v16 = vld [vmem:[%s7125_s28 + $0x500] sm:$0xff]  ;;  %336 = vst [vmem:[%s7130_s29 + $0x270] sm:$0xff] %v335_v14  ;;  %338 = vst [vmem:[%s7130_s29 + $0x278] sm:$0xff] %v337_v15  ;;  %v341_v17 = vld [vmem:[%s7125_s28 + $0x508] sm:$0xff] }
  0x3a   : > { %340 = vst [vmem:[%s7130_s29 + $0x280] sm:$0xff] %v339_v16  ;;  %v343_v18 = vld [vmem:[%s7125_s28 + $0x520] sm:$0xff]  ;;  %v345_v19 = vld [vmem:[%s7125_s28 + $0x528] sm:$0xff]  ;;  %342 = vst [vmem:[%s7130_s29 + $0x288] sm:$0xff] %v341_v17 }
  0x3b   : > { %344 = vst [vmem:[%s7130_s29 + $0x290] sm:$0xff] %v343_v18  ;;  %346 = vst [vmem:[%s7130_s29 + $0x298] sm:$0xff] %v345_v19  ;;  %v347_v20 = vld [vmem:[%s7125_s28 + $0x540] sm:$0xff]  ;;  %v349_v21 = vld [vmem:[%s7125_s28 + $0x548] sm:$0xff] }
  0x3c   : > { %v351_v22 = vld [vmem:[%s7125_s28 + $0x560] sm:$0xff]  ;;  %348 = vst [vmem:[%s7130_s29 + $0x2a0] sm:$0xff] %v347_v20  ;;  %350 = vst [vmem:[%s7130_s29 + $0x2a8] sm:$0xff] %v349_v21  ;;  %v353_v23 = vld [vmem:[%s7125_s28 + $0x568] sm:$0xff] }
  0x3d   : > { %352 = vst [vmem:[%s7130_s29 + $0x2b0] sm:$0xff] %v351_v22  ;;  %v355_v24 = vld [vmem:[%s7125_s28 + $0x580] sm:$0xff]  ;;  %v357_v25 = vld [vmem:[%s7125_s28 + $0x588] sm:$0xff]  ;;  %354 = vst [vmem:[%s7130_s29 + $0x2b8] sm:$0xff] %v353_v23 }
  0x3e   : > { %356 = vst [vmem:[%s7130_s29 + $0x2c0] sm:$0xff] %v355_v24  ;;  %358 = vst [vmem:[%s7130_s29 + $0x2c8] sm:$0xff] %v357_v25  ;;  %v359_v26 = vld [vmem:[%s7125_s28 + $0x5a0] sm:$0xff]  ;;  %v361_v27 = vld [vmem:[%s7125_s28 + $0x5a8] sm:$0xff] }
  0x3f   : > { %v363_v28 = vld [vmem:[%s7125_s28 + $0x5c0] sm:$0xff]  ;;  %360 = vst [vmem:[%s7130_s29 + $0x2d0] sm:$0xff] %v359_v26  ;;  %362 = vst [vmem:[%s7130_s29 + $0x2d8] sm:$0xff] %v361_v27  ;;  %v365_v29 = vld [vmem:[%s7125_s28 + $0x5c8] sm:$0xff] }
  0x40   : > { %364 = vst [vmem:[%s7130_s29 + $0x2e0] sm:$0xff] %v363_v28  ;;  %v367_v30 = vld [vmem:[%s7125_s28 + $0x5e0] sm:$0xff]  ;;  %v369_v31 = vld [vmem:[%s7125_s28 + $0x5e8] sm:$0xff]  ;;  %366 = vst [vmem:[%s7130_s29 + $0x2e8] sm:$0xff] %v365_v29 }
  0x41   : > { %368 = vst [vmem:[%s7130_s29 + $0x2f0] sm:$0xff] %v367_v30  ;;  %370 = vst [vmem:[%s7130_s29 + $0x2f8] sm:$0xff] %v369_v31  ;;  %v371_v32 = vld [vmem:[%s7125_s28 + $0x600] sm:$0xff]  ;;  %v373_v33 = vld [vmem:[%s7125_s28 + $0x608] sm:$0xff] }
  0x42   : > { %v375_v34 = vld [vmem:[%s7125_s28 + $0x620] sm:$0xff]  ;;  %372 = vst [vmem:[%s7130_s29 + $0x300] sm:$0xff] %v371_v32  ;;  %374 = vst [vmem:[%s7130_s29 + $0x308] sm:$0xff] %v373_v33  ;;  %v377_v35 = vld [vmem:[%s7125_s28 + $0x628] sm:$0xff] }
  0x43   : > { %376 = vst [vmem:[%s7130_s29 + $0x310] sm:$0xff] %v375_v34  ;;  %v379_v36 = vld [vmem:[%s7125_s28 + $0x640] sm:$0xff]  ;;  %v381_v37 = vld [vmem:[%s7125_s28 + $0x648] sm:$0xff]  ;;  %378 = vst [vmem:[%s7130_s29 + $0x318] sm:$0xff] %v377_v35 }
  0x44   : > { %380 = vst [vmem:[%s7130_s29 + $0x320] sm:$0xff] %v379_v36  ;;  %382 = vst [vmem:[%s7130_s29 + $0x328] sm:$0xff] %v381_v37  ;;  %v383_v38 = vld [vmem:[%s7125_s28 + $0x660] sm:$0xff]  ;;  %v385_v39 = vld [vmem:[%s7125_s28 + $0x668] sm:$0xff] }
  0x45   : > { %v387_v40 = vld [vmem:[%s7125_s28 + $0x680] sm:$0xff]  ;;  %384 = vst [vmem:[%s7130_s29 + $0x330] sm:$0xff] %v383_v38  ;;  %386 = vst [vmem:[%s7130_s29 + $0x338] sm:$0xff] %v385_v39  ;;  %v389_v41 = vld [vmem:[%s7125_s28 + $0x688] sm:$0xff] }
  0x46   : > { %388 = vst [vmem:[%s7130_s29 + $0x340] sm:$0xff] %v387_v40  ;;  %v391_v42 = vld [vmem:[%s7125_s28 + $0x6a0] sm:$0xff]  ;;  %v393_v43 = vld [vmem:[%s7125_s28 + $0x6a8] sm:$0xff]  ;;  %390 = vst [vmem:[%s7130_s29 + $0x348] sm:$0xff] %v389_v41 }
  0x47   : > { %392 = vst [vmem:[%s7130_s29 + $0x350] sm:$0xff] %v391_v42  ;;  %394 = vst [vmem:[%s7130_s29 + $0x358] sm:$0xff] %v393_v43  ;;  %v395_v44 = vld [vmem:[%s7125_s28 + $0x6c0] sm:$0xff]  ;;  %v397_v45 = vld [vmem:[%s7125_s28 + $0x6c8] sm:$0xff] }
  0x48   : > { %v399_v46 = vld [vmem:[%s7125_s28 + $0x6e0] sm:$0xff]  ;;  %396 = vst [vmem:[%s7130_s29 + $0x360] sm:$0xff] %v395_v44  ;;  %398 = vst [vmem:[%s7130_s29 + $0x368] sm:$0xff] %v397_v45  ;;  %v401_v47 = vld [vmem:[%s7125_s28 + $0x6e8] sm:$0xff] }
  0x49   : > { %400 = vst [vmem:[%s7130_s29 + $0x370] sm:$0xff] %v399_v46  ;;  %v403_v48 = vld [vmem:[%s7125_s28 + $0x700] sm:$0xff]  ;;  %v405_v49 = vld [vmem:[%s7125_s28 + $0x708] sm:$0xff]  ;;  %402 = vst [vmem:[%s7130_s29 + $0x378] sm:$0xff] %v401_v47 }
  0x4a   : > { %404 = vst [vmem:[%s7130_s29 + $0x380] sm:$0xff] %v403_v48  ;;  %406 = vst [vmem:[%s7130_s29 + $0x388] sm:$0xff] %v405_v49  ;;  %v407_v50 = vld [vmem:[%s7125_s28 + $0x720] sm:$0xff]  ;;  %v409_v51 = vld [vmem:[%s7125_s28 + $0x728] sm:$0xff] }
  0x4b   : > { %v411_v52 = vld [vmem:[%s7125_s28 + $0x740] sm:$0xff]  ;;  %408 = vst [vmem:[%s7130_s29 + $0x390] sm:$0xff] %v407_v50  ;;  %410 = vst [vmem:[%s7130_s29 + $0x398] sm:$0xff] %v409_v51  ;;  %v413_v53 = vld [vmem:[%s7125_s28 + $0x748] sm:$0xff] }
  0x4c   : > { %412 = vst [vmem:[%s7130_s29 + $0x3a0] sm:$0xff] %v411_v52  ;;  %v415_v54 = vld [vmem:[%s7125_s28 + $0x760] sm:$0xff]  ;;  %v417_v55 = vld [vmem:[%s7125_s28 + $0x768] sm:$0xff]  ;;  %414 = vst [vmem:[%s7130_s29 + $0x3a8] sm:$0xff] %v413_v53 }
  0x4d   : > { %416 = vst [vmem:[%s7130_s29 + $0x3b0] sm:$0xff] %v415_v54  ;;  %418 = vst [vmem:[%s7130_s29 + $0x3b8] sm:$0xff] %v417_v55  ;;  %v419_v56 = vld [vmem:[%s7125_s28 + $0x780] sm:$0xff]  ;;  %v421_v57 = vld [vmem:[%s7125_s28 + $0x788] sm:$0xff] }
  0x4e   : > { %v423_v58 = vld [vmem:[%s7125_s28 + $0x7a0] sm:$0xff]  ;;  %420 = vst [vmem:[%s7130_s29 + $0x3c0] sm:$0xff] %v419_v56  ;;  %422 = vst [vmem:[%s7130_s29 + $0x3c8] sm:$0xff] %v421_v57  ;;  %v425_v59 = vld [vmem:[%s7125_s28 + $0x7a8] sm:$0xff] }
  0x4f   : > { %424 = vst [vmem:[%s7130_s29 + $0x3d0] sm:$0xff] %v423_v58  ;;  %v427_v60 = vld [vmem:[%s7125_s28 + $0x7c0] sm:$0xff]  ;;  %v429_v61 = vld [vmem:[%s7125_s28 + $0x7c8] sm:$0xff]  ;;  %426 = vst [vmem:[%s7130_s29 + $0x3d8] sm:$0xff] %v425_v59 }
  0x50   : > { %428 = vst [vmem:[%s7130_s29 + $0x3e0] sm:$0xff] %v427_v60  ;;  %430 = vst [vmem:[%s7130_s29 + $0x3e8] sm:$0xff] %v429_v61  ;;  %v431_v62 = vld [vmem:[%s7125_s28 + $0x7e0] sm:$0xff]  ;;  %v433_v63 = vld [vmem:[%s7125_s28 + $0x7e8] sm:$0xff] }
  0x51   : > { %v435_v0 = vld [vmem:[%s7125_s28 + $0x800] sm:$0xff]  ;;  %432 = vst [vmem:[%s7130_s29 + $0x3f0] sm:$0xff] %v431_v62  ;;  %434 = vst [vmem:[%s7130_s29 + $0x3f8] sm:$0xff] %v433_v63  ;;  %v437_v1 = vld [vmem:[%s7125_s28 + $0x808] sm:$0xff] }
  0x52   : > { %436 = vst [vmem:[%s7130_s29 + $0x400] sm:$0xff] %v435_v0  ;;  %v439_v2 = vld [vmem:[%s7125_s28 + $0x820] sm:$0xff]  ;;  %v441_v3 = vld [vmem:[%s7125_s28 + $0x828] sm:$0xff]  ;;  %438 = vst [vmem:[%s7130_s29 + $0x408] sm:$0xff] %v437_v1 }
  0x53   : > { %440 = vst [vmem:[%s7130_s29 + $0x410] sm:$0xff] %v439_v2  ;;  %442 = vst [vmem:[%s7130_s29 + $0x418] sm:$0xff] %v441_v3  ;;  %v443_v4 = vld [vmem:[%s7125_s28 + $0x840] sm:$0xff]  ;;  %v445_v5 = vld [vmem:[%s7125_s28 + $0x848] sm:$0xff] }
  0x54   : > { %v447_v6 = vld [vmem:[%s7125_s28 + $0x860] sm:$0xff]  ;;  %444 = vst [vmem:[%s7130_s29 + $0x420] sm:$0xff] %v443_v4  ;;  %446 = vst [vmem:[%s7130_s29 + $0x428] sm:$0xff] %v445_v5  ;;  %v449_v7 = vld [vmem:[%s7125_s28 + $0x868] sm:$0xff] }
  0x55   : > { %448 = vst [vmem:[%s7130_s29 + $0x430] sm:$0xff] %v447_v6  ;;  %v451_v8 = vld [vmem:[%s7125_s28 + $0x880] sm:$0xff]  ;;  %v453_v9 = vld [vmem:[%s7125_s28 + $0x888] sm:$0xff]  ;;  %450 = vst [vmem:[%s7130_s29 + $0x438] sm:$0xff] %v449_v7 }
  0x56   : > { %452 = vst [vmem:[%s7130_s29 + $0x440] sm:$0xff] %v451_v8  ;;  %454 = vst [vmem:[%s7130_s29 + $0x448] sm:$0xff] %v453_v9  ;;  %v455_v10 = vld [vmem:[%s7125_s28 + $0x8a0] sm:$0xff]  ;;  %v457_v11 = vld [vmem:[%s7125_s28 + $0x8a8] sm:$0xff] }
  0x57   : > { %v459_v12 = vld [vmem:[%s7125_s28 + $0x8c0] sm:$0xff]  ;;  %456 = vst [vmem:[%s7130_s29 + $0x450] sm:$0xff] %v455_v10  ;;  %458 = vst [vmem:[%s7130_s29 + $0x458] sm:$0xff] %v457_v11  ;;  %v461_v13 = vld [vmem:[%s7125_s28 + $0x8c8] sm:$0xff] }
  0x58   : > { %460 = vst [vmem:[%s7130_s29 + $0x460] sm:$0xff] %v459_v12  ;;  %v463_v14 = vld [vmem:[%s7125_s28 + $0x8e0] sm:$0xff]  ;;  %v465_v15 = vld [vmem:[%s7125_s28 + $0x8e8] sm:$0xff]  ;;  %462 = vst [vmem:[%s7130_s29 + $0x468] sm:$0xff] %v461_v13 }
  0x59   : > { %464 = vst [vmem:[%s7130_s29 + $0x470] sm:$0xff] %v463_v14  ;;  %466 = vst [vmem:[%s7130_s29 + $0x478] sm:$0xff] %v465_v15  ;;  %v467_v16 = vld [vmem:[%s7125_s28 + $0x900] sm:$0xff]  ;;  %v469_v17 = vld [vmem:[%s7125_s28 + $0x908] sm:$0xff] }
  0x5a   : > { %v471_v18 = vld [vmem:[%s7125_s28 + $0x920] sm:$0xff]  ;;  %468 = vst [vmem:[%s7130_s29 + $0x480] sm:$0xff] %v467_v16  ;;  %470 = vst [vmem:[%s7130_s29 + $0x488] sm:$0xff] %v469_v17  ;;  %v473_v19 = vld [vmem:[%s7125_s28 + $0x928] sm:$0xff] }
  0x5b   : > { %472 = vst [vmem:[%s7130_s29 + $0x490] sm:$0xff] %v471_v18  ;;  %v475_v20 = vld [vmem:[%s7125_s28 + $0x940] sm:$0xff]  ;;  %v477_v21 = vld [vmem:[%s7125_s28 + $0x948] sm:$0xff]  ;;  %474 = vst [vmem:[%s7130_s29 + $0x498] sm:$0xff] %v473_v19 }
  0x5c   : > { %476 = vst [vmem:[%s7130_s29 + $0x4a0] sm:$0xff] %v475_v20  ;;  %478 = vst [vmem:[%s7130_s29 + $0x4a8] sm:$0xff] %v477_v21  ;;  %v479_v22 = vld [vmem:[%s7125_s28 + $0x960] sm:$0xff]  ;;  %v481_v23 = vld [vmem:[%s7125_s28 + $0x968] sm:$0xff] }
  0x5d   : > { %v483_v24 = vld [vmem:[%s7125_s28 + $0x980] sm:$0xff]  ;;  %480 = vst [vmem:[%s7130_s29 + $0x4b0] sm:$0xff] %v479_v22  ;;  %482 = vst [vmem:[%s7130_s29 + $0x4b8] sm:$0xff] %v481_v23  ;;  %v485_v25 = vld [vmem:[%s7125_s28 + $0x988] sm:$0xff] }
  0x5e   : > { %484 = vst [vmem:[%s7130_s29 + $0x4c0] sm:$0xff] %v483_v24  ;;  %v487_v26 = vld [vmem:[%s7125_s28 + $0x9a0] sm:$0xff]  ;;  %v489_v27 = vld [vmem:[%s7125_s28 + $0x9a8] sm:$0xff]  ;;  %486 = vst [vmem:[%s7130_s29 + $0x4c8] sm:$0xff] %v485_v25 }
  0x5f   : > { %488 = vst [vmem:[%s7130_s29 + $0x4d0] sm:$0xff] %v487_v26  ;;  %490 = vst [vmem:[%s7130_s29 + $0x4d8] sm:$0xff] %v489_v27  ;;  %v491_v28 = vld [vmem:[%s7125_s28 + $0x9c0] sm:$0xff]  ;;  %v493_v29 = vld [vmem:[%s7125_s28 + $0x9c8] sm:$0xff] }
  0x60   : > { %v495_v30 = vld [vmem:[%s7125_s28 + $0x9e0] sm:$0xff]  ;;  %492 = vst [vmem:[%s7130_s29 + $0x4e0] sm:$0xff] %v491_v28  ;;  %494 = vst [vmem:[%s7130_s29 + $0x4e8] sm:$0xff] %v493_v29  ;;  %v497_v31 = vld [vmem:[%s7125_s28 + $0x9e8] sm:$0xff] }
  0x61   : > { %496 = vst [vmem:[%s7130_s29 + $0x4f0] sm:$0xff] %v495_v30  ;;  %v499_v32 = vld [vmem:[%s7125_s28 + $0xa00] sm:$0xff]  ;;  %v501_v33 = vld [vmem:[%s7125_s28 + $0xa08] sm:$0xff]  ;;  %498 = vst [vmem:[%s7130_s29 + $0x4f8] sm:$0xff] %v497_v31 }
  0x62   : > { %500 = vst [vmem:[%s7130_s29 + $0x500] sm:$0xff] %v499_v32  ;;  %502 = vst [vmem:[%s7130_s29 + $0x508] sm:$0xff] %v501_v33  ;;  %v503_v34 = vld [vmem:[%s7125_s28 + $0xa20] sm:$0xff]  ;;  %v505_v35 = vld [vmem:[%s7125_s28 + $0xa28] sm:$0xff] }
  0x63   : > { %v507_v36 = vld [vmem:[%s7125_s28 + $0xa40] sm:$0xff]  ;;  %504 = vst [vmem:[%s7130_s29 + $0x510] sm:$0xff] %v503_v34  ;;  %506 = vst [vmem:[%s7130_s29 + $0x518] sm:$0xff] %v505_v35  ;;  %v509_v37 = vld [vmem:[%s7125_s28 + $0xa48] sm:$0xff] }
  0x64   : > { %508 = vst [vmem:[%s7130_s29 + $0x520] sm:$0xff] %v507_v36  ;;  %v511_v38 = vld [vmem:[%s7125_s28 + $0xa60] sm:$0xff]  ;;  %v513_v39 = vld [vmem:[%s7125_s28 + $0xa68] sm:$0xff]  ;;  %510 = vst [vmem:[%s7130_s29 + $0x528] sm:$0xff] %v509_v37 }
  0x65   : > { %512 = vst [vmem:[%s7130_s29 + $0x530] sm:$0xff] %v511_v38  ;;  %514 = vst [vmem:[%s7130_s29 + $0x538] sm:$0xff] %v513_v39  ;;  %v515_v40 = vld [vmem:[%s7125_s28 + $0xa80] sm:$0xff]  ;;  %v517_v41 = vld [vmem:[%s7125_s28 + $0xa88] sm:$0xff] }
  0x66   : > { %v519_v42 = vld [vmem:[%s7125_s28 + $0xaa0] sm:$0xff]  ;;  %516 = vst [vmem:[%s7130_s29 + $0x540] sm:$0xff] %v515_v40  ;;  %518 = vst [vmem:[%s7130_s29 + $0x548] sm:$0xff] %v517_v41  ;;  %v521_v43 = vld [vmem:[%s7125_s28 + $0xaa8] sm:$0xff] }
  0x67   : > { %520 = vst [vmem:[%s7130_s29 + $0x550] sm:$0xff] %v519_v42  ;;  %v523_v44 = vld [vmem:[%s7125_s28 + $0xac0] sm:$0xff]  ;;  %v525_v45 = vld [vmem:[%s7125_s28 + $0xac8] sm:$0xff]  ;;  %522 = vst [vmem:[%s7130_s29 + $0x558] sm:$0xff] %v521_v43 }
  0x68   : > { %524 = vst [vmem:[%s7130_s29 + $0x560] sm:$0xff] %v523_v44  ;;  %526 = vst [vmem:[%s7130_s29 + $0x568] sm:$0xff] %v525_v45  ;;  %v527_v46 = vld [vmem:[%s7125_s28 + $0xae0] sm:$0xff]  ;;  %v529_v47 = vld [vmem:[%s7125_s28 + $0xae8] sm:$0xff] }
  0x69   : > { %v531_v48 = vld [vmem:[%s7125_s28 + $0xb00] sm:$0xff]  ;;  %528 = vst [vmem:[%s7130_s29 + $0x570] sm:$0xff] %v527_v46  ;;  %530 = vst [vmem:[%s7130_s29 + $0x578] sm:$0xff] %v529_v47  ;;  %v533_v49 = vld [vmem:[%s7125_s28 + $0xb08] sm:$0xff] }
  0x6a   : > { %532 = vst [vmem:[%s7130_s29 + $0x580] sm:$0xff] %v531_v48  ;;  %v535_v50 = vld [vmem:[%s7125_s28 + $0xb20] sm:$0xff]  ;;  %v537_v51 = vld [vmem:[%s7125_s28 + $0xb28] sm:$0xff]  ;;  %534 = vst [vmem:[%s7130_s29 + $0x588] sm:$0xff] %v533_v49 }
  0x6b   : > { %536 = vst [vmem:[%s7130_s29 + $0x590] sm:$0xff] %v535_v50  ;;  %538 = vst [vmem:[%s7130_s29 + $0x598] sm:$0xff] %v537_v51  ;;  %v539_v52 = vld [vmem:[%s7125_s28 + $0xb40] sm:$0xff]  ;;  %v541_v53 = vld [vmem:[%s7125_s28 + $0xb48] sm:$0xff] }
  0x6c   : > { %v543_v54 = vld [vmem:[%s7125_s28 + $0xb60] sm:$0xff]  ;;  %540 = vst [vmem:[%s7130_s29 + $0x5a0] sm:$0xff] %v539_v52  ;;  %542 = vst [vmem:[%s7130_s29 + $0x5a8] sm:$0xff] %v541_v53  ;;  %v545_v55 = vld [vmem:[%s7125_s28 + $0xb68] sm:$0xff] }
  0x6d   : > { %544 = vst [vmem:[%s7130_s29 + $0x5b0] sm:$0xff] %v543_v54  ;;  %v547_v56 = vld [vmem:[%s7125_s28 + $0xb80] sm:$0xff]  ;;  %v549_v57 = vld [vmem:[%s7125_s28 + $0xb88] sm:$0xff]  ;;  %546 = vst [vmem:[%s7130_s29 + $0x5b8] sm:$0xff] %v545_v55 }
  0x6e   : > { %548 = vst [vmem:[%s7130_s29 + $0x5c0] sm:$0xff] %v547_v56  ;;  %550 = vst [vmem:[%s7130_s29 + $0x5c8] sm:$0xff] %v549_v57  ;;  %v551_v58 = vld [vmem:[%s7125_s28 + $0xba0] sm:$0xff]  ;;  %v553_v59 = vld [vmem:[%s7125_s28 + $0xba8] sm:$0xff] }
  0x6f   : > { %v555_v60 = vld [vmem:[%s7125_s28 + $0xbc0] sm:$0xff]  ;;  %552 = vst [vmem:[%s7130_s29 + $0x5d0] sm:$0xff] %v551_v58  ;;  %554 = vst [vmem:[%s7130_s29 + $0x5d8] sm:$0xff] %v553_v59  ;;  %v557_v61 = vld [vmem:[%s7125_s28 + $0xbc8] sm:$0xff] }
  0x70   : > { %556 = vst [vmem:[%s7130_s29 + $0x5e0] sm:$0xff] %v555_v60  ;;  %v559_v62 = vld [vmem:[%s7125_s28 + $0xbe0] sm:$0xff]  ;;  %v561_v63 = vld [vmem:[%s7125_s28 + $0xbe8] sm:$0xff]  ;;  %558 = vst [vmem:[%s7130_s29 + $0x5e8] sm:$0xff] %v557_v61 }
  0x71   : > { %560 = vst [vmem:[%s7130_s29 + $0x5f0] sm:$0xff] %v559_v62  ;;  %562 = vst [vmem:[%s7130_s29 + $0x5f8] sm:$0xff] %v561_v63  ;;  %v563_v0 = vld [vmem:[%s7125_s28 + $0xc00] sm:$0xff]  ;;  %v565_v1 = vld [vmem:[%s7125_s28 + $0xc08] sm:$0xff] }
  0x72   : > { %v567_v2 = vld [vmem:[%s7125_s28 + $0xc20] sm:$0xff]  ;;  %564 = vst [vmem:[%s7130_s29 + $0x600] sm:$0xff] %v563_v0  ;;  %566 = vst [vmem:[%s7130_s29 + $0x608] sm:$0xff] %v565_v1  ;;  %v569_v3 = vld [vmem:[%s7125_s28 + $0xc28] sm:$0xff] }
  0x73   : > { %568 = vst [vmem:[%s7130_s29 + $0x610] sm:$0xff] %v567_v2  ;;  %v571_v4 = vld [vmem:[%s7125_s28 + $0xc40] sm:$0xff]  ;;  %v573_v5 = vld [vmem:[%s7125_s28 + $0xc48] sm:$0xff]  ;;  %570 = vst [vmem:[%s7130_s29 + $0x618] sm:$0xff] %v569_v3 }
  0x74   : > { %572 = vst [vmem:[%s7130_s29 + $0x620] sm:$0xff] %v571_v4  ;;  %574 = vst [vmem:[%s7130_s29 + $0x628] sm:$0xff] %v573_v5  ;;  %v575_v6 = vld [vmem:[%s7125_s28 + $0xc60] sm:$0xff]  ;;  %v577_v7 = vld [vmem:[%s7125_s28 + $0xc68] sm:$0xff] }
  0x75   : > { %v579_v8 = vld [vmem:[%s7125_s28 + $0xc80] sm:$0xff]  ;;  %576 = vst [vmem:[%s7130_s29 + $0x630] sm:$0xff] %v575_v6  ;;  %578 = vst [vmem:[%s7130_s29 + $0x638] sm:$0xff] %v577_v7  ;;  %v581_v9 = vld [vmem:[%s7125_s28 + $0xc88] sm:$0xff] }
  0x76   : > { %580 = vst [vmem:[%s7130_s29 + $0x640] sm:$0xff] %v579_v8  ;;  %v583_v10 = vld [vmem:[%s7125_s28 + $0xca0] sm:$0xff]  ;;  %v585_v11 = vld [vmem:[%s7125_s28 + $0xca8] sm:$0xff]  ;;  %582 = vst [vmem:[%s7130_s29 + $0x648] sm:$0xff] %v581_v9 }
  0x77   : > { %584 = vst [vmem:[%s7130_s29 + $0x650] sm:$0xff] %v583_v10  ;;  %586 = vst [vmem:[%s7130_s29 + $0x658] sm:$0xff] %v585_v11  ;;  %v587_v12 = vld [vmem:[%s7125_s28 + $0xcc0] sm:$0xff]  ;;  %v589_v13 = vld [vmem:[%s7125_s28 + $0xcc8] sm:$0xff] }
  0x78   : > { %v591_v14 = vld [vmem:[%s7125_s28 + $0xce0] sm:$0xff]  ;;  %588 = vst [vmem:[%s7130_s29 + $0x660] sm:$0xff] %v587_v12  ;;  %590 = vst [vmem:[%s7130_s29 + $0x668] sm:$0xff] %v589_v13  ;;  %v593_v15 = vld [vmem:[%s7125_s28 + $0xce8] sm:$0xff] }
  0x79   : > { %592 = vst [vmem:[%s7130_s29 + $0x670] sm:$0xff] %v591_v14  ;;  %v595_v16 = vld [vmem:[%s7125_s28 + $0xd00] sm:$0xff]  ;;  %v597_v17 = vld [vmem:[%s7125_s28 + $0xd08] sm:$0xff]  ;;  %594 = vst [vmem:[%s7130_s29 + $0x678] sm:$0xff] %v593_v15 }
  0x7a   : > { %596 = vst [vmem:[%s7130_s29 + $0x680] sm:$0xff] %v595_v16  ;;  %598 = vst [vmem:[%s7130_s29 + $0x688] sm:$0xff] %v597_v17  ;;  %v599_v18 = vld [vmem:[%s7125_s28 + $0xd20] sm:$0xff]  ;;  %v601_v19 = vld [vmem:[%s7125_s28 + $0xd28] sm:$0xff] }
  0x7b   : > { %v603_v20 = vld [vmem:[%s7125_s28 + $0xd40] sm:$0xff]  ;;  %600 = vst [vmem:[%s7130_s29 + $0x690] sm:$0xff] %v599_v18  ;;  %602 = vst [vmem:[%s7130_s29 + $0x698] sm:$0xff] %v601_v19  ;;  %v605_v21 = vld [vmem:[%s7125_s28 + $0xd48] sm:$0xff] }
  0x7c   : > { %604 = vst [vmem:[%s7130_s29 + $0x6a0] sm:$0xff] %v603_v20  ;;  %v607_v22 = vld [vmem:[%s7125_s28 + $0xd60] sm:$0xff]  ;;  %v609_v23 = vld [vmem:[%s7125_s28 + $0xd68] sm:$0xff]  ;;  %606 = vst [vmem:[%s7130_s29 + $0x6a8] sm:$0xff] %v605_v21 }
  0x7d   : > { %608 = vst [vmem:[%s7130_s29 + $0x6b0] sm:$0xff] %v607_v22  ;;  %610 = vst [vmem:[%s7130_s29 + $0x6b8] sm:$0xff] %v609_v23  ;;  %v611_v24 = vld [vmem:[%s7125_s28 + $0xd80] sm:$0xff]  ;;  %v613_v25 = vld [vmem:[%s7125_s28 + $0xd88] sm:$0xff] }
  0x7e   : > { %v615_v26 = vld [vmem:[%s7125_s28 + $0xda0] sm:$0xff]  ;;  %612 = vst [vmem:[%s7130_s29 + $0x6c0] sm:$0xff] %v611_v24  ;;  %614 = vst [vmem:[%s7130_s29 + $0x6c8] sm:$0xff] %v613_v25  ;;  %v617_v27 = vld [vmem:[%s7125_s28 + $0xda8] sm:$0xff] }
  0x7f   : > { %616 = vst [vmem:[%s7130_s29 + $0x6d0] sm:$0xff] %v615_v26  ;;  %v619_v28 = vld [vmem:[%s7125_s28 + $0xdc0] sm:$0xff]  ;;  %v621_v29 = vld [vmem:[%s7125_s28 + $0xdc8] sm:$0xff]  ;;  %618 = vst [vmem:[%s7130_s29 + $0x6d8] sm:$0xff] %v617_v27 }
  0x80   : > { %620 = vst [vmem:[%s7130_s29 + $0x6e0] sm:$0xff] %v619_v28  ;;  %622 = vst [vmem:[%s7130_s29 + $0x6e8] sm:$0xff] %v621_v29  ;;  %v623_v30 = vld [vmem:[%s7125_s28 + $0xde0] sm:$0xff]  ;;  %v625_v31 = vld [vmem:[%s7125_s28 + $0xde8] sm:$0xff] }
  0x81   : > { %v627_v32 = vld [vmem:[%s7125_s28 + $0xe00] sm:$0xff]  ;;  %624 = vst [vmem:[%s7130_s29 + $0x6f0] sm:$0xff] %v623_v30  ;;  %626 = vst [vmem:[%s7130_s29 + $0x6f8] sm:$0xff] %v625_v31  ;;  %v629_v33 = vld [vmem:[%s7125_s28 + $0xe08] sm:$0xff] }
  0x82   : > { %628 = vst [vmem:[%s7130_s29 + $0x700] sm:$0xff] %v627_v32  ;;  %v631_v34 = vld [vmem:[%s7125_s28 + $0xe20] sm:$0xff]  ;;  %v633_v35 = vld [vmem:[%s7125_s28 + $0xe28] sm:$0xff]  ;;  %630 = vst [vmem:[%s7130_s29 + $0x708] sm:$0xff] %v629_v33 }
  0x83   : > { %632 = vst [vmem:[%s7130_s29 + $0x710] sm:$0xff] %v631_v34  ;;  %634 = vst [vmem:[%s7130_s29 + $0x718] sm:$0xff] %v633_v35  ;;  %v635_v36 = vld [vmem:[%s7125_s28 + $0xe40] sm:$0xff]  ;;  %v637_v37 = vld [vmem:[%s7125_s28 + $0xe48] sm:$0xff] }
  0x84   : > { %v639_v38 = vld [vmem:[%s7125_s28 + $0xe60] sm:$0xff]  ;;  %636 = vst [vmem:[%s7130_s29 + $0x720] sm:$0xff] %v635_v36  ;;  %638 = vst [vmem:[%s7130_s29 + $0x728] sm:$0xff] %v637_v37  ;;  %v641_v39 = vld [vmem:[%s7125_s28 + $0xe68] sm:$0xff] }
  0x85   : > { %640 = vst [vmem:[%s7130_s29 + $0x730] sm:$0xff] %v639_v38  ;;  %v643_v40 = vld [vmem:[%s7125_s28 + $0xe80] sm:$0xff]  ;;  %v645_v41 = vld [vmem:[%s7125_s28 + $0xe88] sm:$0xff]  ;;  %642 = vst [vmem:[%s7130_s29 + $0x738] sm:$0xff] %v641_v39 }
  0x86   : > { %644 = vst [vmem:[%s7130_s29 + $0x740] sm:$0xff] %v643_v40  ;;  %646 = vst [vmem:[%s7130_s29 + $0x748] sm:$0xff] %v645_v41  ;;  %v647_v42 = vld [vmem:[%s7125_s28 + $0xea0] sm:$0xff]  ;;  %v649_v43 = vld [vmem:[%s7125_s28 + $0xea8] sm:$0xff] }
  0x87   : > { %v651_v44 = vld [vmem:[%s7125_s28 + $0xec0] sm:$0xff]  ;;  %648 = vst [vmem:[%s7130_s29 + $0x750] sm:$0xff] %v647_v42  ;;  %650 = vst [vmem:[%s7130_s29 + $0x758] sm:$0xff] %v649_v43  ;;  %v653_v45 = vld [vmem:[%s7125_s28 + $0xec8] sm:$0xff] }
  0x88   : > { %652 = vst [vmem:[%s7130_s29 + $0x760] sm:$0xff] %v651_v44  ;;  %v655_v46 = vld [vmem:[%s7125_s28 + $0xee0] sm:$0xff]  ;;  %v657_v47 = vld [vmem:[%s7125_s28 + $0xee8] sm:$0xff]  ;;  %654 = vst [vmem:[%s7130_s29 + $0x768] sm:$0xff] %v653_v45 }
  0x89   : > { %656 = vst [vmem:[%s7130_s29 + $0x770] sm:$0xff] %v655_v46  ;;  %658 = vst [vmem:[%s7130_s29 + $0x778] sm:$0xff] %v657_v47  ;;  %v659_v48 = vld [vmem:[%s7125_s28 + $0xf00] sm:$0xff]  ;;  %v661_v49 = vld [vmem:[%s7125_s28 + $0xf08] sm:$0xff] }
  0x8a   : > { %v663_v50 = vld [vmem:[%s7125_s28 + $0xf20] sm:$0xff]  ;;  %660 = vst [vmem:[%s7130_s29 + $0x780] sm:$0xff] %v659_v48  ;;  %662 = vst [vmem:[%s7130_s29 + $0x788] sm:$0xff] %v661_v49  ;;  %v665_v51 = vld [vmem:[%s7125_s28 + $0xf28] sm:$0xff] }
  0x8b   : > { %664 = vst [vmem:[%s7130_s29 + $0x790] sm:$0xff] %v663_v50  ;;  %v667_v52 = vld [vmem:[%s7125_s28 + $0xf40] sm:$0xff]  ;;  %v669_v53 = vld [vmem:[%s7125_s28 + $0xf48] sm:$0xff]  ;;  %666 = vst [vmem:[%s7130_s29 + $0x798] sm:$0xff] %v665_v51 }
  0x8c   : > { %668 = vst [vmem:[%s7130_s29 + $0x7a0] sm:$0xff] %v667_v52  ;;  %670 = vst [vmem:[%s7130_s29 + $0x7a8] sm:$0xff] %v669_v53  ;;  %v671_v54 = vld [vmem:[%s7125_s28 + $0xf60] sm:$0xff]  ;;  %v673_v55 = vld [vmem:[%s7125_s28 + $0xf68] sm:$0xff] }
  0x8d   : > { %v675_v56 = vld [vmem:[%s7125_s28 + $0xf80] sm:$0xff]  ;;  %672 = vst [vmem:[%s7130_s29 + $0x7b0] sm:$0xff] %v671_v54  ;;  %674 = vst [vmem:[%s7130_s29 + $0x7b8] sm:$0xff] %v673_v55  ;;  %v677_v57 = vld [vmem:[%s7125_s28 + $0xf88] sm:$0xff] }
  0x8e   : > { %676 = vst [vmem:[%s7130_s29 + $0x7c0] sm:$0xff] %v675_v56  ;;  %v679_v58 = vld [vmem:[%s7125_s28 + $0xfa0] sm:$0xff]  ;;  %v681_v59 = vld [vmem:[%s7125_s28 + $0xfa8] sm:$0xff]  ;;  %678 = vst [vmem:[%s7130_s29 + $0x7c8] sm:$0xff] %v677_v57 }
  0x8f   : > { %680 = vst [vmem:[%s7130_s29 + $0x7d0] sm:$0xff] %v679_v58  ;;  %682 = vst [vmem:[%s7130_s29 + $0x7d8] sm:$0xff] %v681_v59  ;;  %v683_v60 = vld [vmem:[%s7125_s28 + $0xfc0] sm:$0xff]  ;;  %v685_v61 = vld [vmem:[%s7125_s28 + $0xfc8] sm:$0xff] }
  0x90   : > { %v687_v62 = vld [vmem:[%s7125_s28 + $0xfe0] sm:$0xff]  ;;  %684 = vst [vmem:[%s7130_s29 + $0x7e0] sm:$0xff] %v683_v60  ;;  %686 = vst [vmem:[%s7130_s29 + $0x7e8] sm:$0xff] %v685_v61  ;;  %v689_v63 = vld [vmem:[%s7125_s28 + $0xfe8] sm:$0xff] }
  0x91   : > { %688 = vst [vmem:[%s7130_s29 + $0x7f0] sm:$0xff] %v687_v62  ;;  %v691_v0 = vld [vmem:[%s7125_s28 + $0x1000] sm:$0xff]  ;;  %v693_v1 = vld [vmem:[%s7125_s28 + $0x1008] sm:$0xff]  ;;  %690 = vst [vmem:[%s7130_s29 + $0x7f8] sm:$0xff] %v689_v63 }
  0x92   : > { %692 = vst [vmem:[%s7130_s29 + $0x800] sm:$0xff] %v691_v0  ;;  %694 = vst [vmem:[%s7130_s29 + $0x808] sm:$0xff] %v693_v1  ;;  %v695_v2 = vld [vmem:[%s7125_s28 + $0x1020] sm:$0xff]  ;;  %v697_v3 = vld [vmem:[%s7125_s28 + $0x1028] sm:$0xff] }
  0x93   : > { %v699_v4 = vld [vmem:[%s7125_s28 + $0x1040] sm:$0xff]  ;;  %696 = vst [vmem:[%s7130_s29 + $0x810] sm:$0xff] %v695_v2  ;;  %698 = vst [vmem:[%s7130_s29 + $0x818] sm:$0xff] %v697_v3  ;;  %v701_v5 = vld [vmem:[%s7125_s28 + $0x1048] sm:$0xff] }
  0x94   : > { %700 = vst [vmem:[%s7130_s29 + $0x820] sm:$0xff] %v699_v4  ;;  %v703_v6 = vld [vmem:[%s7125_s28 + $0x1060] sm:$0xff]  ;;  %v705_v7 = vld [vmem:[%s7125_s28 + $0x1068] sm:$0xff]  ;;  %702 = vst [vmem:[%s7130_s29 + $0x828] sm:$0xff] %v701_v5 }
  0x95   : > { %704 = vst [vmem:[%s7130_s29 + $0x830] sm:$0xff] %v703_v6  ;;  %706 = vst [vmem:[%s7130_s29 + $0x838] sm:$0xff] %v705_v7  ;;  %v707_v8 = vld [vmem:[%s7125_s28 + $0x1080] sm:$0xff]  ;;  %v709_v9 = vld [vmem:[%s7125_s28 + $0x1088] sm:$0xff] }
  0x96   : > { %v711_v10 = vld [vmem:[%s7125_s28 + $0x10a0] sm:$0xff]  ;;  %708 = vst [vmem:[%s7130_s29 + $0x840] sm:$0xff] %v707_v8  ;;  %710 = vst [vmem:[%s7130_s29 + $0x848] sm:$0xff] %v709_v9  ;;  %v713_v11 = vld [vmem:[%s7125_s28 + $0x10a8] sm:$0xff] }
  0x97   : > { %712 = vst [vmem:[%s7130_s29 + $0x850] sm:$0xff] %v711_v10  ;;  %v715_v12 = vld [vmem:[%s7125_s28 + $0x10c0] sm:$0xff]  ;;  %v717_v13 = vld [vmem:[%s7125_s28 + $0x10c8] sm:$0xff]  ;;  %714 = vst [vmem:[%s7130_s29 + $0x858] sm:$0xff] %v713_v11 }
  0x98   : > { %716 = vst [vmem:[%s7130_s29 + $0x860] sm:$0xff] %v715_v12  ;;  %718 = vst [vmem:[%s7130_s29 + $0x868] sm:$0xff] %v717_v13  ;;  %v719_v14 = vld [vmem:[%s7125_s28 + $0x10e0] sm:$0xff]  ;;  %v721_v15 = vld [vmem:[%s7125_s28 + $0x10e8] sm:$0xff] }
  0x99   : > { %v723_v16 = vld [vmem:[%s7125_s28 + $0x1100] sm:$0xff]  ;;  %720 = vst [vmem:[%s7130_s29 + $0x870] sm:$0xff] %v719_v14  ;;  %722 = vst [vmem:[%s7130_s29 + $0x878] sm:$0xff] %v721_v15  ;;  %v725_v17 = vld [vmem:[%s7125_s28 + $0x1108] sm:$0xff] }
  0x9a   : > { %724 = vst [vmem:[%s7130_s29 + $0x880] sm:$0xff] %v723_v16  ;;  %v727_v18 = vld [vmem:[%s7125_s28 + $0x1120] sm:$0xff]  ;;  %v729_v19 = vld [vmem:[%s7125_s28 + $0x1128] sm:$0xff]  ;;  %726 = vst [vmem:[%s7130_s29 + $0x888] sm:$0xff] %v725_v17 }
  0x9b   : > { %728 = vst [vmem:[%s7130_s29 + $0x890] sm:$0xff] %v727_v18  ;;  %730 = vst [vmem:[%s7130_s29 + $0x898] sm:$0xff] %v729_v19  ;;  %v731_v20 = vld [vmem:[%s7125_s28 + $0x1140] sm:$0xff]  ;;  %v733_v21 = vld [vmem:[%s7125_s28 + $0x1148] sm:$0xff] }
  0x9c   : > { %v735_v22 = vld [vmem:[%s7125_s28 + $0x1160] sm:$0xff]  ;;  %732 = vst [vmem:[%s7130_s29 + $0x8a0] sm:$0xff] %v731_v20  ;;  %734 = vst [vmem:[%s7130_s29 + $0x8a8] sm:$0xff] %v733_v21  ;;  %v737_v23 = vld [vmem:[%s7125_s28 + $0x1168] sm:$0xff] }
  0x9d   : > { %736 = vst [vmem:[%s7130_s29 + $0x8b0] sm:$0xff] %v735_v22  ;;  %v739_v24 = vld [vmem:[%s7125_s28 + $0x1180] sm:$0xff]  ;;  %v741_v25 = vld [vmem:[%s7125_s28 + $0x1188] sm:$0xff]  ;;  %738 = vst [vmem:[%s7130_s29 + $0x8b8] sm:$0xff] %v737_v23 }
  0x9e   : > { %740 = vst [vmem:[%s7130_s29 + $0x8c0] sm:$0xff] %v739_v24  ;;  %742 = vst [vmem:[%s7130_s29 + $0x8c8] sm:$0xff] %v741_v25  ;;  %v743_v26 = vld [vmem:[%s7125_s28 + $0x11a0] sm:$0xff]  ;;  %v745_v27 = vld [vmem:[%s7125_s28 + $0x11a8] sm:$0xff] }
  0x9f   : > { %v747_v28 = vld [vmem:[%s7125_s28 + $0x11c0] sm:$0xff]  ;;  %744 = vst [vmem:[%s7130_s29 + $0x8d0] sm:$0xff] %v743_v26  ;;  %746 = vst [vmem:[%s7130_s29 + $0x8d8] sm:$0xff] %v745_v27  ;;  %v749_v29 = vld [vmem:[%s7125_s28 + $0x11c8] sm:$0xff] }
  0xa0   : > { %748 = vst [vmem:[%s7130_s29 + $0x8e0] sm:$0xff] %v747_v28  ;;  %v751_v30 = vld [vmem:[%s7125_s28 + $0x11e0] sm:$0xff]  ;;  %v753_v31 = vld [vmem:[%s7125_s28 + $0x11e8] sm:$0xff]  ;;  %750 = vst [vmem:[%s7130_s29 + $0x8e8] sm:$0xff] %v749_v29 }
  0xa1   : > { %752 = vst [vmem:[%s7130_s29 + $0x8f0] sm:$0xff] %v751_v30  ;;  %754 = vst [vmem:[%s7130_s29 + $0x8f8] sm:$0xff] %v753_v31  ;;  %v755_v32 = vld [vmem:[%s7125_s28 + $0x1200] sm:$0xff]  ;;  %v757_v33 = vld [vmem:[%s7125_s28 + $0x1208] sm:$0xff] }
  0xa2   : > { %v759_v34 = vld [vmem:[%s7125_s28 + $0x1220] sm:$0xff]  ;;  %756 = vst [vmem:[%s7130_s29 + $0x900] sm:$0xff] %v755_v32  ;;  %758 = vst [vmem:[%s7130_s29 + $0x908] sm:$0xff] %v757_v33  ;;  %v761_v35 = vld [vmem:[%s7125_s28 + $0x1228] sm:$0xff] }
  0xa3   : > { %760 = vst [vmem:[%s7130_s29 + $0x910] sm:$0xff] %v759_v34  ;;  %v763_v36 = vld [vmem:[%s7125_s28 + $0x1240] sm:$0xff]  ;;  %v765_v37 = vld [vmem:[%s7125_s28 + $0x1248] sm:$0xff]  ;;  %762 = vst [vmem:[%s7130_s29 + $0x918] sm:$0xff] %v761_v35 }
  0xa4   : > { %764 = vst [vmem:[%s7130_s29 + $0x920] sm:$0xff] %v763_v36  ;;  %766 = vst [vmem:[%s7130_s29 + $0x928] sm:$0xff] %v765_v37  ;;  %v767_v38 = vld [vmem:[%s7125_s28 + $0x1260] sm:$0xff]  ;;  %v769_v39 = vld [vmem:[%s7125_s28 + $0x1268] sm:$0xff] }
  0xa5   : > { %v771_v40 = vld [vmem:[%s7125_s28 + $0x1280] sm:$0xff]  ;;  %768 = vst [vmem:[%s7130_s29 + $0x930] sm:$0xff] %v767_v38  ;;  %770 = vst [vmem:[%s7130_s29 + $0x938] sm:$0xff] %v769_v39  ;;  %v773_v41 = vld [vmem:[%s7125_s28 + $0x1288] sm:$0xff] }
  0xa6   : > { %772 = vst [vmem:[%s7130_s29 + $0x940] sm:$0xff] %v771_v40  ;;  %v775_v42 = vld [vmem:[%s7125_s28 + $0x12a0] sm:$0xff]  ;;  %v777_v43 = vld [vmem:[%s7125_s28 + $0x12a8] sm:$0xff]  ;;  %774 = vst [vmem:[%s7130_s29 + $0x948] sm:$0xff] %v773_v41 }
  0xa7   : > { %776 = vst [vmem:[%s7130_s29 + $0x950] sm:$0xff] %v775_v42  ;;  %778 = vst [vmem:[%s7130_s29 + $0x958] sm:$0xff] %v777_v43  ;;  %v779_v44 = vld [vmem:[%s7125_s28 + $0x12c0] sm:$0xff]  ;;  %v781_v45 = vld [vmem:[%s7125_s28 + $0x12c8] sm:$0xff] }
  0xa8   : > { %v783_v46 = vld [vmem:[%s7125_s28 + $0x12e0] sm:$0xff]  ;;  %780 = vst [vmem:[%s7130_s29 + $0x960] sm:$0xff] %v779_v44  ;;  %782 = vst [vmem:[%s7130_s29 + $0x968] sm:$0xff] %v781_v45  ;;  %v785_v47 = vld [vmem:[%s7125_s28 + $0x12e8] sm:$0xff] }
  0xa9   : > { %784 = vst [vmem:[%s7130_s29 + $0x970] sm:$0xff] %v783_v46  ;;  %v787_v48 = vld [vmem:[%s7125_s28 + $0x1300] sm:$0xff]  ;;  %v789_v49 = vld [vmem:[%s7125_s28 + $0x1308] sm:$0xff]  ;;  %786 = vst [vmem:[%s7130_s29 + $0x978] sm:$0xff] %v785_v47 }
  0xaa   : > { %788 = vst [vmem:[%s7130_s29 + $0x980] sm:$0xff] %v787_v48  ;;  %790 = vst [vmem:[%s7130_s29 + $0x988] sm:$0xff] %v789_v49  ;;  %v791_v50 = vld [vmem:[%s7125_s28 + $0x1320] sm:$0xff]  ;;  %v793_v51 = vld [vmem:[%s7125_s28 + $0x1328] sm:$0xff] }
  0xab   : > { %v795_v52 = vld [vmem:[%s7125_s28 + $0x1340] sm:$0xff]  ;;  %792 = vst [vmem:[%s7130_s29 + $0x990] sm:$0xff] %v791_v50  ;;  %794 = vst [vmem:[%s7130_s29 + $0x998] sm:$0xff] %v793_v51  ;;  %v797_v53 = vld [vmem:[%s7125_s28 + $0x1348] sm:$0xff] }
  0xac   : > { %796 = vst [vmem:[%s7130_s29 + $0x9a0] sm:$0xff] %v795_v52  ;;  %v799_v54 = vld [vmem:[%s7125_s28 + $0x1360] sm:$0xff]  ;;  %v801_v55 = vld [vmem:[%s7125_s28 + $0x1368] sm:$0xff]  ;;  %798 = vst [vmem:[%s7130_s29 + $0x9a8] sm:$0xff] %v797_v53 }
  0xad   : > { %800 = vst [vmem:[%s7130_s29 + $0x9b0] sm:$0xff] %v799_v54  ;;  %802 = vst [vmem:[%s7130_s29 + $0x9b8] sm:$0xff] %v801_v55  ;;  %v803_v56 = vld [vmem:[%s7125_s28 + $0x1380] sm:$0xff]  ;;  %v805_v57 = vld [vmem:[%s7125_s28 + $0x1388] sm:$0xff] }
  0xae   : > { %v807_v58 = vld [vmem:[%s7125_s28 + $0x13a0] sm:$0xff]  ;;  %804 = vst [vmem:[%s7130_s29 + $0x9c0] sm:$0xff] %v803_v56  ;;  %806 = vst [vmem:[%s7130_s29 + $0x9c8] sm:$0xff] %v805_v57  ;;  %v809_v59 = vld [vmem:[%s7125_s28 + $0x13a8] sm:$0xff] }
  0xaf   : > { %808 = vst [vmem:[%s7130_s29 + $0x9d0] sm:$0xff] %v807_v58  ;;  %v811_v60 = vld [vmem:[%s7125_s28 + $0x13c0] sm:$0xff]  ;;  %v813_v61 = vld [vmem:[%s7125_s28 + $0x13c8] sm:$0xff]  ;;  %810 = vst [vmem:[%s7130_s29 + $0x9d8] sm:$0xff] %v809_v59 }
  0xb0   : > { %812 = vst [vmem:[%s7130_s29 + $0x9e0] sm:$0xff] %v811_v60  ;;  %814 = vst [vmem:[%s7130_s29 + $0x9e8] sm:$0xff] %v813_v61  ;;  %v815_v62 = vld [vmem:[%s7125_s28 + $0x13e0] sm:$0xff]  ;;  %v817_v63 = vld [vmem:[%s7125_s28 + $0x13e8] sm:$0xff] }
  0xb1   : > { %v819_v0 = vld [vmem:[%s7125_s28 + $0x1400] sm:$0xff]  ;;  %816 = vst [vmem:[%s7130_s29 + $0x9f0] sm:$0xff] %v815_v62  ;;  %818 = vst [vmem:[%s7130_s29 + $0x9f8] sm:$0xff] %v817_v63  ;;  %v821_v1 = vld [vmem:[%s7125_s28 + $0x1408] sm:$0xff] }
  0xb2   : > { %820 = vst [vmem:[%s7130_s29 + $0xa00] sm:$0xff] %v819_v0  ;;  %v823_v2 = vld [vmem:[%s7125_s28 + $0x1420] sm:$0xff]  ;;  %v825_v3 = vld [vmem:[%s7125_s28 + $0x1428] sm:$0xff]  ;;  %822 = vst [vmem:[%s7130_s29 + $0xa08] sm:$0xff] %v821_v1 }
  0xb3   : > { %824 = vst [vmem:[%s7130_s29 + $0xa10] sm:$0xff] %v823_v2  ;;  %826 = vst [vmem:[%s7130_s29 + $0xa18] sm:$0xff] %v825_v3  ;;  %v827_v4 = vld [vmem:[%s7125_s28 + $0x1440] sm:$0xff]  ;;  %v829_v5 = vld [vmem:[%s7125_s28 + $0x1448] sm:$0xff] }
  0xb4   : > { %v831_v6 = vld [vmem:[%s7125_s28 + $0x1460] sm:$0xff]  ;;  %828 = vst [vmem:[%s7130_s29 + $0xa20] sm:$0xff] %v827_v4  ;;  %830 = vst [vmem:[%s7130_s29 + $0xa28] sm:$0xff] %v829_v5  ;;  %v833_v7 = vld [vmem:[%s7125_s28 + $0x1468] sm:$0xff] }
  0xb5   : > { %832 = vst [vmem:[%s7130_s29 + $0xa30] sm:$0xff] %v831_v6  ;;  %v835_v8 = vld [vmem:[%s7125_s28 + $0x1480] sm:$0xff]  ;;  %v837_v9 = vld [vmem:[%s7125_s28 + $0x1488] sm:$0xff]  ;;  %834 = vst [vmem:[%s7130_s29 + $0xa38] sm:$0xff] %v833_v7 }
  0xb6   : > { %836 = vst [vmem:[%s7130_s29 + $0xa40] sm:$0xff] %v835_v8  ;;  %838 = vst [vmem:[%s7130_s29 + $0xa48] sm:$0xff] %v837_v9  ;;  %v839_v10 = vld [vmem:[%s7125_s28 + $0x14a0] sm:$0xff]  ;;  %v841_v11 = vld [vmem:[%s7125_s28 + $0x14a8] sm:$0xff] }
  0xb7   : > { %v843_v12 = vld [vmem:[%s7125_s28 + $0x14c0] sm:$0xff]  ;;  %840 = vst [vmem:[%s7130_s29 + $0xa50] sm:$0xff] %v839_v10  ;;  %842 = vst [vmem:[%s7130_s29 + $0xa58] sm:$0xff] %v841_v11  ;;  %v845_v13 = vld [vmem:[%s7125_s28 + $0x14c8] sm:$0xff] }
  0xb8   : > { %844 = vst [vmem:[%s7130_s29 + $0xa60] sm:$0xff] %v843_v12  ;;  %v847_v14 = vld [vmem:[%s7125_s28 + $0x14e0] sm:$0xff]  ;;  %v849_v15 = vld [vmem:[%s7125_s28 + $0x14e8] sm:$0xff]  ;;  %846 = vst [vmem:[%s7130_s29 + $0xa68] sm:$0xff] %v845_v13 }
  0xb9   : > { %848 = vst [vmem:[%s7130_s29 + $0xa70] sm:$0xff] %v847_v14  ;;  %850 = vst [vmem:[%s7130_s29 + $0xa78] sm:$0xff] %v849_v15  ;;  %v851_v16 = vld [vmem:[%s7125_s28 + $0x1500] sm:$0xff]  ;;  %v853_v17 = vld [vmem:[%s7125_s28 + $0x1508] sm:$0xff] }
  0xba   : > { %v855_v18 = vld [vmem:[%s7125_s28 + $0x1520] sm:$0xff]  ;;  %852 = vst [vmem:[%s7130_s29 + $0xa80] sm:$0xff] %v851_v16  ;;  %854 = vst [vmem:[%s7130_s29 + $0xa88] sm:$0xff] %v853_v17  ;;  %v857_v19 = vld [vmem:[%s7125_s28 + $0x1528] sm:$0xff] }
  0xbb   : > { %856 = vst [vmem:[%s7130_s29 + $0xa90] sm:$0xff] %v855_v18  ;;  %v859_v20 = vld [vmem:[%s7125_s28 + $0x1540] sm:$0xff]  ;;  %v861_v21 = vld [vmem:[%s7125_s28 + $0x1548] sm:$0xff]  ;;  %858 = vst [vmem:[%s7130_s29 + $0xa98] sm:$0xff] %v857_v19 }
  0xbc   : > { %860 = vst [vmem:[%s7130_s29 + $0xaa0] sm:$0xff] %v859_v20  ;;  %862 = vst [vmem:[%s7130_s29 + $0xaa8] sm:$0xff] %v861_v21  ;;  %v863_v22 = vld [vmem:[%s7125_s28 + $0x1560] sm:$0xff]  ;;  %v865_v23 = vld [vmem:[%s7125_s28 + $0x1568] sm:$0xff] }
  0xbd   : > { %v867_v24 = vld [vmem:[%s7125_s28 + $0x1580] sm:$0xff]  ;;  %864 = vst [vmem:[%s7130_s29 + $0xab0] sm:$0xff] %v863_v22  ;;  %866 = vst [vmem:[%s7130_s29 + $0xab8] sm:$0xff] %v865_v23  ;;  %v869_v25 = vld [vmem:[%s7125_s28 + $0x1588] sm:$0xff] }
  0xbe   : > { %868 = vst [vmem:[%s7130_s29 + $0xac0] sm:$0xff] %v867_v24  ;;  %v871_v26 = vld [vmem:[%s7125_s28 + $0x15a0] sm:$0xff]  ;;  %v873_v27 = vld [vmem:[%s7125_s28 + $0x15a8] sm:$0xff]  ;;  %870 = vst [vmem:[%s7130_s29 + $0xac8] sm:$0xff] %v869_v25 }
  0xbf   : > { %872 = vst [vmem:[%s7130_s29 + $0xad0] sm:$0xff] %v871_v26  ;;  %874 = vst [vmem:[%s7130_s29 + $0xad8] sm:$0xff] %v873_v27  ;;  %v875_v28 = vld [vmem:[%s7125_s28 + $0x15c0] sm:$0xff]  ;;  %v877_v29 = vld [vmem:[%s7125_s28 + $0x15c8] sm:$0xff] }
  0xc0   : > { %v879_v30 = vld [vmem:[%s7125_s28 + $0x15e0] sm:$0xff]  ;;  %876 = vst [vmem:[%s7130_s29 + $0xae0] sm:$0xff] %v875_v28  ;;  %878 = vst [vmem:[%s7130_s29 + $0xae8] sm:$0xff] %v877_v29  ;;  %v881_v31 = vld [vmem:[%s7125_s28 + $0x15e8] sm:$0xff] }
  0xc1   : > { %880 = vst [vmem:[%s7130_s29 + $0xaf0] sm:$0xff] %v879_v30  ;;  %v883_v32 = vld [vmem:[%s7125_s28 + $0x1600] sm:$0xff]  ;;  %v885_v33 = vld [vmem:[%s7125_s28 + $0x1608] sm:$0xff]  ;;  %882 = vst [vmem:[%s7130_s29 + $0xaf8] sm:$0xff] %v881_v31 }
  0xc2   : > { %884 = vst [vmem:[%s7130_s29 + $0xb00] sm:$0xff] %v883_v32  ;;  %886 = vst [vmem:[%s7130_s29 + $0xb08] sm:$0xff] %v885_v33  ;;  %v887_v34 = vld [vmem:[%s7125_s28 + $0x1620] sm:$0xff]  ;;  %v889_v35 = vld [vmem:[%s7125_s28 + $0x1628] sm:$0xff] }
  0xc3   : > { %v891_v36 = vld [vmem:[%s7125_s28 + $0x1640] sm:$0xff]  ;;  %888 = vst [vmem:[%s7130_s29 + $0xb10] sm:$0xff] %v887_v34  ;;  %890 = vst [vmem:[%s7130_s29 + $0xb18] sm:$0xff] %v889_v35  ;;  %v893_v37 = vld [vmem:[%s7125_s28 + $0x1648] sm:$0xff] }
  0xc4   : > { %892 = vst [vmem:[%s7130_s29 + $0xb20] sm:$0xff] %v891_v36  ;;  %v895_v38 = vld [vmem:[%s7125_s28 + $0x1660] sm:$0xff]  ;;  %v897_v39 = vld [vmem:[%s7125_s28 + $0x1668] sm:$0xff]  ;;  %894 = vst [vmem:[%s7130_s29 + $0xb28] sm:$0xff] %v893_v37 }
  0xc5   : > { %896 = vst [vmem:[%s7130_s29 + $0xb30] sm:$0xff] %v895_v38  ;;  %898 = vst [vmem:[%s7130_s29 + $0xb38] sm:$0xff] %v897_v39  ;;  %v899_v40 = vld [vmem:[%s7125_s28 + $0x1680] sm:$0xff]  ;;  %v901_v41 = vld [vmem:[%s7125_s28 + $0x1688] sm:$0xff] }
  0xc6   : > { %v903_v42 = vld [vmem:[%s7125_s28 + $0x16a0] sm:$0xff]  ;;  %900 = vst [vmem:[%s7130_s29 + $0xb40] sm:$0xff] %v899_v40  ;;  %902 = vst [vmem:[%s7130_s29 + $0xb48] sm:$0xff] %v901_v41  ;;  %v905_v43 = vld [vmem:[%s7125_s28 + $0x16a8] sm:$0xff] }
  0xc7   : > { %904 = vst [vmem:[%s7130_s29 + $0xb50] sm:$0xff] %v903_v42  ;;  %v907_v44 = vld [vmem:[%s7125_s28 + $0x16c0] sm:$0xff]  ;;  %v909_v45 = vld [vmem:[%s7125_s28 + $0x16c8] sm:$0xff]  ;;  %906 = vst [vmem:[%s7130_s29 + $0xb58] sm:$0xff] %v905_v43 }
  0xc8   : > { %908 = vst [vmem:[%s7130_s29 + $0xb60] sm:$0xff] %v907_v44  ;;  %910 = vst [vmem:[%s7130_s29 + $0xb68] sm:$0xff] %v909_v45  ;;  %v911_v46 = vld [vmem:[%s7125_s28 + $0x16e0] sm:$0xff]  ;;  %v913_v47 = vld [vmem:[%s7125_s28 + $0x16e8] sm:$0xff] }
  0xc9   : > { %v915_v48 = vld [vmem:[%s7125_s28 + $0x1700] sm:$0xff]  ;;  %912 = vst [vmem:[%s7130_s29 + $0xb70] sm:$0xff] %v911_v46  ;;  %914 = vst [vmem:[%s7130_s29 + $0xb78] sm:$0xff] %v913_v47  ;;  %v917_v49 = vld [vmem:[%s7125_s28 + $0x1708] sm:$0xff] }
  0xca   : > { %916 = vst [vmem:[%s7130_s29 + $0xb80] sm:$0xff] %v915_v48  ;;  %v919_v50 = vld [vmem:[%s7125_s28 + $0x1720] sm:$0xff]  ;;  %v921_v51 = vld [vmem:[%s7125_s28 + $0x1728] sm:$0xff]  ;;  %918 = vst [vmem:[%s7130_s29 + $0xb88] sm:$0xff] %v917_v49 }
  0xcb   : > { %920 = vst [vmem:[%s7130_s29 + $0xb90] sm:$0xff] %v919_v50  ;;  %922 = vst [vmem:[%s7130_s29 + $0xb98] sm:$0xff] %v921_v51  ;;  %v923_v52 = vld [vmem:[%s7125_s28 + $0x1740] sm:$0xff]  ;;  %v925_v53 = vld [vmem:[%s7125_s28 + $0x1748] sm:$0xff] }
  0xcc   : > { %v927_v54 = vld [vmem:[%s7125_s28 + $0x1760] sm:$0xff]  ;;  %924 = vst [vmem:[%s7130_s29 + $0xba0] sm:$0xff] %v923_v52  ;;  %926 = vst [vmem:[%s7130_s29 + $0xba8] sm:$0xff] %v925_v53  ;;  %v929_v55 = vld [vmem:[%s7125_s28 + $0x1768] sm:$0xff] }
  0xcd   : > { %928 = vst [vmem:[%s7130_s29 + $0xbb0] sm:$0xff] %v927_v54  ;;  %v931_v56 = vld [vmem:[%s7125_s28 + $0x1780] sm:$0xff]  ;;  %v933_v57 = vld [vmem:[%s7125_s28 + $0x1788] sm:$0xff]  ;;  %930 = vst [vmem:[%s7130_s29 + $0xbb8] sm:$0xff] %v929_v55 }
  0xce   : > { %932 = vst [vmem:[%s7130_s29 + $0xbc0] sm:$0xff] %v931_v56  ;;  %934 = vst [vmem:[%s7130_s29 + $0xbc8] sm:$0xff] %v933_v57  ;;  %v935_v58 = vld [vmem:[%s7125_s28 + $0x17a0] sm:$0xff]  ;;  %v937_v59 = vld [vmem:[%s7125_s28 + $0x17a8] sm:$0xff] }
  0xcf   : > { %v939_v60 = vld [vmem:[%s7125_s28 + $0x17c0] sm:$0xff]  ;;  %936 = vst [vmem:[%s7130_s29 + $0xbd0] sm:$0xff] %v935_v58  ;;  %938 = vst [vmem:[%s7130_s29 + $0xbd8] sm:$0xff] %v937_v59  ;;  %v941_v61 = vld [vmem:[%s7125_s28 + $0x17c8] sm:$0xff] }
  0xd0   : > { %940 = vst [vmem:[%s7130_s29 + $0xbe0] sm:$0xff] %v939_v60  ;;  %v943_v62 = vld [vmem:[%s7125_s28 + $0x17e0] sm:$0xff]  ;;  %v945_v63 = vld [vmem:[%s7125_s28 + $0x17e8] sm:$0xff]  ;;  %942 = vst [vmem:[%s7130_s29 + $0xbe8] sm:$0xff] %v941_v61 }
  0xd1   : > { %944 = vst [vmem:[%s7130_s29 + $0xbf0] sm:$0xff] %v943_v62  ;;  %946 = vst [vmem:[%s7130_s29 + $0xbf8] sm:$0xff] %v945_v63  ;;  %v947_v0 = vld [vmem:[%s7125_s28 + $0x1800] sm:$0xff]  ;;  %v949_v1 = vld [vmem:[%s7125_s28 + $0x1808] sm:$0xff] }
  0xd2   : > { %v951_v2 = vld [vmem:[%s7125_s28 + $0x1820] sm:$0xff]  ;;  %948 = vst [vmem:[%s7130_s29 + $0xc00] sm:$0xff] %v947_v0  ;;  %950 = vst [vmem:[%s7130_s29 + $0xc08] sm:$0xff] %v949_v1  ;;  %v953_v3 = vld [vmem:[%s7125_s28 + $0x1828] sm:$0xff] }
  0xd3   : > { %952 = vst [vmem:[%s7130_s29 + $0xc10] sm:$0xff] %v951_v2  ;;  %v955_v4 = vld [vmem:[%s7125_s28 + $0x1840] sm:$0xff]  ;;  %v957_v5 = vld [vmem:[%s7125_s28 + $0x1848] sm:$0xff]  ;;  %954 = vst [vmem:[%s7130_s29 + $0xc18] sm:$0xff] %v953_v3 }
  0xd4   : > { %956 = vst [vmem:[%s7130_s29 + $0xc20] sm:$0xff] %v955_v4  ;;  %958 = vst [vmem:[%s7130_s29 + $0xc28] sm:$0xff] %v957_v5  ;;  %v959_v6 = vld [vmem:[%s7125_s28 + $0x1860] sm:$0xff]  ;;  %v961_v7 = vld [vmem:[%s7125_s28 + $0x1868] sm:$0xff] }
  0xd5   : > { %v963_v8 = vld [vmem:[%s7125_s28 + $0x1880] sm:$0xff]  ;;  %960 = vst [vmem:[%s7130_s29 + $0xc30] sm:$0xff] %v959_v6  ;;  %962 = vst [vmem:[%s7130_s29 + $0xc38] sm:$0xff] %v961_v7  ;;  %v965_v9 = vld [vmem:[%s7125_s28 + $0x1888] sm:$0xff] }
  0xd6   : > { %964 = vst [vmem:[%s7130_s29 + $0xc40] sm:$0xff] %v963_v8  ;;  %v967_v10 = vld [vmem:[%s7125_s28 + $0x18a0] sm:$0xff]  ;;  %v969_v11 = vld [vmem:[%s7125_s28 + $0x18a8] sm:$0xff]  ;;  %966 = vst [vmem:[%s7130_s29 + $0xc48] sm:$0xff] %v965_v9 }
  0xd7   : > { %968 = vst [vmem:[%s7130_s29 + $0xc50] sm:$0xff] %v967_v10  ;;  %970 = vst [vmem:[%s7130_s29 + $0xc58] sm:$0xff] %v969_v11  ;;  %v971_v12 = vld [vmem:[%s7125_s28 + $0x18c0] sm:$0xff]  ;;  %v973_v13 = vld [vmem:[%s7125_s28 + $0x18c8] sm:$0xff] }
  0xd8   : > { %v975_v14 = vld [vmem:[%s7125_s28 + $0x18e0] sm:$0xff]  ;;  %972 = vst [vmem:[%s7130_s29 + $0xc60] sm:$0xff] %v971_v12  ;;  %974 = vst [vmem:[%s7130_s29 + $0xc68] sm:$0xff] %v973_v13  ;;  %v977_v15 = vld [vmem:[%s7125_s28 + $0x18e8] sm:$0xff] }
  0xd9   : > { %976 = vst [vmem:[%s7130_s29 + $0xc70] sm:$0xff] %v975_v14  ;;  %v979_v16 = vld [vmem:[%s7125_s28 + $0x1900] sm:$0xff]  ;;  %v981_v17 = vld [vmem:[%s7125_s28 + $0x1908] sm:$0xff]  ;;  %978 = vst [vmem:[%s7130_s29 + $0xc78] sm:$0xff] %v977_v15 }
  0xda   : > { %980 = vst [vmem:[%s7130_s29 + $0xc80] sm:$0xff] %v979_v16  ;;  %982 = vst [vmem:[%s7130_s29 + $0xc88] sm:$0xff] %v981_v17  ;;  %v983_v18 = vld [vmem:[%s7125_s28 + $0x1920] sm:$0xff]  ;;  %v985_v19 = vld [vmem:[%s7125_s28 + $0x1928] sm:$0xff] }
  0xdb   : > { %v987_v20 = vld [vmem:[%s7125_s28 + $0x1940] sm:$0xff]  ;;  %984 = vst [vmem:[%s7130_s29 + $0xc90] sm:$0xff] %v983_v18  ;;  %986 = vst [vmem:[%s7130_s29 + $0xc98] sm:$0xff] %v985_v19  ;;  %v989_v21 = vld [vmem:[%s7125_s28 + $0x1948] sm:$0xff] }
  0xdc   : > { %988 = vst [vmem:[%s7130_s29 + $0xca0] sm:$0xff] %v987_v20  ;;  %v991_v22 = vld [vmem:[%s7125_s28 + $0x1960] sm:$0xff]  ;;  %v993_v23 = vld [vmem:[%s7125_s28 + $0x1968] sm:$0xff]  ;;  %990 = vst [vmem:[%s7130_s29 + $0xca8] sm:$0xff] %v989_v21 }
  0xdd   : > { %992 = vst [vmem:[%s7130_s29 + $0xcb0] sm:$0xff] %v991_v22  ;;  %994 = vst [vmem:[%s7130_s29 + $0xcb8] sm:$0xff] %v993_v23  ;;  %v995_v24 = vld [vmem:[%s7125_s28 + $0x1980] sm:$0xff]  ;;  %v997_v25 = vld [vmem:[%s7125_s28 + $0x1988] sm:$0xff] }
  0xde   : > { %v999_v26 = vld [vmem:[%s7125_s28 + $0x19a0] sm:$0xff]  ;;  %996 = vst [vmem:[%s7130_s29 + $0xcc0] sm:$0xff] %v995_v24  ;;  %998 = vst [vmem:[%s7130_s29 + $0xcc8] sm:$0xff] %v997_v25  ;;  %v1001_v27 = vld [vmem:[%s7125_s28 + $0x19a8] sm:$0xff] }
  0xdf   : > { %1000 = vst [vmem:[%s7130_s29 + $0xcd0] sm:$0xff] %v999_v26  ;;  %v1003_v28 = vld [vmem:[%s7125_s28 + $0x19c0] sm:$0xff]  ;;  %v1005_v29 = vld [vmem:[%s7125_s28 + $0x19c8] sm:$0xff]  ;;  %1002 = vst [vmem:[%s7130_s29 + $0xcd8] sm:$0xff] %v1001_v27 }
  0xe0   : > { %1004 = vst [vmem:[%s7130_s29 + $0xce0] sm:$0xff] %v1003_v28  ;;  %1006 = vst [vmem:[%s7130_s29 + $0xce8] sm:$0xff] %v1005_v29  ;;  %v1007_v30 = vld [vmem:[%s7125_s28 + $0x19e0] sm:$0xff]  ;;  %v1009_v31 = vld [vmem:[%s7125_s28 + $0x19e8] sm:$0xff] }
  0xe1   : > { %v1011_v32 = vld [vmem:[%s7125_s28 + $0x1a00] sm:$0xff]  ;;  %1008 = vst [vmem:[%s7130_s29 + $0xcf0] sm:$0xff] %v1007_v30  ;;  %1010 = vst [vmem:[%s7130_s29 + $0xcf8] sm:$0xff] %v1009_v31  ;;  %v1013_v33 = vld [vmem:[%s7125_s28 + $0x1a08] sm:$0xff] }
  0xe2   : > { %1012 = vst [vmem:[%s7130_s29 + $0xd00] sm:$0xff] %v1011_v32  ;;  %v1015_v34 = vld [vmem:[%s7125_s28 + $0x1a20] sm:$0xff]  ;;  %v1017_v35 = vld [vmem:[%s7125_s28 + $0x1a28] sm:$0xff]  ;;  %1014 = vst [vmem:[%s7130_s29 + $0xd08] sm:$0xff] %v1013_v33 }
  0xe3   : > { %1016 = vst [vmem:[%s7130_s29 + $0xd10] sm:$0xff] %v1015_v34  ;;  %1018 = vst [vmem:[%s7130_s29 + $0xd18] sm:$0xff] %v1017_v35  ;;  %v1019_v36 = vld [vmem:[%s7125_s28 + $0x1a40] sm:$0xff]  ;;  %v1021_v37 = vld [vmem:[%s7125_s28 + $0x1a48] sm:$0xff] }
  0xe4   : > { %v1023_v38 = vld [vmem:[%s7125_s28 + $0x1a60] sm:$0xff]  ;;  %1020 = vst [vmem:[%s7130_s29 + $0xd20] sm:$0xff] %v1019_v36  ;;  %1022 = vst [vmem:[%s7130_s29 + $0xd28] sm:$0xff] %v1021_v37  ;;  %v1025_v39 = vld [vmem:[%s7125_s28 + $0x1a68] sm:$0xff] }
  0xe5   : > { %1024 = vst [vmem:[%s7130_s29 + $0xd30] sm:$0xff] %v1023_v38  ;;  %v1027_v40 = vld [vmem:[%s7125_s28 + $0x1a80] sm:$0xff]  ;;  %v1029_v41 = vld [vmem:[%s7125_s28 + $0x1a88] sm:$0xff]  ;;  %1026 = vst [vmem:[%s7130_s29 + $0xd38] sm:$0xff] %v1025_v39 }
  0xe6   : > { %1028 = vst [vmem:[%s7130_s29 + $0xd40] sm:$0xff] %v1027_v40  ;;  %1030 = vst [vmem:[%s7130_s29 + $0xd48] sm:$0xff] %v1029_v41  ;;  %v1031_v42 = vld [vmem:[%s7125_s28 + $0x1aa0] sm:$0xff]  ;;  %v1033_v43 = vld [vmem:[%s7125_s28 + $0x1aa8] sm:$0xff] }
  0xe7   : > { %v1035_v44 = vld [vmem:[%s7125_s28 + $0x1ac0] sm:$0xff]  ;;  %1032 = vst [vmem:[%s7130_s29 + $0xd50] sm:$0xff] %v1031_v42  ;;  %1034 = vst [vmem:[%s7130_s29 + $0xd58] sm:$0xff] %v1033_v43  ;;  %v1037_v45 = vld [vmem:[%s7125_s28 + $0x1ac8] sm:$0xff] }
  0xe8   : > { %1036 = vst [vmem:[%s7130_s29 + $0xd60] sm:$0xff] %v1035_v44  ;;  %v1039_v46 = vld [vmem:[%s7125_s28 + $0x1ae0] sm:$0xff]  ;;  %v1041_v47 = vld [vmem:[%s7125_s28 + $0x1ae8] sm:$0xff]  ;;  %1038 = vst [vmem:[%s7130_s29 + $0xd68] sm:$0xff] %v1037_v45 }
  0xe9   : > { %1040 = vst [vmem:[%s7130_s29 + $0xd70] sm:$0xff] %v1039_v46  ;;  %1042 = vst [vmem:[%s7130_s29 + $0xd78] sm:$0xff] %v1041_v47  ;;  %v1043_v48 = vld [vmem:[%s7125_s28 + $0x1b00] sm:$0xff]  ;;  %v1045_v49 = vld [vmem:[%s7125_s28 + $0x1b08] sm:$0xff] }
  0xea   : > { %v1047_v50 = vld [vmem:[%s7125_s28 + $0x1b20] sm:$0xff]  ;;  %1044 = vst [vmem:[%s7130_s29 + $0xd80] sm:$0xff] %v1043_v48  ;;  %1046 = vst [vmem:[%s7130_s29 + $0xd88] sm:$0xff] %v1045_v49  ;;  %v1049_v51 = vld [vmem:[%s7125_s28 + $0x1b28] sm:$0xff] }
  0xeb   : > { %1048 = vst [vmem:[%s7130_s29 + $0xd90] sm:$0xff] %v1047_v50  ;;  %v1051_v52 = vld [vmem:[%s7125_s28 + $0x1b40] sm:$0xff]  ;;  %v1053_v53 = vld [vmem:[%s7125_s28 + $0x1b48] sm:$0xff]  ;;  %1050 = vst [vmem:[%s7130_s29 + $0xd98] sm:$0xff] %v1049_v51 }
  0xec   : > { %1052 = vst [vmem:[%s7130_s29 + $0xda0] sm:$0xff] %v1051_v52  ;;  %1054 = vst [vmem:[%s7130_s29 + $0xda8] sm:$0xff] %v1053_v53  ;;  %v1055_v54 = vld [vmem:[%s7125_s28 + $0x1b60] sm:$0xff]  ;;  %v1057_v55 = vld [vmem:[%s7125_s28 + $0x1b68] sm:$0xff] }
  0xed   : > { %v1059_v56 = vld [vmem:[%s7125_s28 + $0x1b80] sm:$0xff]  ;;  %1056 = vst [vmem:[%s7130_s29 + $0xdb0] sm:$0xff] %v1055_v54  ;;  %1058 = vst [vmem:[%s7130_s29 + $0xdb8] sm:$0xff] %v1057_v55  ;;  %v1061_v57 = vld [vmem:[%s7125_s28 + $0x1b88] sm:$0xff] }
  0xee   : > { %1060 = vst [vmem:[%s7130_s29 + $0xdc0] sm:$0xff] %v1059_v56  ;;  %v1063_v58 = vld [vmem:[%s7125_s28 + $0x1ba0] sm:$0xff]  ;;  %v1065_v59 = vld [vmem:[%s7125_s28 + $0x1ba8] sm:$0xff]  ;;  %1062 = vst [vmem:[%s7130_s29 + $0xdc8] sm:$0xff] %v1061_v57 }
  0xef   : > { %1064 = vst [vmem:[%s7130_s29 + $0xdd0] sm:$0xff] %v1063_v58  ;;  %1066 = vst [vmem:[%s7130_s29 + $0xdd8] sm:$0xff] %v1065_v59  ;;  %v1067_v60 = vld [vmem:[%s7125_s28 + $0x1bc0] sm:$0xff]  ;;  %v1069_v61 = vld [vmem:[%s7125_s28 + $0x1bc8] sm:$0xff] }
  0xf0   : > { %v1071_v62 = vld [vmem:[%s7125_s28 + $0x1be0] sm:$0xff]  ;;  %1068 = vst [vmem:[%s7130_s29 + $0xde0] sm:$0xff] %v1067_v60  ;;  %1070 = vst [vmem:[%s7130_s29 + $0xde8] sm:$0xff] %v1069_v61  ;;  %v1073_v63 = vld [vmem:[%s7125_s28 + $0x1be8] sm:$0xff] }
  0xf1   : > { %1072 = vst [vmem:[%s7130_s29 + $0xdf0] sm:$0xff] %v1071_v62  ;;  %v1075_v0 = vld [vmem:[%s7125_s28 + $0x1c00] sm:$0xff]  ;;  %v1077_v1 = vld [vmem:[%s7125_s28 + $0x1c08] sm:$0xff]  ;;  %1074 = vst [vmem:[%s7130_s29 + $0xdf8] sm:$0xff] %v1073_v63 }
  0xf2   : > { %1076 = vst [vmem:[%s7130_s29 + $0xe00] sm:$0xff] %v1075_v0  ;;  %1078 = vst [vmem:[%s7130_s29 + $0xe08] sm:$0xff] %v1077_v1  ;;  %v1079_v2 = vld [vmem:[%s7125_s28 + $0x1c20] sm:$0xff]  ;;  %v1081_v3 = vld [vmem:[%s7125_s28 + $0x1c28] sm:$0xff] }
  0xf3   : > { %v1083_v4 = vld [vmem:[%s7125_s28 + $0x1c40] sm:$0xff]  ;;  %1080 = vst [vmem:[%s7130_s29 + $0xe10] sm:$0xff] %v1079_v2  ;;  %1082 = vst [vmem:[%s7130_s29 + $0xe18] sm:$0xff] %v1081_v3  ;;  %v1085_v5 = vld [vmem:[%s7125_s28 + $0x1c48] sm:$0xff] }
  0xf4   : > { %1084 = vst [vmem:[%s7130_s29 + $0xe20] sm:$0xff] %v1083_v4  ;;  %v1087_v6 = vld [vmem:[%s7125_s28 + $0x1c60] sm:$0xff]  ;;  %v1089_v7 = vld [vmem:[%s7125_s28 + $0x1c68] sm:$0xff]  ;;  %1086 = vst [vmem:[%s7130_s29 + $0xe28] sm:$0xff] %v1085_v5 }
  0xf5   : > { %1088 = vst [vmem:[%s7130_s29 + $0xe30] sm:$0xff] %v1087_v6  ;;  %1090 = vst [vmem:[%s7130_s29 + $0xe38] sm:$0xff] %v1089_v7  ;;  %v1091_v8 = vld [vmem:[%s7125_s28 + $0x1c80] sm:$0xff]  ;;  %v1093_v9 = vld [vmem:[%s7125_s28 + $0x1c88] sm:$0xff] }
  0xf6   : > { %v1095_v10 = vld [vmem:[%s7125_s28 + $0x1ca0] sm:$0xff]  ;;  %1092 = vst [vmem:[%s7130_s29 + $0xe40] sm:$0xff] %v1091_v8  ;;  %1094 = vst [vmem:[%s7130_s29 + $0xe48] sm:$0xff] %v1093_v9  ;;  %v1097_v11 = vld [vmem:[%s7125_s28 + $0x1ca8] sm:$0xff] }
  0xf7   : > { %1096 = vst [vmem:[%s7130_s29 + $0xe50] sm:$0xff] %v1095_v10  ;;  %v1099_v12 = vld [vmem:[%s7125_s28 + $0x1cc0] sm:$0xff]  ;;  %v1101_v13 = vld [vmem:[%s7125_s28 + $0x1cc8] sm:$0xff]  ;;  %1098 = vst [vmem:[%s7130_s29 + $0xe58] sm:$0xff] %v1097_v11 }
  0xf8   : > { %1100 = vst [vmem:[%s7130_s29 + $0xe60] sm:$0xff] %v1099_v12  ;;  %1102 = vst [vmem:[%s7130_s29 + $0xe68] sm:$0xff] %v1101_v13  ;;  %v1103_v14 = vld [vmem:[%s7125_s28 + $0x1ce0] sm:$0xff]  ;;  %v1105_v15 = vld [vmem:[%s7125_s28 + $0x1ce8] sm:$0xff] }
  0xf9   : > { %v1107_v16 = vld [vmem:[%s7125_s28 + $0x1d00] sm:$0xff]  ;;  %1104 = vst [vmem:[%s7130_s29 + $0xe70] sm:$0xff] %v1103_v14  ;;  %1106 = vst [vmem:[%s7130_s29 + $0xe78] sm:$0xff] %v1105_v15  ;;  %v1109_v17 = vld [vmem:[%s7125_s28 + $0x1d08] sm:$0xff] }
  0xfa   : > { %1108 = vst [vmem:[%s7130_s29 + $0xe80] sm:$0xff] %v1107_v16  ;;  %v1111_v18 = vld [vmem:[%s7125_s28 + $0x1d20] sm:$0xff]  ;;  %v1113_v19 = vld [vmem:[%s7125_s28 + $0x1d28] sm:$0xff]  ;;  %1110 = vst [vmem:[%s7130_s29 + $0xe88] sm:$0xff] %v1109_v17 }
  0xfb   : > { %1112 = vst [vmem:[%s7130_s29 + $0xe90] sm:$0xff] %v1111_v18  ;;  %1114 = vst [vmem:[%s7130_s29 + $0xe98] sm:$0xff] %v1113_v19  ;;  %v1115_v20 = vld [vmem:[%s7125_s28 + $0x1d40] sm:$0xff]  ;;  %v1117_v21 = vld [vmem:[%s7125_s28 + $0x1d48] sm:$0xff] }
  0xfc   : > { %v1119_v22 = vld [vmem:[%s7125_s28 + $0x1d60] sm:$0xff]  ;;  %1116 = vst [vmem:[%s7130_s29 + $0xea0] sm:$0xff] %v1115_v20  ;;  %1118 = vst [vmem:[%s7130_s29 + $0xea8] sm:$0xff] %v1117_v21  ;;  %v1121_v23 = vld [vmem:[%s7125_s28 + $0x1d68] sm:$0xff] }
  0xfd   : > { %1120 = vst [vmem:[%s7130_s29 + $0xeb0] sm:$0xff] %v1119_v22  ;;  %v1123_v24 = vld [vmem:[%s7125_s28 + $0x1d80] sm:$0xff]  ;;  %v1125_v25 = vld [vmem:[%s7125_s28 + $0x1d88] sm:$0xff]  ;;  %1122 = vst [vmem:[%s7130_s29 + $0xeb8] sm:$0xff] %v1121_v23 }
  0xfe   : > { %1124 = vst [vmem:[%s7130_s29 + $0xec0] sm:$0xff] %v1123_v24  ;;  %1126 = vst [vmem:[%s7130_s29 + $0xec8] sm:$0xff] %v1125_v25  ;;  %v1127_v26 = vld [vmem:[%s7125_s28 + $0x1da0] sm:$0xff]  ;;  %v1129_v27 = vld [vmem:[%s7125_s28 + $0x1da8] sm:$0xff] }
  0xff   : > { %v1131_v28 = vld [vmem:[%s7125_s28 + $0x1dc0] sm:$0xff]  ;;  %1128 = vst [vmem:[%s7130_s29 + $0xed0] sm:$0xff] %v1127_v26  ;;  %1130 = vst [vmem:[%s7130_s29 + $0xed8] sm:$0xff] %v1129_v27  ;;  %v1133_v29 = vld [vmem:[%s7125_s28 + $0x1dc8] sm:$0xff] }
 0x100   : > { %1132 = vst [vmem:[%s7130_s29 + $0xee0] sm:$0xff] %v1131_v28  ;;  %v1135_v30 = vld [vmem:[%s7125_s28 + $0x1de0] sm:$0xff]  ;;  %v1137_v31 = vld [vmem:[%s7125_s28 + $0x1de8] sm:$0xff]  ;;  %1134 = vst [vmem:[%s7130_s29 + $0xee8] sm:$0xff] %v1133_v29 }
 0x101   : > { %1136 = vst [vmem:[%s7130_s29 + $0xef0] sm:$0xff] %v1135_v30  ;;  %1138 = vst [vmem:[%s7130_s29 + $0xef8] sm:$0xff] %v1137_v31  ;;  %v1139_v32 = vld [vmem:[%s7125_s28 + $0x1e00] sm:$0xff]  ;;  %v1141_v33 = vld [vmem:[%s7125_s28 + $0x1e08] sm:$0xff] }
 0x102   : > { %v1143_v34 = vld [vmem:[%s7125_s28 + $0x1e20] sm:$0xff]  ;;  %1140 = vst [vmem:[%s7130_s29 + $0xf00] sm:$0xff] %v1139_v32  ;;  %1142 = vst [vmem:[%s7130_s29 + $0xf08] sm:$0xff] %v1141_v33  ;;  %v1145_v35 = vld [vmem:[%s7125_s28 + $0x1e28] sm:$0xff] }
 0x103   : > { %1144 = vst [vmem:[%s7130_s29 + $0xf10] sm:$0xff] %v1143_v34  ;;  %v1147_v36 = vld [vmem:[%s7125_s28 + $0x1e40] sm:$0xff]  ;;  %v1149_v37 = vld [vmem:[%s7125_s28 + $0x1e48] sm:$0xff]  ;;  %1146 = vst [vmem:[%s7130_s29 + $0xf18] sm:$0xff] %v1145_v35 }
 0x104   : > { %1148 = vst [vmem:[%s7130_s29 + $0xf20] sm:$0xff] %v1147_v36  ;;  %1150 = vst [vmem:[%s7130_s29 + $0xf28] sm:$0xff] %v1149_v37  ;;  %v1151_v38 = vld [vmem:[%s7125_s28 + $0x1e60] sm:$0xff]  ;;  %v1153_v39 = vld [vmem:[%s7125_s28 + $0x1e68] sm:$0xff] }
 0x105   : > { %v1155_v40 = vld [vmem:[%s7125_s28 + $0x1e80] sm:$0xff]  ;;  %1152 = vst [vmem:[%s7130_s29 + $0xf30] sm:$0xff] %v1151_v38  ;;  %1154 = vst [vmem:[%s7130_s29 + $0xf38] sm:$0xff] %v1153_v39  ;;  %v1157_v41 = vld [vmem:[%s7125_s28 + $0x1e88] sm:$0xff] }
 0x106   : > { %1156 = vst [vmem:[%s7130_s29 + $0xf40] sm:$0xff] %v1155_v40  ;;  %v1159_v42 = vld [vmem:[%s7125_s28 + $0x1ea0] sm:$0xff]  ;;  %v1161_v43 = vld [vmem:[%s7125_s28 + $0x1ea8] sm:$0xff]  ;;  %1158 = vst [vmem:[%s7130_s29 + $0xf48] sm:$0xff] %v1157_v41 }
 0x107   : > { %1160 = vst [vmem:[%s7130_s29 + $0xf50] sm:$0xff] %v1159_v42  ;;  %1162 = vst [vmem:[%s7130_s29 + $0xf58] sm:$0xff] %v1161_v43  ;;  %v1163_v44 = vld [vmem:[%s7125_s28 + $0x1ec0] sm:$0xff]  ;;  %v1165_v45 = vld [vmem:[%s7125_s28 + $0x1ec8] sm:$0xff] }
 0x108   : > { %v1167_v46 = vld [vmem:[%s7125_s28 + $0x1ee0] sm:$0xff]  ;;  %1164 = vst [vmem:[%s7130_s29 + $0xf60] sm:$0xff] %v1163_v44  ;;  %1166 = vst [vmem:[%s7130_s29 + $0xf68] sm:$0xff] %v1165_v45  ;;  %v1169_v47 = vld [vmem:[%s7125_s28 + $0x1ee8] sm:$0xff] }
 0x109   : > { %1168 = vst [vmem:[%s7130_s29 + $0xf70] sm:$0xff] %v1167_v46  ;;  %v1171_v48 = vld [vmem:[%s7125_s28 + $0x1f00] sm:$0xff]  ;;  %v1173_v49 = vld [vmem:[%s7125_s28 + $0x1f08] sm:$0xff]  ;;  %1170 = vst [vmem:[%s7130_s29 + $0xf78] sm:$0xff] %v1169_v47 }
 0x10a   : > { %1172 = vst [vmem:[%s7130_s29 + $0xf80] sm:$0xff] %v1171_v48  ;;  %1174 = vst [vmem:[%s7130_s29 + $0xf88] sm:$0xff] %v1173_v49  ;;  %v1175_v50 = vld [vmem:[%s7125_s28 + $0x1f20] sm:$0xff]  ;;  %v1177_v51 = vld [vmem:[%s7125_s28 + $0x1f28] sm:$0xff] }
 0x10b   : > { %v1179_v52 = vld [vmem:[%s7125_s28 + $0x1f40] sm:$0xff]  ;;  %1176 = vst [vmem:[%s7130_s29 + $0xf90] sm:$0xff] %v1175_v50  ;;  %1178 = vst [vmem:[%s7130_s29 + $0xf98] sm:$0xff] %v1177_v51  ;;  %v1181_v53 = vld [vmem:[%s7125_s28 + $0x1f48] sm:$0xff] }
 0x10c   : > { %1180 = vst [vmem:[%s7130_s29 + $0xfa0] sm:$0xff] %v1179_v52  ;;  %v1183_v54 = vld [vmem:[%s7125_s28 + $0x1f60] sm:$0xff]  ;;  %v1185_v55 = vld [vmem:[%s7125_s28 + $0x1f68] sm:$0xff]  ;;  %1182 = vst [vmem:[%s7130_s29 + $0xfa8] sm:$0xff] %v1181_v53 }
 0x10d   : > { %1184 = vst [vmem:[%s7130_s29 + $0xfb0] sm:$0xff] %v1183_v54  ;;  %1186 = vst [vmem:[%s7130_s29 + $0xfb8] sm:$0xff] %v1185_v55  ;;  %v1187_v56 = vld [vmem:[%s7125_s28 + $0x1f80] sm:$0xff]  ;;  %v1189_v57 = vld [vmem:[%s7125_s28 + $0x1f88] sm:$0xff] }
 0x10e   : > { %v1191_v58 = vld [vmem:[%s7125_s28 + $0x1fa0] sm:$0xff]  ;;  %1188 = vst [vmem:[%s7130_s29 + $0xfc0] sm:$0xff] %v1187_v56  ;;  %1190 = vst [vmem:[%s7130_s29 + $0xfc8] sm:$0xff] %v1189_v57  ;;  %v1193_v59 = vld [vmem:[%s7125_s28 + $0x1fa8] sm:$0xff] }
 0x10f   : > { %1192 = vst [vmem:[%s7130_s29 + $0xfd0] sm:$0xff] %v1191_v58  ;;  %v1195_v60 = vld [vmem:[%s7125_s28 + $0x1fc0] sm:$0xff]  ;;  %v1197_v61 = vld [vmem:[%s7125_s28 + $0x1fc8] sm:$0xff]  ;;  %1194 = vst [vmem:[%s7130_s29 + $0xfd8] sm:$0xff] %v1193_v59 }
 0x110   : > { %1196 = vst [vmem:[%s7130_s29 + $0xfe0] sm:$0xff] %v1195_v60  ;;  %1198 = vst [vmem:[%s7130_s29 + $0xfe8] sm:$0xff] %v1197_v61  ;;  %v1199_v62 = vld [vmem:[%s7125_s28 + $0x1fe0] sm:$0xff]  ;;  %v1201_v63 = vld [vmem:[%s7125_s28 + $0x1fe8] sm:$0xff] }
 0x111   : > { %1200 = vst [vmem:[%s7130_s29 + $0xff0] sm:$0xff] %v1199_v62  ;;  %1202 = vst [vmem:[%s7130_s29 + $0xff8] sm:$0xff] %v1201_v63 }
 0x112 PF: > { %p5527_p5 = scmp.ge.s32.totalorder %s7062_s17, 1  ;;  %p1224_p6 = scmp.lt.s32.totalorder %s7062_s17, 3 }
 0x114   : > { %p1225_p7 = pnand %p5527_p5, %p1224_p6 }
 0x115   : > { %s1231_s30 = sand.u32 (!%p1225_p7), 1, %s7054_s15   ;;  %v8159_v0 = vld [vmem:[%s8799_s0] sm:$0xff] (!%p1225_p7)  ;;  %s5530_s25 = sshll.u32 (!%p1225_p7), %s7105_s18, 6 }
 0x116   : > { %1228 = sbr.rel (%p1225_p7) target bundleno = 1231 (0x4cf), region = 55  ;;  %s5528_s7 = sshll.u32 (!%p1225_p7), %s1231_s30, 12  ;;  %v5534_v1 = vcombine.high (!%p1225_p7), %v8159_v0, %v8159_v0 }
 0x117   : > { %s8163_s8 = scalar_lea.vmem (!%p1225_p7), [#allocation2], %s5528_s7  ;;  %p1271_p8 = scmp.lt.s32.totalorder (!%p1225_p7), %s5530_s25, 127 }
 0x118   : > { %v6224_v2 = vld [vmem:[%s8163_s8 + $0x4] ss:$16 sps:$4 sm:$0xff] (!%p1225_p7)   ;;  %4471 = vmatprep.mubr.bf16.mxu0 (!%p1225_p7), %v5534_v1  ;;  %4799 = vmatprep.mubr.bf16.mxu1 (!%p1225_p7), %v5534_v1  ;;  %v6226_v3 = vld [vmem:[%s8163_s8 + $0xc] ss:$16 sps:$4 sm:$0xff] (!%p1225_p7)   ;;  %v6228_v4 = vld [vmem:[%s8163_s8] ss:$16 sps:$4 sm:$0xff] (!%p1225_p7)  }
 0x119   : > { %4439 = vmatprep.subr.bf16.mxu0 (!%p1225_p7), %v6224_v2  ;;  %v6229_v5 = vld [vmem:[%s8163_s8 + $0x8] ss:$16 sps:$4 sm:$0xff] (!%p1225_p7)   ;;  %4767 = vmatprep.subr.bf16.mxu1 (!%p1225_p7), %v6226_v3  ;;  %v6230_v6 = vld [vmem:[%s8163_s8 + $0x24] ss:$16 sps:$4 sm:$0xff] (!%p1225_p7)   ;;  %v6232_v7 = vld [vmem:[%s8163_s8 + $0x2c] ss:$16 sps:$4 sm:$0xff] (!%p1225_p7)  }
 0x11a   : > { %4440 = vmatpush1.bf16.msra.mxu0 (!%p1225_p7), %v6228_v4  ;;  %4768 = vmatpush1.bf16.msra.mxu1 (!%p1225_p7), %v6229_v5  ;;  %v6234_v8 = vld [vmem:[%s8163_s8 + $0x20] ss:$16 sps:$4 sm:$0xff] (!%p1225_p7)   ;;  %v6235_v9 = vld [vmem:[%s8163_s8 + $0x28] ss:$16 sps:$4 sm:$0xff] (!%p1225_p7)   ;;  %v6236_v10 = vld [vmem:[%s8163_s8 + $0x44] ss:$16 sps:$4 sm:$0xff] (!%p1225_p7)   ;;  %v5533_v5 = vcombine.low (!%p1225_p7), %v8159_v0, %v8159_v0 }
 0x11b   : > { %4441 = vmatprep.subr.bf16.mxu0 (!%p1225_p7), %v6230_v6  ;;  %4769 = vmatprep.subr.bf16.mxu1 (!%p1225_p7), %v6232_v7  ;;  %v6238_v11 = vld [vmem:[%s8163_s8 + $0x4c] ss:$16 sps:$4 sm:$0xff] (!%p1225_p7)   ;;  %v6240_v12 = vld [vmem:[%s8163_s8 + $0x40] ss:$16 sps:$4 sm:$0xff] (!%p1225_p7)   ;;  %v6241_v13 = vld [vmem:[%s8163_s8 + $0x48] ss:$16 sps:$4 sm:$0xff] (!%p1225_p7)  }
 0x11c   : > { %v6242_v14 = vld [vmem:[%s8163_s8 + $0x64] ss:$16 sps:$4 sm:$0xff] (!%p1225_p7)   ;;  %v6244_v15 = vld [vmem:[%s8163_s8 + $0x6c] ss:$16 sps:$4 sm:$0xff] (!%p1225_p7)   ;;  %v6246_v16 = vld [vmem:[%s8163_s8 + $0x60] ss:$16 sps:$4 sm:$0xff] (!%p1225_p7)  }
 0x11d   : > { %v6247_v17 = vld [vmem:[%s8163_s8 + $0x68] ss:$16 sps:$4 sm:$0xff]   ;;  %v6248_v18 = vld [vmem:[%s8163_s8 + $0x84] ss:$16 sps:$4 sm:$0xff]   ;;  %v6250_v19 = vld [vmem:[%s8163_s8 + $0x8c] ss:$16 sps:$4 sm:$0xff]  }
 0x11e   : > { %4442 = vmatpush1.bf16.msra.mxu0 %v6234_v8  ;;  %4770 = vmatpush1.bf16.msra.mxu1 %v6235_v9  ;;  %v6252_v20 = vld [vmem:[%s8163_s8 + $0x80] ss:$16 sps:$4 sm:$0xff]   ;;  %v6253_v21 = vld [vmem:[%s8163_s8 + $0x88] ss:$16 sps:$4 sm:$0xff]   ;;  %v6254_v22 = vld [vmem:[%s8163_s8 + $0xa4] ss:$16 sps:$4 sm:$0xff]  }
 0x11f   : > { %4443 = vmatprep.subr.bf16.mxu0 %v6236_v10  ;;  %4771 = vmatprep.subr.bf16.mxu1 %v6238_v11  ;;  %v6256_v23 = vld [vmem:[%s8163_s8 + $0xac] ss:$16 sps:$4 sm:$0xff]   ;;  %v6258_v24 = vld [vmem:[%s8163_s8 + $0xa0] ss:$16 sps:$4 sm:$0xff]   ;;  %v6259_v25 = vld [vmem:[%s8163_s8 + $0xa8] ss:$16 sps:$4 sm:$0xff]  }
 0x120   : > { %v6260_v26 = vld [vmem:[%s8163_s8 + $0xc4] ss:$16 sps:$4 sm:$0xff]   ;;  %v6262_v27 = vld [vmem:[%s8163_s8 + $0xcc] ss:$16 sps:$4 sm:$0xff]   ;;  %v6264_v28 = vld [vmem:[%s8163_s8 + $0xc0] ss:$16 sps:$4 sm:$0xff]  }
 0x121   : > { %v6265_v29 = vld [vmem:[%s8163_s8 + $0xc8] ss:$16 sps:$4 sm:$0xff]   ;;  %v6266_v30 = vld [vmem:[%s8163_s8 + $0xe4] ss:$16 sps:$4 sm:$0xff]   ;;  %v6268_v31 = vld [vmem:[%s8163_s8 + $0xec] ss:$16 sps:$4 sm:$0xff]  }
 0x122   : > { %4444 = vmatpush1.bf16.msra.mxu0 %v6240_v12  ;;  %4772 = vmatpush1.bf16.msra.mxu1 %v6241_v13  ;;  %v6270_v32 = vld [vmem:[%s8163_s8 + $0xe0] ss:$16 sps:$4 sm:$0xff]   ;;  %v6271_v33 = vld [vmem:[%s8163_s8 + $0xe8] ss:$16 sps:$4 sm:$0xff]   ;;  %v6272_v34 = vld [vmem:[%s8163_s8 + $0x104] ss:$16 sps:$4 sm:$0xff]  }
 0x123   : > { %4445 = vmatprep.subr.bf16.mxu0 %v6242_v14  ;;  %4773 = vmatprep.subr.bf16.mxu1 %v6244_v15  ;;  %v6274_v35 = vld [vmem:[%s8163_s8 + $0x10c] ss:$16 sps:$4 sm:$0xff]   ;;  %v6276_v36 = vld [vmem:[%s8163_s8 + $0x100] ss:$16 sps:$4 sm:$0xff]   ;;  %v6277_v37 = vld [vmem:[%s8163_s8 + $0x108] ss:$16 sps:$4 sm:$0xff]  }
 0x124   : > { %v6278_v38 = vld [vmem:[%s8163_s8 + $0x124] ss:$16 sps:$4 sm:$0xff]   ;;  %v6280_v39 = vld [vmem:[%s8163_s8 + $0x12c] ss:$16 sps:$4 sm:$0xff]   ;;  %v6282_v40 = vld [vmem:[%s8163_s8 + $0x120] ss:$16 sps:$4 sm:$0xff]  }
 0x125   : > { %v6283_v41 = vld [vmem:[%s8163_s8 + $0x128] ss:$16 sps:$4 sm:$0xff]   ;;  %v6284_v42 = vld [vmem:[%s8163_s8 + $0x144] ss:$16 sps:$4 sm:$0xff]   ;;  %v6286_v43 = vld [vmem:[%s8163_s8 + $0x14c] ss:$16 sps:$4 sm:$0xff]  }
 0x126   : > { %4446 = vmatpush1.bf16.msra.mxu0 %v6246_v16  ;;  %4774 = vmatpush1.bf16.msra.mxu1 %v6247_v17  ;;  %v6288_v44 = vld [vmem:[%s8163_s8 + $0x140] ss:$16 sps:$4 sm:$0xff]   ;;  %v6289_v45 = vld [vmem:[%s8163_s8 + $0x148] ss:$16 sps:$4 sm:$0xff]   ;;  %v6290_v46 = vld [vmem:[%s8163_s8 + $0x164] ss:$16 sps:$4 sm:$0xff]  }
 0x127   : > { %4447 = vmatprep.subr.bf16.mxu0 %v6248_v18  ;;  %4775 = vmatprep.subr.bf16.mxu1 %v6250_v19  ;;  %v6292_v47 = vld [vmem:[%s8163_s8 + $0x16c] ss:$16 sps:$4 sm:$0xff]   ;;  %v6294_v48 = vld [vmem:[%s8163_s8 + $0x160] ss:$16 sps:$4 sm:$0xff]   ;;  %v6295_v49 = vld [vmem:[%s8163_s8 + $0x168] ss:$16 sps:$4 sm:$0xff]  }
 0x128   : > { %v6296_v50 = vld [vmem:[%s8163_s8 + $0x184] ss:$16 sps:$4 sm:$0xff]   ;;  %v6298_v51 = vld [vmem:[%s8163_s8 + $0x18c] ss:$16 sps:$4 sm:$0xff]   ;;  %v6300_v52 = vld [vmem:[%s8163_s8 + $0x180] ss:$16 sps:$4 sm:$0xff]  }
 0x129   : > { %v6301_v53 = vld [vmem:[%s8163_s8 + $0x188] ss:$16 sps:$4 sm:$0xff]   ;;  %v6302_v54 = vld [vmem:[%s8163_s8 + $0x1a4] ss:$16 sps:$4 sm:$0xff]   ;;  %v6304_v55 = vld [vmem:[%s8163_s8 + $0x1ac] ss:$16 sps:$4 sm:$0xff]  }
 0x12a   : > { %4448 = vmatpush1.bf16.msra.mxu0 %v6252_v20  ;;  %4776 = vmatpush1.bf16.msra.mxu1 %v6253_v21  ;;  %v6306_v56 = vld [vmem:[%s8163_s8 + $0x1a0] ss:$16 sps:$4 sm:$0xff]   ;;  %v6307_v57 = vld [vmem:[%s8163_s8 + $0x1a8] ss:$16 sps:$4 sm:$0xff]   ;;  %v6308_v58 = vld [vmem:[%s8163_s8 + $0x1c4] ss:$16 sps:$4 sm:$0xff]  }
 0x12b   : > { %4449 = vmatprep.subr.bf16.mxu0 %v6254_v22  ;;  %4777 = vmatprep.subr.bf16.mxu1 %v6256_v23  ;;  %v6310_v59 = vld [vmem:[%s8163_s8 + $0x1cc] ss:$16 sps:$4 sm:$0xff]   ;;  %v6312_v60 = vld [vmem:[%s8163_s8 + $0x1c0] ss:$16 sps:$4 sm:$0xff]   ;;  %v6313_v61 = vld [vmem:[%s8163_s8 + $0x1c8] ss:$16 sps:$4 sm:$0xff]  }
 0x12c   : > { %v6314_v62 = vld [vmem:[%s8163_s8 + $0x1e4] ss:$16 sps:$4 sm:$0xff]   ;;  %v6316_v63 = vld [vmem:[%s8163_s8 + $0x1ec] ss:$16 sps:$4 sm:$0xff]   ;;  %v6318_v1 = vld [vmem:[%s8163_s8 + $0x1e0] ss:$16 sps:$4 sm:$0xff]  }
 0x12d   : > { %v6319_v2 = vld [vmem:[%s8163_s8 + $0x1e8] ss:$16 sps:$4 sm:$0xff]   ;;  %v6324_v3 = vld [vmem:[%s8163_s8 + $0x204] ss:$16 sps:$4 sm:$0xff]   ;;  %v6327_v4 = vld [vmem:[%s8163_s8 + $0x20c] ss:$16 sps:$4 sm:$0xff]  }
 0x12e   : > { %4450 = vmatpush1.bf16.msra.mxu0 %v6258_v24  ;;  %4778 = vmatpush1.bf16.msra.mxu1 %v6259_v25  ;;  %v6322_v6 = vld [vmem:[%s8163_s8 + $0x200] ss:$16 sps:$4 sm:$0xff]   ;;  %v6325_v7 = vld [vmem:[%s8163_s8 + $0x208] ss:$16 sps:$4 sm:$0xff]   ;;  %v6330_v8 = vld [vmem:[%s8163_s8 + $0x224] ss:$16 sps:$4 sm:$0xff]  }
 0x12f   : > { %4451 = vmatprep.subr.bf16.mxu0 %v6260_v26  ;;  %4779 = vmatprep.subr.bf16.mxu1 %v6262_v27  ;;  %v6333_v9 = vld [vmem:[%s8163_s8 + $0x22c] ss:$16 sps:$4 sm:$0xff]   ;;  %v6328_v10 = vld [vmem:[%s8163_s8 + $0x220] ss:$16 sps:$4 sm:$0xff]   ;;  %v6331_v11 = vld [vmem:[%s8163_s8 + $0x228] ss:$16 sps:$4 sm:$0xff]  }
 0x130   : > { %v6336_v0 = vld [vmem:[%s8163_s8 + $0x244] ss:$16 sps:$4 sm:$0xff]   ;;  %v6339_v12 = vld [vmem:[%s8163_s8 + $0x24c] ss:$16 sps:$4 sm:$0xff]   ;;  %v6334_v13 = vld [vmem:[%s8163_s8 + $0x240] ss:$16 sps:$4 sm:$0xff]  }
 0x131   : > { %v6337_v14 = vld [vmem:[%s8163_s8 + $0x248] ss:$16 sps:$4 sm:$0xff]   ;;  %v6342_v15 = vld [vmem:[%s8163_s8 + $0x264] ss:$16 sps:$4 sm:$0xff]   ;;  %v6345_v16 = vld [vmem:[%s8163_s8 + $0x26c] ss:$16 sps:$4 sm:$0xff]  }
 0x132   : > { %4452 = vmatpush1.bf16.msra.mxu0 %v6264_v28  ;;  %4780 = vmatpush1.bf16.msra.mxu1 %v6265_v29  ;;  %v6340_v17 = vld [vmem:[%s8163_s8 + $0x260] ss:$16 sps:$4 sm:$0xff]   ;;  %v6343_v18 = vld [vmem:[%s8163_s8 + $0x268] ss:$16 sps:$4 sm:$0xff]   ;;  %v6348_v19 = vld [vmem:[%s8163_s8 + $0x284] ss:$16 sps:$4 sm:$0xff]  }
 0x133   : > { %4453 = vmatprep.subr.bf16.mxu0 %v6266_v30  ;;  %4781 = vmatprep.subr.bf16.mxu1 %v6268_v31  ;;  %v6351_v20 = vld [vmem:[%s8163_s8 + $0x28c] ss:$16 sps:$4 sm:$0xff]   ;;  %v6346_v21 = vld [vmem:[%s8163_s8 + $0x280] ss:$16 sps:$4 sm:$0xff]   ;;  %v6349_v22 = vld [vmem:[%s8163_s8 + $0x288] ss:$16 sps:$4 sm:$0xff]  }
 0x134   : > { %v6354_v23 = vld [vmem:[%s8163_s8 + $0x2a4] ss:$16 sps:$4 sm:$0xff]   ;;  %v6357_v24 = vld [vmem:[%s8163_s8 + $0x2ac] ss:$16 sps:$4 sm:$0xff]   ;;  %v6352_v25 = vld [vmem:[%s8163_s8 + $0x2a0] ss:$16 sps:$4 sm:$0xff]  }
 0x135   : > { %v6355_v26 = vld [vmem:[%s8163_s8 + $0x2a8] ss:$16 sps:$4 sm:$0xff]   ;;  %v6360_v27 = vld [vmem:[%s8163_s8 + $0x2c4] ss:$16 sps:$4 sm:$0xff]   ;;  %v6363_v28 = vld [vmem:[%s8163_s8 + $0x2cc] ss:$16 sps:$4 sm:$0xff]  }
 0x136   : > { %4454 = vmatpush1.bf16.msra.mxu0 %v6270_v32  ;;  %4782 = vmatpush1.bf16.msra.mxu1 %v6271_v33  ;;  %v8260_v29 = vld [vmem:[%s8799_s0 + $0x8] sm:$0xff]  ;;  %v6358_v31 = vld [vmem:[%s8163_s8 + $0x2c0] ss:$16 sps:$4 sm:$0xff]   ;;  %v6366_v33 = vld [vmem:[%s8163_s8 + $0x2e4] ss:$16 sps:$4 sm:$0xff]   ;;  %s8808_s25 = smov (!%p1271_p8, %s5530_s25), 127 }
 0x137   : > { %4455 = vmatprep.subr.bf16.mxu0 %v6272_v34  ;;  %4783 = vmatprep.subr.bf16.mxu1 %v6274_v35  ;;  %v5536_v30 = vcombine.high %v8260_v29, %v8260_v29  ;;  %v6361_v32 = vld [vmem:[%s8163_s8 + $0x2c8] ss:$16 sps:$4 sm:$0xff]   ;;  %v6369_v34 = vld [vmem:[%s8163_s8 + $0x2ec] ss:$16 sps:$4 sm:$0xff]   ;;  %v6364_v35 = vld [vmem:[%s8163_s8 + $0x2e0] ss:$16 sps:$4 sm:$0xff]  }
 0x138   : > { %s5531_s26 = sshll.u32 %s8808_s25, 2  ;;  %s5529_s6 = sshll.u32 %s7105_s18, 2 }
 0x139   : > { %s8621_s29 = scalar_lea.vmem %s8802_s3, %s5531_s26  ;;  %p1266_p9 = scmp.lt.s32.totalorder %s5529_s6, 7 }
 0x13a   : > { %4456 = vmatpush1.bf16.msra.mxu0 %v6276_v36  ;;  %4784 = vmatpush1.bf16.msra.mxu1 %v6277_v37  ;;  %v6367_v36 = vld [vmem:[%s8163_s8 + $0x2e8] ss:$16 sps:$4 sm:$0xff]   ;;  %v6372_v37 = vld [vmem:[%s8163_s8 + $0x304] ss:$16 sps:$4 sm:$0xff]   ;;  %p1276_p10 = scmp.lt.s32.totalorder %s7105_s18, 1 }
 0x13b   : > { %4457 = vmatprep.subr.bf16.mxu0 %v6278_v38  ;;  %4785 = vmatprep.subr.bf16.mxu1 %v6280_v39  ;;  %v6375_v38 = vld [vmem:[%s8163_s8 + $0x30c] ss:$16 sps:$4 sm:$0xff]   ;;  %v6370_v39 = vld [vmem:[%s8163_s8 + $0x300] ss:$16 sps:$4 sm:$0xff]   ;;  %s8810_s6 = smov (!%p1266_p9, %s5529_s6), 7 }
 0x13c   : > { %s1268_s9 = scalar_lea.vmem %s8801_s2, %s8810_s6  ;;  %s8812_s18 = smov (!%p1276_p10, %s7105_s18), 1 }
 0x13d   : > { %s5532_s10 = sshll.u32 %s8812_s18, 3 }
 0x13e   : > { %4458 = vmatpush1.bf16.msra.mxu0 %v6282_v40  ;;  %4786 = vmatpush1.bf16.msra.mxu1 %v6283_v41  ;;  %v6373_v40 = vld [vmem:[%s8163_s8 + $0x308] ss:$16 sps:$4 sm:$0xff]   ;;  %v6378_v41 = vld [vmem:[%s8163_s8 + $0x324] ss:$16 sps:$4 sm:$0xff]   ;;  %s1279_s13 = scalar_lea.vmem %s8803_s4, %s5532_s10 }
 0x13f   : > { %4459 = vmatprep.subr.bf16.mxu0 %v6284_v42  ;;  %4787 = vmatprep.subr.bf16.mxu1 %v6286_v43  ;;  %v6381_v42 = vld [vmem:[%s8163_s8 + $0x32c] ss:$16 sps:$4 sm:$0xff]   ;;  %v6376_v43 = vld [vmem:[%s8163_s8 + $0x320] ss:$16 sps:$4 sm:$0xff]  }
 0x142   : > { %4460 = vmatpush1.bf16.msra.mxu0 %v6288_v44  ;;  %4788 = vmatpush1.bf16.msra.mxu1 %v6289_v45  ;;  %v6379_v44 = vld [vmem:[%s8163_s8 + $0x328] ss:$16 sps:$4 sm:$0xff]   ;;  %v6384_v45 = vld [vmem:[%s8163_s8 + $0x344] ss:$16 sps:$4 sm:$0xff]  }
 0x143   : > { %4461 = vmatprep.subr.bf16.mxu0 %v6290_v46  ;;  %4789 = vmatprep.subr.bf16.mxu1 %v6292_v47  ;;  %v6387_v46 = vld [vmem:[%s8163_s8 + $0x34c] ss:$16 sps:$4 sm:$0xff]   ;;  %v6382_v47 = vld [vmem:[%s8163_s8 + $0x340] ss:$16 sps:$4 sm:$0xff]  }
 0x146   : > { %4462 = vmatpush1.bf16.msra.mxu0 %v6294_v48  ;;  %4790 = vmatpush1.bf16.msra.mxu1 %v6295_v49  ;;  %v6385_v48 = vld [vmem:[%s8163_s8 + $0x348] ss:$16 sps:$4 sm:$0xff]   ;;  %v6390_v49 = vld [vmem:[%s8163_s8 + $0x364] ss:$16 sps:$4 sm:$0xff]  }
 0x147   : > { %4463 = vmatprep.subr.bf16.mxu0 %v6296_v50  ;;  %4791 = vmatprep.subr.bf16.mxu1 %v6298_v51  ;;  %v6393_v50 = vld [vmem:[%s8163_s8 + $0x36c] ss:$16 sps:$4 sm:$0xff]   ;;  %v6388_v51 = vld [vmem:[%s8163_s8 + $0x360] ss:$16 sps:$4 sm:$0xff]  }
 0x14a   : > { %4464 = vmatpush1.bf16.msra.mxu0 %v6300_v52  ;;  %4792 = vmatpush1.bf16.msra.mxu1 %v6301_v53  ;;  %v6391_v52 = vld [vmem:[%s8163_s8 + $0x368] ss:$16 sps:$4 sm:$0xff]   ;;  %v6396_v53 = vld [vmem:[%s8163_s8 + $0x384] ss:$16 sps:$4 sm:$0xff]  }
 0x14b   : > { %4465 = vmatprep.subr.bf16.mxu0 %v6302_v54  ;;  %4793 = vmatprep.subr.bf16.mxu1 %v6304_v55  ;;  %v6399_v54 = vld [vmem:[%s8163_s8 + $0x38c] ss:$16 sps:$4 sm:$0xff]   ;;  %v6394_v55 = vld [vmem:[%s8163_s8 + $0x380] ss:$16 sps:$4 sm:$0xff]  }
 0x14e   : > { %4466 = vmatpush1.bf16.msra.mxu0 %v6306_v56  ;;  %4794 = vmatpush1.bf16.msra.mxu1 %v6307_v57  ;;  %v6397_v56 = vld [vmem:[%s8163_s8 + $0x388] ss:$16 sps:$4 sm:$0xff]   ;;  %v6402_v57 = vld [vmem:[%s8163_s8 + $0x3a4] ss:$16 sps:$4 sm:$0xff]  }
 0x14f   : > { %4467 = vmatprep.subr.bf16.mxu0 %v6308_v58  ;;  %4795 = vmatprep.subr.bf16.mxu1 %v6310_v59  ;;  %v6405_v58 = vld [vmem:[%s8163_s8 + $0x3ac] ss:$16 sps:$4 sm:$0xff]   ;;  %v6400_v59 = vld [vmem:[%s8163_s8 + $0x3a0] ss:$16 sps:$4 sm:$0xff]  }
 0x152   : > { %4468 = vmatpush1.bf16.msra.mxu0 %v6312_v60  ;;  %4796 = vmatpush1.bf16.msra.mxu1 %v6313_v61  ;;  %v6403_v60 = vld [vmem:[%s8163_s8 + $0x3a8] ss:$16 sps:$4 sm:$0xff]   ;;  %v6408_v61 = vld [vmem:[%s8163_s8 + $0x3c4] ss:$16 sps:$4 sm:$0xff]  }
 0x153   : > { %4469 = vmatprep.subr.bf16.mxu0 %v6314_v62  ;;  %4797 = vmatprep.subr.bf16.mxu1 %v6316_v63  ;;  %v6411_v62 = vld [vmem:[%s8163_s8 + $0x3cc] ss:$16 sps:$4 sm:$0xff]   ;;  %v6406_v63 = vld [vmem:[%s8163_s8 + $0x3c0] ss:$16 sps:$4 sm:$0xff]  }
 0x156   : > { %4470 = vmatpush1.bf16.msra.mxu0 %v6318_v1  ;;  %4798 = vmatpush1.bf16.msra.mxu1 %v6319_v2  ;;  %v6409_v1 = vld [vmem:[%s8163_s8 + $0x3c8] ss:$16 sps:$4 sm:$0xff]   ;;  %v6414_v2 = vld [vmem:[%s8163_s8 + $0x3e4] ss:$16 sps:$4 sm:$0xff]  }
 0x157   : > { %4480 = vmatprep.subr.bf16.mxu0 %v6324_v3  ;;  %4808 = vmatprep.subr.bf16.mxu1 %v6327_v4  ;;  %v6417_v3 = vld [vmem:[%s8163_s8 + $0x3ec] ss:$16 sps:$4 sm:$0xff]   ;;  %v6412_v4 = vld [vmem:[%s8163_s8 + $0x3e0] ss:$16 sps:$4 sm:$0xff]  }
 0x159   : > { %4472 = vmatmul.mubr.bf16.vlgmr.msra.gmra.mrb[0].mxu0 %v5533_v5  ;;  %4800 = vmatmul.mubr.bf16.vlgmr.msra.gmra.mrb[0].mxu1 %v5533_v5  ;;  %v6415_v5 = vld [vmem:[%s8163_s8 + $0x3e8] ss:$16 sps:$4 sm:$0xff]  }
 0x15a   : > { %4481 = vmatpush1.bf16.msra.mxu0 %v6322_v6  ;;  %4809 = vmatpush1.bf16.msra.mxu1 %v6325_v7  ;;  %v6422_v6 = vld [vmem:[%s8163_s8 + $0x404] ss:$16 sps:$4 sm:$0xff]   ;;  %v6425_v7 = vld [vmem:[%s8163_s8 + $0x40c] ss:$16 sps:$4 sm:$0xff]  }
 0x15b   : > { %4482 = vmatprep.subr.bf16.mxu0 %v6330_v8  ;;  %4810 = vmatprep.subr.bf16.mxu1 %v6333_v9  ;;  %v5535_v8 = vcombine.low %v8260_v29, %v8260_v29  ;;  %v6420_v9 = vld [vmem:[%s8163_s8 + $0x400] ss:$16 sps:$4 sm:$0xff]   ;;  %v6455_v29 = vld [vmem:[%s8163_s8 + $0x4ac] ss:$16 sps:$4 sm:$0xff]  }
 0x15c   : > { %4512 = vmatprep.mubr.bf16.mxu0 %v5536_v30  ;;  %4840 = vmatprep.mubr.bf16.mxu1 %v5536_v30  ;;  %v6450_v30 = vld [vmem:[%s8163_s8 + $0x4a0] ss:$16 sps:$4 sm:$0xff]  }
 0x15e   : > { %4483 = vmatpush1.bf16.msra.mxu0 %v6328_v10  ;;  %4811 = vmatpush1.bf16.msra.mxu1 %v6331_v11  ;;  %v6423_v10 = vld [vmem:[%s8163_s8 + $0x408] ss:$16 sps:$4 sm:$0xff]   ;;  %v8311_v11 = vld [vmem:[%s8799_s0 + $0x10] sm:$0xff] }
 0x15f   : > { %4484 = vmatprep.subr.bf16.mxu0 %v6336_v0  ;;  %4812 = vmatprep.subr.bf16.mxu1 %v6339_v12  ;;  %v6428_v0 = vld [vmem:[%s8163_s8 + $0x424] ss:$16 sps:$4 sm:$0xff]   ;;  %v6431_v12 = vld [vmem:[%s8163_s8 + $0x42c] ss:$16 sps:$4 sm:$0xff]  }
 0x162   : > { %4485 = vmatpush1.bf16.msra.mxu0 %v6334_v13  ;;  %4813 = vmatpush1.bf16.msra.mxu1 %v6337_v14  ;;  %v5538_v13 = vcombine.high %v8311_v11, %v8311_v11  ;;  %v6426_v14 = vld [vmem:[%s8163_s8 + $0x420] ss:$16 sps:$4 sm:$0xff]  }
 0x163   : > { %4486 = vmatprep.subr.bf16.mxu0 %v6342_v15  ;;  %4814 = vmatprep.subr.bf16.mxu1 %v6345_v16  ;;  %v6429_v15 = vld [vmem:[%s8163_s8 + $0x428] ss:$16 sps:$4 sm:$0xff]   ;;  %v6434_v16 = vld [vmem:[%s8163_s8 + $0x444] ss:$16 sps:$4 sm:$0xff]  }
 0x166   : > { %4487 = vmatpush1.bf16.msra.mxu0 %v6340_v17  ;;  %4815 = vmatpush1.bf16.msra.mxu1 %v6343_v18  ;;  %v6437_v17 = vld [vmem:[%s8163_s8 + $0x44c] ss:$16 sps:$4 sm:$0xff]   ;;  %v6432_v18 = vld [vmem:[%s8163_s8 + $0x440] ss:$16 sps:$4 sm:$0xff]  }
 0x167   : > { %4488 = vmatprep.subr.bf16.mxu0 %v6348_v19  ;;  %4816 = vmatprep.subr.bf16.mxu1 %v6351_v20  ;;  %v6435_v19 = vld [vmem:[%s8163_s8 + $0x448] ss:$16 sps:$4 sm:$0xff]   ;;  %v6440_v20 = vld [vmem:[%s8163_s8 + $0x464] ss:$16 sps:$4 sm:$0xff]  }
 0x16a   : > { %4489 = vmatpush1.bf16.msra.mxu0 %v6346_v21  ;;  %4817 = vmatpush1.bf16.msra.mxu1 %v6349_v22  ;;  %v6443_v21 = vld [vmem:[%s8163_s8 + $0x46c] ss:$16 sps:$4 sm:$0xff]   ;;  %v6438_v22 = vld [vmem:[%s8163_s8 + $0x460] ss:$16 sps:$4 sm:$0xff]  }
 0x16b   : > { %4490 = vmatprep.subr.bf16.mxu0 %v6354_v23  ;;  %4818 = vmatprep.subr.bf16.mxu1 %v6357_v24  ;;  %v6441_v23 = vld [vmem:[%s8163_s8 + $0x468] ss:$16 sps:$4 sm:$0xff]   ;;  %v6446_v24 = vld [vmem:[%s8163_s8 + $0x484] ss:$16 sps:$4 sm:$0xff]  }
 0x16e   : > { %4491 = vmatpush1.bf16.msra.mxu0 %v6352_v25  ;;  %4819 = vmatpush1.bf16.msra.mxu1 %v6355_v26  ;;  %v6449_v25 = vld [vmem:[%s8163_s8 + $0x48c] ss:$16 sps:$4 sm:$0xff]   ;;  %v6444_v26 = vld [vmem:[%s8163_s8 + $0x480] ss:$16 sps:$4 sm:$0xff]  }
 0x16f   : > { %4492 = vmatprep.subr.bf16.mxu0 %v6360_v27  ;;  %4820 = vmatprep.subr.bf16.mxu1 %v6363_v28  ;;  %v6447_v27 = vld [vmem:[%s8163_s8 + $0x488] ss:$16 sps:$4 sm:$0xff]   ;;  %v6452_v28 = vld [vmem:[%s8163_s8 + $0x4a4] ss:$16 sps:$4 sm:$0xff]  }
 0x172   : > { %4493 = vmatpush1.bf16.msra.mxu0 %v6358_v31  ;;  %4821 = vmatpush1.bf16.msra.mxu1 %v6361_v32  ;;  %v6453_v31 = vld [vmem:[%s8163_s8 + $0x4a8] ss:$16 sps:$4 sm:$0xff]   ;;  %v6458_v32 = vld [vmem:[%s8163_s8 + $0x4c4] ss:$16 sps:$4 sm:$0xff]  }
 0x173   : > { %4494 = vmatprep.subr.bf16.mxu0 %v6366_v33  ;;  %4822 = vmatprep.subr.bf16.mxu1 %v6369_v34  ;;  %v6461_v33 = vld [vmem:[%s8163_s8 + $0x4cc] ss:$16 sps:$4 sm:$0xff]   ;;  %v6456_v34 = vld [vmem:[%s8163_s8 + $0x4c0] ss:$16 sps:$4 sm:$0xff]  }
 0x176   : > { %4495 = vmatpush1.bf16.msra.mxu0 %v6364_v35  ;;  %4823 = vmatpush1.bf16.msra.mxu1 %v6367_v36  ;;  %v6459_v35 = vld [vmem:[%s8163_s8 + $0x4c8] ss:$16 sps:$4 sm:$0xff]   ;;  %v6464_v36 = vld [vmem:[%s8163_s8 + $0x4e4] ss:$16 sps:$4 sm:$0xff]  }
 0x177   : > { %4496 = vmatprep.subr.bf16.mxu0 %v6372_v37  ;;  %4824 = vmatprep.subr.bf16.mxu1 %v6375_v38  ;;  %v6467_v37 = vld [vmem:[%s8163_s8 + $0x4ec] ss:$16 sps:$4 sm:$0xff]   ;;  %v6462_v38 = vld [vmem:[%s8163_s8 + $0x4e0] ss:$16 sps:$4 sm:$0xff]  }
 0x17a   : > { %4497 = vmatpush1.bf16.msra.mxu0 %v6370_v39  ;;  %4825 = vmatpush1.bf16.msra.mxu1 %v6373_v40  ;;  %v6465_v39 = vld [vmem:[%s8163_s8 + $0x4e8] ss:$16 sps:$4 sm:$0xff]   ;;  %v6470_v40 = vld [vmem:[%s8163_s8 + $0x504] ss:$16 sps:$4 sm:$0xff]  }
 0x17b   : > { %4498 = vmatprep.subr.bf16.mxu0 %v6378_v41  ;;  %4826 = vmatprep.subr.bf16.mxu1 %v6381_v42  ;;  %v6473_v41 = vld [vmem:[%s8163_s8 + $0x50c] ss:$16 sps:$4 sm:$0xff]   ;;  %v6468_v42 = vld [vmem:[%s8163_s8 + $0x500] ss:$16 sps:$4 sm:$0xff]  }
 0x17e   : > { %4499 = vmatpush1.bf16.msra.mxu0 %v6376_v43  ;;  %4827 = vmatpush1.bf16.msra.mxu1 %v6379_v44  ;;  %v6471_v43 = vld [vmem:[%s8163_s8 + $0x508] ss:$16 sps:$4 sm:$0xff]   ;;  %v6476_v44 = vld [vmem:[%s8163_s8 + $0x524] ss:$16 sps:$4 sm:$0xff]  }
 0x17f   : > { %4500 = vmatprep.subr.bf16.mxu0 %v6384_v45  ;;  %4828 = vmatprep.subr.bf16.mxu1 %v6387_v46  ;;  %v6479_v45 = vld [vmem:[%s8163_s8 + $0x52c] ss:$16 sps:$4 sm:$0xff]   ;;  %v6474_v46 = vld [vmem:[%s8163_s8 + $0x520] ss:$16 sps:$4 sm:$0xff]  }
 0x182   : > { %4501 = vmatpush1.bf16.msra.mxu0 %v6382_v47  ;;  %4829 = vmatpush1.bf16.msra.mxu1 %v6385_v48  ;;  %v6477_v47 = vld [vmem:[%s8163_s8 + $0x528] ss:$16 sps:$4 sm:$0xff]   ;;  %v6482_v48 = vld [vmem:[%s8163_s8 + $0x544] ss:$16 sps:$4 sm:$0xff]  }
 0x183   : > { %4502 = vmatprep.subr.bf16.mxu0 %v6390_v49  ;;  %4830 = vmatprep.subr.bf16.mxu1 %v6393_v50  ;;  %v6485_v49 = vld [vmem:[%s8163_s8 + $0x54c] ss:$16 sps:$4 sm:$0xff]   ;;  %v6480_v50 = vld [vmem:[%s8163_s8 + $0x540] ss:$16 sps:$4 sm:$0xff]  }
 0x186   : > { %4503 = vmatpush1.bf16.msra.mxu0 %v6388_v51  ;;  %4831 = vmatpush1.bf16.msra.mxu1 %v6391_v52  ;;  %v6483_v51 = vld [vmem:[%s8163_s8 + $0x548] ss:$16 sps:$4 sm:$0xff]   ;;  %v6488_v52 = vld [vmem:[%s8163_s8 + $0x564] ss:$16 sps:$4 sm:$0xff]  }
 0x187   : > { %4504 = vmatprep.subr.bf16.mxu0 %v6396_v53  ;;  %4832 = vmatprep.subr.bf16.mxu1 %v6399_v54  ;;  %v6491_v53 = vld [vmem:[%s8163_s8 + $0x56c] ss:$16 sps:$4 sm:$0xff]   ;;  %v6486_v54 = vld [vmem:[%s8163_s8 + $0x560] ss:$16 sps:$4 sm:$0xff]  }
 0x18a   : > { %4505 = vmatpush1.bf16.msra.mxu0 %v6394_v55  ;;  %4833 = vmatpush1.bf16.msra.mxu1 %v6397_v56  ;;  %v6489_v55 = vld [vmem:[%s8163_s8 + $0x568] ss:$16 sps:$4 sm:$0xff]   ;;  %v6494_v56 = vld [vmem:[%s8163_s8 + $0x584] ss:$16 sps:$4 sm:$0xff]  }
 0x18b   : > { %4506 = vmatprep.subr.bf16.mxu0 %v6402_v57  ;;  %4834 = vmatprep.subr.bf16.mxu1 %v6405_v58  ;;  %v6497_v57 = vld [vmem:[%s8163_s8 + $0x58c] ss:$16 sps:$4 sm:$0xff]   ;;  %v6492_v58 = vld [vmem:[%s8163_s8 + $0x580] ss:$16 sps:$4 sm:$0xff]  }
 0x18e   : > { %4507 = vmatpush1.bf16.msra.mxu0 %v6400_v59  ;;  %4835 = vmatpush1.bf16.msra.mxu1 %v6403_v60  ;;  %v6495_v59 = vld [vmem:[%s8163_s8 + $0x588] ss:$16 sps:$4 sm:$0xff]   ;;  %v6500_v60 = vld [vmem:[%s8163_s8 + $0x5a4] ss:$16 sps:$4 sm:$0xff]  }
 0x18f   : > { %4508 = vmatprep.subr.bf16.mxu0 %v6408_v61  ;;  %4836 = vmatprep.subr.bf16.mxu1 %v6411_v62  ;;  %v6503_v61 = vld [vmem:[%s8163_s8 + $0x5ac] ss:$16 sps:$4 sm:$0xff]   ;;  %v6498_v62 = vld [vmem:[%s8163_s8 + $0x5a0] ss:$16 sps:$4 sm:$0xff]  }
 0x192   : > { %4509 = vmatpush1.bf16.msra.mxu0 %v6406_v63  ;;  %4837 = vmatpush1.bf16.msra.mxu1 %v6409_v1  ;;  %v6501_v63 = vld [vmem:[%s8163_s8 + $0x5a8] ss:$16 sps:$4 sm:$0xff]   ;;  %v6506_v1 = vld [vmem:[%s8163_s8 + $0x5c4] ss:$16 sps:$4 sm:$0xff]  }
 0x193   : > { %4510 = vmatprep.subr.bf16.mxu0 %v6414_v2  ;;  %4838 = vmatprep.subr.bf16.mxu1 %v6417_v3  ;;  %v6509_v2 = vld [vmem:[%s8163_s8 + $0x5cc] ss:$16 sps:$4 sm:$0xff]   ;;  %v6504_v3 = vld [vmem:[%s8163_s8 + $0x5c0] ss:$16 sps:$4 sm:$0xff]  }
 0x196   : > { %4511 = vmatpush1.bf16.msra.mxu0 %v6412_v4  ;;  %4839 = vmatpush1.bf16.msra.mxu1 %v6415_v5  ;;  %v6507_v4 = vld [vmem:[%s8163_s8 + $0x5c8] ss:$16 sps:$4 sm:$0xff]   ;;  %v6512_v5 = vld [vmem:[%s8163_s8 + $0x5e4] ss:$16 sps:$4 sm:$0xff]  }
 0x197   : > { %4521 = vmatprep.subr.bf16.mxu0 %v6422_v6  ;;  %4849 = vmatprep.subr.bf16.mxu1 %v6425_v7  ;;  %v6515_v6 = vld [vmem:[%s8163_s8 + $0x5ec] ss:$16 sps:$4 sm:$0xff]   ;;  %v6510_v7 = vld [vmem:[%s8163_s8 + $0x5e0] ss:$16 sps:$4 sm:$0xff]  }
 0x199   : > { %4513 = vmatmul.mubr.bf16.vlgmr.msra.gmra.mrb[0].mxu0 %v5535_v8  ;;  %4841 = vmatmul.mubr.bf16.vlgmr.msra.gmra.mrb[0].mxu1 %v5535_v8  ;;  %v6513_v8 = vld [vmem:[%s8163_s8 + $0x5e8] ss:$16 sps:$4 sm:$0xff]  }
 0x19a   : > { %4522 = vmatpush1.bf16.msra.mxu0 %v6420_v9  ;;  %4850 = vmatpush1.bf16.msra.mxu1 %v6423_v10  ;;  %v6520_v9 = vld [vmem:[%s8163_s8 + $0x604] ss:$16 sps:$4 sm:$0xff]   ;;  %v6523_v10 = vld [vmem:[%s8163_s8 + $0x60c] ss:$16 sps:$4 sm:$0xff]  }
 0x19b   : > { %4523 = vmatprep.subr.bf16.mxu0 %v6428_v0  ;;  %4851 = vmatprep.subr.bf16.mxu1 %v6431_v12  ;;  %v5537_v0 = vcombine.low %v8311_v11, %v8311_v11  ;;  %v6518_v12 = vld [vmem:[%s8163_s8 + $0x600] ss:$16 sps:$4 sm:$0xff]  }
 0x19c   : > { %4553 = vmatprep.mubr.bf16.mxu0 %v5538_v13  ;;  %4881 = vmatprep.mubr.bf16.mxu1 %v5538_v13  ;;  %v8383_v13 = vld [vmem:[%s8799_s0 + $0x18] sm:$0xff] }
 0x19d   : > { %v5540_v11 = vcombine.high %v8383_v13, %v8383_v13 }
 0x19e   : > { %4524 = vmatpush1.bf16.msra.mxu0 %v6426_v14  ;;  %4852 = vmatpush1.bf16.msra.mxu1 %v6429_v15  ;;  %v6521_v14 = vld [vmem:[%s8163_s8 + $0x608] ss:$16 sps:$4 sm:$0xff]   ;;  %v6526_v15 = vld [vmem:[%s8163_s8 + $0x624] ss:$16 sps:$4 sm:$0xff]  }
 0x19f   : > { %4525 = vmatprep.subr.bf16.mxu0 %v6434_v16  ;;  %4853 = vmatprep.subr.bf16.mxu1 %v6437_v17  ;;  %v6529_v16 = vld [vmem:[%s8163_s8 + $0x62c] ss:$16 sps:$4 sm:$0xff]   ;;  %v6524_v17 = vld [vmem:[%s8163_s8 + $0x620] ss:$16 sps:$4 sm:$0xff]  }
 0x1a2   : > { %4526 = vmatpush1.bf16.msra.mxu0 %v6432_v18  ;;  %4854 = vmatpush1.bf16.msra.mxu1 %v6435_v19  ;;  %v6527_v18 = vld [vmem:[%s8163_s8 + $0x628] ss:$16 sps:$4 sm:$0xff]   ;;  %v6532_v19 = vld [vmem:[%s8163_s8 + $0x644] ss:$16 sps:$4 sm:$0xff]  }
 0x1a3   : > { %4527 = vmatprep.subr.bf16.mxu0 %v6440_v20  ;;  %4855 = vmatprep.subr.bf16.mxu1 %v6443_v21  ;;  %v6535_v20 = vld [vmem:[%s8163_s8 + $0x64c] ss:$16 sps:$4 sm:$0xff]   ;;  %v6530_v21 = vld [vmem:[%s8163_s8 + $0x640] ss:$16 sps:$4 sm:$0xff]  }
 0x1a6   : > { %4528 = vmatpush1.bf16.msra.mxu0 %v6438_v22  ;;  %4856 = vmatpush1.bf16.msra.mxu1 %v6441_v23  ;;  %v6533_v22 = vld [vmem:[%s8163_s8 + $0x648] ss:$16 sps:$4 sm:$0xff]   ;;  %v6538_v23 = vld [vmem:[%s8163_s8 + $0x664] ss:$16 sps:$4 sm:$0xff]  }
 0x1a7   : > { %4529 = vmatprep.subr.bf16.mxu0 %v6446_v24  ;;  %4857 = vmatprep.subr.bf16.mxu1 %v6449_v25  ;;  %v6541_v24 = vld [vmem:[%s8163_s8 + $0x66c] ss:$16 sps:$4 sm:$0xff]   ;;  %v6536_v25 = vld [vmem:[%s8163_s8 + $0x660] ss:$16 sps:$4 sm:$0xff]  }
 0x1aa   : > { %4530 = vmatpush1.bf16.msra.mxu0 %v6444_v26  ;;  %4858 = vmatpush1.bf16.msra.mxu1 %v6447_v27  ;;  %v6539_v26 = vld [vmem:[%s8163_s8 + $0x668] ss:$16 sps:$4 sm:$0xff]   ;;  %v6544_v27 = vld [vmem:[%s8163_s8 + $0x684] ss:$16 sps:$4 sm:$0xff]  }
 0x1ab   : > { %4531 = vmatprep.subr.bf16.mxu0 %v6452_v28  ;;  %4859 = vmatprep.subr.bf16.mxu1 %v6455_v29  ;;  %v6547_v28 = vld [vmem:[%s8163_s8 + $0x68c] ss:$16 sps:$4 sm:$0xff]   ;;  %v6542_v29 = vld [vmem:[%s8163_s8 + $0x680] ss:$16 sps:$4 sm:$0xff]  }
 0x1ae   : > { %4532 = vmatpush1.bf16.msra.mxu0 %v6450_v30  ;;  %4860 = vmatpush1.bf16.msra.mxu1 %v6453_v31  ;;  %v6545_v30 = vld [vmem:[%s8163_s8 + $0x688] ss:$16 sps:$4 sm:$0xff]   ;;  %v6550_v31 = vld [vmem:[%s8163_s8 + $0x6a4] ss:$16 sps:$4 sm:$0xff]  }
 0x1af   : > { %4533 = vmatprep.subr.bf16.mxu0 %v6458_v32  ;;  %4861 = vmatprep.subr.bf16.mxu1 %v6461_v33  ;;  %v6553_v32 = vld [vmem:[%s8163_s8 + $0x6ac] ss:$16 sps:$4 sm:$0xff]   ;;  %v6548_v33 = vld [vmem:[%s8163_s8 + $0x6a0] ss:$16 sps:$4 sm:$0xff]  }
 0x1b2   : > { %4534 = vmatpush1.bf16.msra.mxu0 %v6456_v34  ;;  %4862 = vmatpush1.bf16.msra.mxu1 %v6459_v35  ;;  %v6551_v34 = vld [vmem:[%s8163_s8 + $0x6a8] ss:$16 sps:$4 sm:$0xff]   ;;  %v6556_v35 = vld [vmem:[%s8163_s8 + $0x6c4] ss:$16 sps:$4 sm:$0xff]  }
 0x1b3   : > { %4535 = vmatprep.subr.bf16.mxu0 %v6464_v36  ;;  %4863 = vmatprep.subr.bf16.mxu1 %v6467_v37  ;;  %v6559_v36 = vld [vmem:[%s8163_s8 + $0x6cc] ss:$16 sps:$4 sm:$0xff]   ;;  %v6554_v37 = vld [vmem:[%s8163_s8 + $0x6c0] ss:$16 sps:$4 sm:$0xff]  }
 0x1b6   : > { %4536 = vmatpush1.bf16.msra.mxu0 %v6462_v38  ;;  %4864 = vmatpush1.bf16.msra.mxu1 %v6465_v39  ;;  %v6557_v38 = vld [vmem:[%s8163_s8 + $0x6c8] ss:$16 sps:$4 sm:$0xff]   ;;  %v6562_v39 = vld [vmem:[%s8163_s8 + $0x6e4] ss:$16 sps:$4 sm:$0xff]  }
 0x1b7   : > { %4537 = vmatprep.subr.bf16.mxu0 %v6470_v40  ;;  %4865 = vmatprep.subr.bf16.mxu1 %v6473_v41  ;;  %v6565_v40 = vld [vmem:[%s8163_s8 + $0x6ec] ss:$16 sps:$4 sm:$0xff]   ;;  %v6560_v41 = vld [vmem:[%s8163_s8 + $0x6e0] ss:$16 sps:$4 sm:$0xff]  }
 0x1ba   : > { %4538 = vmatpush1.bf16.msra.mxu0 %v6468_v42  ;;  %4866 = vmatpush1.bf16.msra.mxu1 %v6471_v43  ;;  %v6563_v42 = vld [vmem:[%s8163_s8 + $0x6e8] ss:$16 sps:$4 sm:$0xff]   ;;  %v6568_v43 = vld [vmem:[%s8163_s8 + $0x704] ss:$16 sps:$4 sm:$0xff]  }
 0x1bb   : > { %4539 = vmatprep.subr.bf16.mxu0 %v6476_v44  ;;  %4867 = vmatprep.subr.bf16.mxu1 %v6479_v45  ;;  %v6571_v44 = vld [vmem:[%s8163_s8 + $0x70c] ss:$16 sps:$4 sm:$0xff]   ;;  %v6566_v45 = vld [vmem:[%s8163_s8 + $0x700] ss:$16 sps:$4 sm:$0xff]  }
 0x1be   : > { %4540 = vmatpush1.bf16.msra.mxu0 %v6474_v46  ;;  %4868 = vmatpush1.bf16.msra.mxu1 %v6477_v47  ;;  %v6569_v46 = vld [vmem:[%s8163_s8 + $0x708] ss:$16 sps:$4 sm:$0xff]   ;;  %v6574_v47 = vld [vmem:[%s8163_s8 + $0x724] ss:$16 sps:$4 sm:$0xff]  }
 0x1bf   : > { %4541 = vmatprep.subr.bf16.mxu0 %v6482_v48  ;;  %4869 = vmatprep.subr.bf16.mxu1 %v6485_v49  ;;  %v6577_v48 = vld [vmem:[%s8163_s8 + $0x72c] ss:$16 sps:$4 sm:$0xff]   ;;  %v6572_v49 = vld [vmem:[%s8163_s8 + $0x720] ss:$16 sps:$4 sm:$0xff]  }
 0x1c2   : > { %4542 = vmatpush1.bf16.msra.mxu0 %v6480_v50  ;;  %4870 = vmatpush1.bf16.msra.mxu1 %v6483_v51  ;;  %v6575_v50 = vld [vmem:[%s8163_s8 + $0x728] ss:$16 sps:$4 sm:$0xff]   ;;  %v6580_v51 = vld [vmem:[%s8163_s8 + $0x744] ss:$16 sps:$4 sm:$0xff]  }
 0x1c3   : > { %4543 = vmatprep.subr.bf16.mxu0 %v6488_v52  ;;  %4871 = vmatprep.subr.bf16.mxu1 %v6491_v53  ;;  %v6583_v52 = vld [vmem:[%s8163_s8 + $0x74c] ss:$16 sps:$4 sm:$0xff]   ;;  %v6578_v53 = vld [vmem:[%s8163_s8 + $0x740] ss:$16 sps:$4 sm:$0xff]  }
 0x1c6   : > { %4544 = vmatpush1.bf16.msra.mxu0 %v6486_v54  ;;  %4872 = vmatpush1.bf16.msra.mxu1 %v6489_v55  ;;  %v6581_v54 = vld [vmem:[%s8163_s8 + $0x748] ss:$16 sps:$4 sm:$0xff]   ;;  %v6586_v55 = vld [vmem:[%s8163_s8 + $0x764] ss:$16 sps:$4 sm:$0xff]  }
 0x1c7   : > { %4545 = vmatprep.subr.bf16.mxu0 %v6494_v56  ;;  %4873 = vmatprep.subr.bf16.mxu1 %v6497_v57  ;;  %v6589_v56 = vld [vmem:[%s8163_s8 + $0x76c] ss:$16 sps:$4 sm:$0xff]   ;;  %v6584_v57 = vld [vmem:[%s8163_s8 + $0x760] ss:$16 sps:$4 sm:$0xff]  }
 0x1ca   : > { %4546 = vmatpush1.bf16.msra.mxu0 %v6492_v58  ;;  %4874 = vmatpush1.bf16.msra.mxu1 %v6495_v59  ;;  %v6587_v58 = vld [vmem:[%s8163_s8 + $0x768] ss:$16 sps:$4 sm:$0xff]   ;;  %v6592_v59 = vld [vmem:[%s8163_s8 + $0x784] ss:$16 sps:$4 sm:$0xff]  }
 0x1cb   : > { %4547 = vmatprep.subr.bf16.mxu0 %v6500_v60  ;;  %4875 = vmatprep.subr.bf16.mxu1 %v6503_v61  ;;  %v6595_v60 = vld [vmem:[%s8163_s8 + $0x78c] ss:$16 sps:$4 sm:$0xff]   ;;  %v6590_v61 = vld [vmem:[%s8163_s8 + $0x780] ss:$16 sps:$4 sm:$0xff]  }
 0x1ce   : > { %4548 = vmatpush1.bf16.msra.mxu0 %v6498_v62  ;;  %4876 = vmatpush1.bf16.msra.mxu1 %v6501_v63  ;;  %v6593_v62 = vld [vmem:[%s8163_s8 + $0x788] ss:$16 sps:$4 sm:$0xff]   ;;  %v6598_v63 = vld [vmem:[%s8163_s8 + $0x7a4] ss:$16 sps:$4 sm:$0xff]  }
 0x1cf   : > { %4549 = vmatprep.subr.bf16.mxu0 %v6506_v1  ;;  %4877 = vmatprep.subr.bf16.mxu1 %v6509_v2  ;;  %v6601_v1 = vld [vmem:[%s8163_s8 + $0x7ac] ss:$16 sps:$4 sm:$0xff]   ;;  %v6596_v2 = vld [vmem:[%s8163_s8 + $0x7a0] ss:$16 sps:$4 sm:$0xff]  }
 0x1d2   : > { %4550 = vmatpush1.bf16.msra.mxu0 %v6504_v3  ;;  %4878 = vmatpush1.bf16.msra.mxu1 %v6507_v4  ;;  %v6599_v3 = vld [vmem:[%s8163_s8 + $0x7a8] ss:$16 sps:$4 sm:$0xff]   ;;  %v6604_v4 = vld [vmem:[%s8163_s8 + $0x7c4] ss:$16 sps:$4 sm:$0xff]  }
 0x1d3   : > { %4551 = vmatprep.subr.bf16.mxu0 %v6512_v5  ;;  %4879 = vmatprep.subr.bf16.mxu1 %v6515_v6  ;;  %v6607_v5 = vld [vmem:[%s8163_s8 + $0x7cc] ss:$16 sps:$4 sm:$0xff]   ;;  %v6602_v6 = vld [vmem:[%s8163_s8 + $0x7c0] ss:$16 sps:$4 sm:$0xff]  }
 0x1d6   : > { %4552 = vmatpush1.bf16.msra.mxu0 %v6510_v7  ;;  %4880 = vmatpush1.bf16.msra.mxu1 %v6513_v8  ;;  %v6605_v7 = vld [vmem:[%s8163_s8 + $0x7c8] ss:$16 sps:$4 sm:$0xff]   ;;  %v6610_v8 = vld [vmem:[%s8163_s8 + $0x7e4] ss:$16 sps:$4 sm:$0xff]  }
 0x1d7   : > { %4562 = vmatprep.subr.bf16.mxu0 %v6520_v9  ;;  %4890 = vmatprep.subr.bf16.mxu1 %v6523_v10  ;;  %v6613_v9 = vld [vmem:[%s8163_s8 + $0x7ec] ss:$16 sps:$4 sm:$0xff]   ;;  %v6608_v10 = vld [vmem:[%s8163_s8 + $0x7e0] ss:$16 sps:$4 sm:$0xff]  }
 0x1d9   : > { %4554 = vmatmul.mubr.bf16.vlgmr.msra.gmra.mrb[0].mxu0 %v5537_v0  ;;  %4882 = vmatmul.mubr.bf16.vlgmr.msra.gmra.mrb[0].mxu1 %v5537_v0  ;;  %v6611_v0 = vld [vmem:[%s8163_s8 + $0x7e8] ss:$16 sps:$4 sm:$0xff]  }
 0x1da   : > { %4563 = vmatpush1.bf16.msra.mxu0 %v6518_v12  ;;  %4891 = vmatpush1.bf16.msra.mxu1 %v6521_v14  ;;  %v6618_v12 = vld [vmem:[%s8163_s8 + $0x804] ss:$16 sps:$4 sm:$0xff]   ;;  %v6621_v14 = vld [vmem:[%s8163_s8 + $0x80c] ss:$16 sps:$4 sm:$0xff]  }
 0x1db   : > { %4564 = vmatprep.subr.bf16.mxu0 %v6526_v15  ;;  %4892 = vmatprep.subr.bf16.mxu1 %v6529_v16  ;;  %v5539_v15 = vcombine.low %v8383_v13, %v8383_v13  ;;  %v6616_v16 = vld [vmem:[%s8163_s8 + $0x800] ss:$16 sps:$4 sm:$0xff]  }
 0x1dc   : > { %4594 = vmatprep.mubr.bf16.mxu0 %v5540_v11  ;;  %4922 = vmatprep.mubr.bf16.mxu1 %v5540_v11  ;;  %v8456_v11 = vld [vmem:[%s8799_s0 + $0x20] sm:$0xff] }
 0x1dd   : > { %v5542_v13 = vcombine.high %v8456_v11, %v8456_v11 }
 0x1de   : > { %4565 = vmatpush1.bf16.msra.mxu0 %v6524_v17  ;;  %4893 = vmatpush1.bf16.msra.mxu1 %v6527_v18  ;;  %v6619_v17 = vld [vmem:[%s8163_s8 + $0x808] ss:$16 sps:$4 sm:$0xff]   ;;  %v6624_v18 = vld [vmem:[%s8163_s8 + $0x824] ss:$16 sps:$4 sm:$0xff]  }
 0x1df   : > { %4566 = vmatprep.subr.bf16.mxu0 %v6532_v19  ;;  %4894 = vmatprep.subr.bf16.mxu1 %v6535_v20  ;;  %v6627_v19 = vld [vmem:[%s8163_s8 + $0x82c] ss:$16 sps:$4 sm:$0xff]   ;;  %v6622_v20 = vld [vmem:[%s8163_s8 + $0x820] ss:$16 sps:$4 sm:$0xff]  }
 0x1e2   : > { %4567 = vmatpush1.bf16.msra.mxu0 %v6530_v21  ;;  %4895 = vmatpush1.bf16.msra.mxu1 %v6533_v22  ;;  %v6625_v21 = vld [vmem:[%s8163_s8 + $0x828] ss:$16 sps:$4 sm:$0xff]   ;;  %v6630_v22 = vld [vmem:[%s8163_s8 + $0x844] ss:$16 sps:$4 sm:$0xff]  }
 0x1e3   : > { %4568 = vmatprep.subr.bf16.mxu0 %v6538_v23  ;;  %4896 = vmatprep.subr.bf16.mxu1 %v6541_v24  ;;  %v6633_v23 = vld [vmem:[%s8163_s8 + $0x84c] ss:$16 sps:$4 sm:$0xff]   ;;  %v6628_v24 = vld [vmem:[%s8163_s8 + $0x840] ss:$16 sps:$4 sm:$0xff]  }
 0x1e6   : > { %4569 = vmatpush1.bf16.msra.mxu0 %v6536_v25  ;;  %4897 = vmatpush1.bf16.msra.mxu1 %v6539_v26  ;;  %v6631_v25 = vld [vmem:[%s8163_s8 + $0x848] ss:$16 sps:$4 sm:$0xff]   ;;  %v6636_v26 = vld [vmem:[%s8163_s8 + $0x864] ss:$16 sps:$4 sm:$0xff]  }
 0x1e7   : > { %4570 = vmatprep.subr.bf16.mxu0 %v6544_v27  ;;  %4898 = vmatprep.subr.bf16.mxu1 %v6547_v28  ;;  %v6639_v27 = vld [vmem:[%s8163_s8 + $0x86c] ss:$16 sps:$4 sm:$0xff]   ;;  %v6634_v28 = vld [vmem:[%s8163_s8 + $0x860] ss:$16 sps:$4 sm:$0xff]  }
 0x1ea   : > { %4571 = vmatpush1.bf16.msra.mxu0 %v6542_v29  ;;  %4899 = vmatpush1.bf16.msra.mxu1 %v6545_v30  ;;  %v6637_v29 = vld [vmem:[%s8163_s8 + $0x868] ss:$16 sps:$4 sm:$0xff]   ;;  %v6642_v30 = vld [vmem:[%s8163_s8 + $0x884] ss:$16 sps:$4 sm:$0xff]  }
 0x1eb   : > { %4572 = vmatprep.subr.bf16.mxu0 %v6550_v31  ;;  %4900 = vmatprep.subr.bf16.mxu1 %v6553_v32  ;;  %v6645_v31 = vld [vmem:[%s8163_s8 + $0x88c] ss:$16 sps:$4 sm:$0xff]   ;;  %v6640_v32 = vld [vmem:[%s8163_s8 + $0x880] ss:$16 sps:$4 sm:$0xff]  }
 0x1ee   : > { %4573 = vmatpush1.bf16.msra.mxu0 %v6548_v33  ;;  %4901 = vmatpush1.bf16.msra.mxu1 %v6551_v34  ;;  %v6643_v33 = vld [vmem:[%s8163_s8 + $0x888] ss:$16 sps:$4 sm:$0xff]   ;;  %v6648_v34 = vld [vmem:[%s8163_s8 + $0x8a4] ss:$16 sps:$4 sm:$0xff]  }
 0x1ef   : > { %4574 = vmatprep.subr.bf16.mxu0 %v6556_v35  ;;  %4902 = vmatprep.subr.bf16.mxu1 %v6559_v36  ;;  %v6651_v35 = vld [vmem:[%s8163_s8 + $0x8ac] ss:$16 sps:$4 sm:$0xff]   ;;  %v6646_v36 = vld [vmem:[%s8163_s8 + $0x8a0] ss:$16 sps:$4 sm:$0xff]  }
 0x1f2   : > { %4575 = vmatpush1.bf16.msra.mxu0 %v6554_v37  ;;  %4903 = vmatpush1.bf16.msra.mxu1 %v6557_v38  ;;  %v6649_v37 = vld [vmem:[%s8163_s8 + $0x8a8] ss:$16 sps:$4 sm:$0xff]   ;;  %v6654_v38 = vld [vmem:[%s8163_s8 + $0x8c4] ss:$16 sps:$4 sm:$0xff]  }
 0x1f3   : > { %4576 = vmatprep.subr.bf16.mxu0 %v6562_v39  ;;  %4904 = vmatprep.subr.bf16.mxu1 %v6565_v40  ;;  %v6657_v39 = vld [vmem:[%s8163_s8 + $0x8cc] ss:$16 sps:$4 sm:$0xff]   ;;  %v6652_v40 = vld [vmem:[%s8163_s8 + $0x8c0] ss:$16 sps:$4 sm:$0xff]  }
 0x1f6   : > { %4577 = vmatpush1.bf16.msra.mxu0 %v6560_v41  ;;  %4905 = vmatpush1.bf16.msra.mxu1 %v6563_v42  ;;  %v6655_v41 = vld [vmem:[%s8163_s8 + $0x8c8] ss:$16 sps:$4 sm:$0xff]   ;;  %v6660_v42 = vld [vmem:[%s8163_s8 + $0x8e4] ss:$16 sps:$4 sm:$0xff]  }
 0x1f7   : > { %4578 = vmatprep.subr.bf16.mxu0 %v6568_v43  ;;  %4906 = vmatprep.subr.bf16.mxu1 %v6571_v44  ;;  %v6663_v43 = vld [vmem:[%s8163_s8 + $0x8ec] ss:$16 sps:$4 sm:$0xff]   ;;  %v6658_v44 = vld [vmem:[%s8163_s8 + $0x8e0] ss:$16 sps:$4 sm:$0xff]  }
 0x1fa   : > { %4579 = vmatpush1.bf16.msra.mxu0 %v6566_v45  ;;  %4907 = vmatpush1.bf16.msra.mxu1 %v6569_v46  ;;  %v6661_v45 = vld [vmem:[%s8163_s8 + $0x8e8] ss:$16 sps:$4 sm:$0xff]   ;;  %v6666_v46 = vld [vmem:[%s8163_s8 + $0x904] ss:$16 sps:$4 sm:$0xff]  }
 0x1fb   : > { %4580 = vmatprep.subr.bf16.mxu0 %v6574_v47  ;;  %4908 = vmatprep.subr.bf16.mxu1 %v6577_v48  ;;  %v6669_v47 = vld [vmem:[%s8163_s8 + $0x90c] ss:$16 sps:$4 sm:$0xff]   ;;  %v6664_v48 = vld [vmem:[%s8163_s8 + $0x900] ss:$16 sps:$4 sm:$0xff]  }
 0x1fe   : > { %4581 = vmatpush1.bf16.msra.mxu0 %v6572_v49  ;;  %4909 = vmatpush1.bf16.msra.mxu1 %v6575_v50  ;;  %v6667_v49 = vld [vmem:[%s8163_s8 + $0x908] ss:$16 sps:$4 sm:$0xff]   ;;  %v6672_v50 = vld [vmem:[%s8163_s8 + $0x924] ss:$16 sps:$4 sm:$0xff]  }
 0x1ff   : > { %4582 = vmatprep.subr.bf16.mxu0 %v6580_v51  ;;  %4910 = vmatprep.subr.bf16.mxu1 %v6583_v52  ;;  %v6675_v51 = vld [vmem:[%s8163_s8 + $0x92c] ss:$16 sps:$4 sm:$0xff]   ;;  %v6670_v52 = vld [vmem:[%s8163_s8 + $0x920] ss:$16 sps:$4 sm:$0xff]  }
 0x202   : > { %4583 = vmatpush1.bf16.msra.mxu0 %v6578_v53  ;;  %4911 = vmatpush1.bf16.msra.mxu1 %v6581_v54  ;;  %v6673_v53 = vld [vmem:[%s8163_s8 + $0x928] ss:$16 sps:$4 sm:$0xff]   ;;  %v6678_v54 = vld [vmem:[%s8163_s8 + $0x944] ss:$16 sps:$4 sm:$0xff]  }
 0x203   : > { %4584 = vmatprep.subr.bf16.mxu0 %v6586_v55  ;;  %4912 = vmatprep.subr.bf16.mxu1 %v6589_v56  ;;  %v6681_v55 = vld [vmem:[%s8163_s8 + $0x94c] ss:$16 sps:$4 sm:$0xff]   ;;  %v6676_v56 = vld [vmem:[%s8163_s8 + $0x940] ss:$16 sps:$4 sm:$0xff]  }
 0x206   : > { %4585 = vmatpush1.bf16.msra.mxu0 %v6584_v57  ;;  %4913 = vmatpush1.bf16.msra.mxu1 %v6587_v58  ;;  %v6679_v57 = vld [vmem:[%s8163_s8 + $0x948] ss:$16 sps:$4 sm:$0xff]   ;;  %v6684_v58 = vld [vmem:[%s8163_s8 + $0x964] ss:$16 sps:$4 sm:$0xff]  }
 0x207   : > { %4586 = vmatprep.subr.bf16.mxu0 %v6592_v59  ;;  %4914 = vmatprep.subr.bf16.mxu1 %v6595_v60  ;;  %v6687_v59 = vld [vmem:[%s8163_s8 + $0x96c] ss:$16 sps:$4 sm:$0xff]   ;;  %v6682_v60 = vld [vmem:[%s8163_s8 + $0x960] ss:$16 sps:$4 sm:$0xff]  }
 0x20a   : > { %4587 = vmatpush1.bf16.msra.mxu0 %v6590_v61  ;;  %4915 = vmatpush1.bf16.msra.mxu1 %v6593_v62  ;;  %v6685_v61 = vld [vmem:[%s8163_s8 + $0x968] ss:$16 sps:$4 sm:$0xff]   ;;  %v6690_v62 = vld [vmem:[%s8163_s8 + $0x984] ss:$16 sps:$4 sm:$0xff]  }
 0x20b   : > { %4588 = vmatprep.subr.bf16.mxu0 %v6598_v63  ;;  %4916 = vmatprep.subr.bf16.mxu1 %v6601_v1  ;;  %v6693_v63 = vld [vmem:[%s8163_s8 + $0x98c] ss:$16 sps:$4 sm:$0xff]   ;;  %v6688_v1 = vld [vmem:[%s8163_s8 + $0x980] ss:$16 sps:$4 sm:$0xff]  }
 0x20e   : > { %4589 = vmatpush1.bf16.msra.mxu0 %v6596_v2  ;;  %4917 = vmatpush1.bf16.msra.mxu1 %v6599_v3  ;;  %v6691_v2 = vld [vmem:[%s8163_s8 + $0x988] ss:$16 sps:$4 sm:$0xff]   ;;  %v6696_v3 = vld [vmem:[%s8163_s8 + $0x9a4] ss:$16 sps:$4 sm:$0xff]  }
 0x20f   : > { %4590 = vmatprep.subr.bf16.mxu0 %v6604_v4  ;;  %4918 = vmatprep.subr.bf16.mxu1 %v6607_v5  ;;  %v6699_v4 = vld [vmem:[%s8163_s8 + $0x9ac] ss:$16 sps:$4 sm:$0xff]   ;;  %v6694_v5 = vld [vmem:[%s8163_s8 + $0x9a0] ss:$16 sps:$4 sm:$0xff]  }
 0x212   : > { %4591 = vmatpush1.bf16.msra.mxu0 %v6602_v6  ;;  %4919 = vmatpush1.bf16.msra.mxu1 %v6605_v7  ;;  %v6697_v6 = vld [vmem:[%s8163_s8 + $0x9a8] ss:$16 sps:$4 sm:$0xff]   ;;  %v6702_v7 = vld [vmem:[%s8163_s8 + $0x9c4] ss:$16 sps:$4 sm:$0xff]  }
 0x213   : > { %4592 = vmatprep.subr.bf16.mxu0 %v6610_v8  ;;  %4920 = vmatprep.subr.bf16.mxu1 %v6613_v9  ;;  %v6705_v8 = vld [vmem:[%s8163_s8 + $0x9cc] ss:$16 sps:$4 sm:$0xff]   ;;  %v6700_v9 = vld [vmem:[%s8163_s8 + $0x9c0] ss:$16 sps:$4 sm:$0xff]  }
 0x216   : > { %4593 = vmatpush1.bf16.msra.mxu0 %v6608_v10  ;;  %4921 = vmatpush1.bf16.msra.mxu1 %v6611_v0  ;;  %v6703_v10 = vld [vmem:[%s8163_s8 + $0x9c8] ss:$16 sps:$4 sm:$0xff]   ;;  %v6708_v0 = vld [vmem:[%s8163_s8 + $0x9e4] ss:$16 sps:$4 sm:$0xff]  }
 0x217   : > { %4603 = vmatprep.subr.bf16.mxu0 %v6618_v12  ;;  %4931 = vmatprep.subr.bf16.mxu1 %v6621_v14  ;;  %v6711_v12 = vld [vmem:[%s8163_s8 + $0x9ec] ss:$16 sps:$4 sm:$0xff]   ;;  %v6706_v14 = vld [vmem:[%s8163_s8 + $0x9e0] ss:$16 sps:$4 sm:$0xff]  }
 0x219   : > { %4595 = vmatmul.mubr.bf16.vlgmr.msra.gmra.mrb[0].mxu0 %v5539_v15  ;;  %4923 = vmatmul.mubr.bf16.vlgmr.msra.gmra.mrb[0].mxu1 %v5539_v15  ;;  %v6709_v15 = vld [vmem:[%s8163_s8 + $0x9e8] ss:$16 sps:$4 sm:$0xff]  }
 0x21a   : > { %4604 = vmatpush1.bf16.msra.mxu0 %v6616_v16  ;;  %4932 = vmatpush1.bf16.msra.mxu1 %v6619_v17  ;;  %v6716_v16 = vld [vmem:[%s8163_s8 + $0xa04] ss:$16 sps:$4 sm:$0xff]   ;;  %v6719_v17 = vld [vmem:[%s8163_s8 + $0xa0c] ss:$16 sps:$4 sm:$0xff]  }
 0x21b   : > { %4605 = vmatprep.subr.bf16.mxu0 %v6624_v18  ;;  %4933 = vmatprep.subr.bf16.mxu1 %v6627_v19  ;;  %v8526_v18 = vld [vmem:[%s8799_s0 + $0x28] sm:$0xff]  ;;  %v5541_v19 = vcombine.low %v8456_v11, %v8456_v11  ;;  %v6720_v11 = vld [vmem:[%s8163_s8 + $0xa20] ss:$16 sps:$4 sm:$0xff]  }
 0x21c   : > { %4635 = vmatprep.mubr.bf16.mxu0 %v5542_v13  ;;  %4963 = vmatprep.mubr.bf16.mxu1 %v5542_v13  ;;  %v6714_v13 = vld [vmem:[%s8163_s8 + $0xa00] ss:$16 sps:$4 sm:$0xff]  }
 0x21e   : > { %4606 = vmatpush1.bf16.msra.mxu0 %v6622_v20  ;;  %4934 = vmatpush1.bf16.msra.mxu1 %v6625_v21  ;;  %v6717_v20 = vld [vmem:[%s8163_s8 + $0xa08] ss:$16 sps:$4 sm:$0xff]   ;;  %v6722_v21 = vld [vmem:[%s8163_s8 + $0xa24] ss:$16 sps:$4 sm:$0xff]  }
 0x21f   : > { %4607 = vmatprep.subr.bf16.mxu0 %v6630_v22  ;;  %4935 = vmatprep.subr.bf16.mxu1 %v6633_v23  ;;  %v6725_v22 = vld [vmem:[%s8163_s8 + $0xa2c] ss:$16 sps:$4 sm:$0xff]   ;;  %v5544_v23 = vcombine.high %v8526_v18, %v8526_v18 }
 0x222   : > { %4608 = vmatpush1.bf16.msra.mxu0 %v6628_v24  ;;  %4936 = vmatpush1.bf16.msra.mxu1 %v6631_v25  ;;  %v6723_v24 = vld [vmem:[%s8163_s8 + $0xa28] ss:$16 sps:$4 sm:$0xff]   ;;  %v6728_v25 = vld [vmem:[%s8163_s8 + $0xa44] ss:$16 sps:$4 sm:$0xff]  }
 0x223   : > { %4609 = vmatprep.subr.bf16.mxu0 %v6636_v26  ;;  %4937 = vmatprep.subr.bf16.mxu1 %v6639_v27  ;;  %v6731_v26 = vld [vmem:[%s8163_s8 + $0xa4c] ss:$16 sps:$4 sm:$0xff]   ;;  %v6726_v27 = vld [vmem:[%s8163_s8 + $0xa40] ss:$16 sps:$4 sm:$0xff]  }
 0x226   : > { %4610 = vmatpush1.bf16.msra.mxu0 %v6634_v28  ;;  %4938 = vmatpush1.bf16.msra.mxu1 %v6637_v29  ;;  %v6729_v28 = vld [vmem:[%s8163_s8 + $0xa48] ss:$16 sps:$4 sm:$0xff]   ;;  %v6734_v29 = vld [vmem:[%s8163_s8 + $0xa64] ss:$16 sps:$4 sm:$0xff]  }
 0x227   : > { %4611 = vmatprep.subr.bf16.mxu0 %v6642_v30  ;;  %4939 = vmatprep.subr.bf16.mxu1 %v6645_v31  ;;  %v6737_v30 = vld [vmem:[%s8163_s8 + $0xa6c] ss:$16 sps:$4 sm:$0xff]   ;;  %v6732_v31 = vld [vmem:[%s8163_s8 + $0xa60] ss:$16 sps:$4 sm:$0xff]  }
 0x22a   : > { %4612 = vmatpush1.bf16.msra.mxu0 %v6640_v32  ;;  %4940 = vmatpush1.bf16.msra.mxu1 %v6643_v33  ;;  %v6735_v32 = vld [vmem:[%s8163_s8 + $0xa68] ss:$16 sps:$4 sm:$0xff]   ;;  %v6740_v33 = vld [vmem:[%s8163_s8 + $0xa84] ss:$16 sps:$4 sm:$0xff]  }
 0x22b   : > { %4613 = vmatprep.subr.bf16.mxu0 %v6648_v34  ;;  %4941 = vmatprep.subr.bf16.mxu1 %v6651_v35  ;;  %v6743_v34 = vld [vmem:[%s8163_s8 + $0xa8c] ss:$16 sps:$4 sm:$0xff]   ;;  %v6738_v35 = vld [vmem:[%s8163_s8 + $0xa80] ss:$16 sps:$4 sm:$0xff]  }
 0x22e   : > { %4614 = vmatpush1.bf16.msra.mxu0 %v6646_v36  ;;  %4942 = vmatpush1.bf16.msra.mxu1 %v6649_v37  ;;  %v6741_v36 = vld [vmem:[%s8163_s8 + $0xa88] ss:$16 sps:$4 sm:$0xff]   ;;  %v6746_v37 = vld [vmem:[%s8163_s8 + $0xaa4] ss:$16 sps:$4 sm:$0xff]  }
 0x22f   : > { %4615 = vmatprep.subr.bf16.mxu0 %v6654_v38  ;;  %4943 = vmatprep.subr.bf16.mxu1 %v6657_v39  ;;  %v6749_v38 = vld [vmem:[%s8163_s8 + $0xaac] ss:$16 sps:$4 sm:$0xff]   ;;  %v6744_v39 = vld [vmem:[%s8163_s8 + $0xaa0] ss:$16 sps:$4 sm:$0xff]  }
 0x232   : > { %4616 = vmatpush1.bf16.msra.mxu0 %v6652_v40  ;;  %4944 = vmatpush1.bf16.msra.mxu1 %v6655_v41  ;;  %v6747_v40 = vld [vmem:[%s8163_s8 + $0xaa8] ss:$16 sps:$4 sm:$0xff]   ;;  %v6752_v41 = vld [vmem:[%s8163_s8 + $0xac4] ss:$16 sps:$4 sm:$0xff]  }
 0x233   : > { %4617 = vmatprep.subr.bf16.mxu0 %v6660_v42  ;;  %4945 = vmatprep.subr.bf16.mxu1 %v6663_v43  ;;  %v6755_v42 = vld [vmem:[%s8163_s8 + $0xacc] ss:$16 sps:$4 sm:$0xff]   ;;  %v6750_v43 = vld [vmem:[%s8163_s8 + $0xac0] ss:$16 sps:$4 sm:$0xff]  }
 0x236   : > { %4618 = vmatpush1.bf16.msra.mxu0 %v6658_v44  ;;  %4946 = vmatpush1.bf16.msra.mxu1 %v6661_v45  ;;  %v6753_v44 = vld [vmem:[%s8163_s8 + $0xac8] ss:$16 sps:$4 sm:$0xff]   ;;  %v6758_v45 = vld [vmem:[%s8163_s8 + $0xae4] ss:$16 sps:$4 sm:$0xff]  }
 0x237   : > { %4619 = vmatprep.subr.bf16.mxu0 %v6666_v46  ;;  %4947 = vmatprep.subr.bf16.mxu1 %v6669_v47  ;;  %v6761_v46 = vld [vmem:[%s8163_s8 + $0xaec] ss:$16 sps:$4 sm:$0xff]   ;;  %v6756_v47 = vld [vmem:[%s8163_s8 + $0xae0] ss:$16 sps:$4 sm:$0xff]  }
 0x23a   : > { %4620 = vmatpush1.bf16.msra.mxu0 %v6664_v48  ;;  %4948 = vmatpush1.bf16.msra.mxu1 %v6667_v49  ;;  %v6759_v48 = vld [vmem:[%s8163_s8 + $0xae8] ss:$16 sps:$4 sm:$0xff]   ;;  %v6764_v49 = vld [vmem:[%s8163_s8 + $0xb04] ss:$16 sps:$4 sm:$0xff]  }
 0x23b   : > { %4621 = vmatprep.subr.bf16.mxu0 %v6672_v50  ;;  %4949 = vmatprep.subr.bf16.mxu1 %v6675_v51  ;;  %v6767_v50 = vld [vmem:[%s8163_s8 + $0xb0c] ss:$16 sps:$4 sm:$0xff]   ;;  %v6762_v51 = vld [vmem:[%s8163_s8 + $0xb00] ss:$16 sps:$4 sm:$0xff]  }
 0x23e   : > { %4622 = vmatpush1.bf16.msra.mxu0 %v6670_v52  ;;  %4950 = vmatpush1.bf16.msra.mxu1 %v6673_v53  ;;  %v6765_v52 = vld [vmem:[%s8163_s8 + $0xb08] ss:$16 sps:$4 sm:$0xff]   ;;  %v6770_v53 = vld [vmem:[%s8163_s8 + $0xb24] ss:$16 sps:$4 sm:$0xff]  }
 0x23f   : > { %4623 = vmatprep.subr.bf16.mxu0 %v6678_v54  ;;  %4951 = vmatprep.subr.bf16.mxu1 %v6681_v55  ;;  %v6773_v54 = vld [vmem:[%s8163_s8 + $0xb2c] ss:$16 sps:$4 sm:$0xff]   ;;  %v6768_v55 = vld [vmem:[%s8163_s8 + $0xb20] ss:$16 sps:$4 sm:$0xff]  }
 0x242   : > { %4624 = vmatpush1.bf16.msra.mxu0 %v6676_v56  ;;  %4952 = vmatpush1.bf16.msra.mxu1 %v6679_v57  ;;  %v6771_v56 = vld [vmem:[%s8163_s8 + $0xb28] ss:$16 sps:$4 sm:$0xff]   ;;  %v6776_v57 = vld [vmem:[%s8163_s8 + $0xb44] ss:$16 sps:$4 sm:$0xff]  }
 0x243   : > { %4625 = vmatprep.subr.bf16.mxu0 %v6684_v58  ;;  %4953 = vmatprep.subr.bf16.mxu1 %v6687_v59  ;;  %v6779_v58 = vld [vmem:[%s8163_s8 + $0xb4c] ss:$16 sps:$4 sm:$0xff]   ;;  %v6774_v59 = vld [vmem:[%s8163_s8 + $0xb40] ss:$16 sps:$4 sm:$0xff]  }
 0x246   : > { %4626 = vmatpush1.bf16.msra.mxu0 %v6682_v60  ;;  %4954 = vmatpush1.bf16.msra.mxu1 %v6685_v61  ;;  %v6777_v60 = vld [vmem:[%s8163_s8 + $0xb48] ss:$16 sps:$4 sm:$0xff]   ;;  %v6782_v61 = vld [vmem:[%s8163_s8 + $0xb64] ss:$16 sps:$4 sm:$0xff]  }
 0x247   : > { %4627 = vmatprep.subr.bf16.mxu0 %v6690_v62  ;;  %4955 = vmatprep.subr.bf16.mxu1 %v6693_v63  ;;  %v6785_v62 = vld [vmem:[%s8163_s8 + $0xb6c] ss:$16 sps:$4 sm:$0xff]   ;;  %v6780_v63 = vld [vmem:[%s8163_s8 + $0xb60] ss:$16 sps:$4 sm:$0xff]  }
 0x24a   : > { %4628 = vmatpush1.bf16.msra.mxu0 %v6688_v1  ;;  %4956 = vmatpush1.bf16.msra.mxu1 %v6691_v2  ;;  %v6783_v1 = vld [vmem:[%s8163_s8 + $0xb68] ss:$16 sps:$4 sm:$0xff]   ;;  %v6788_v2 = vld [vmem:[%s8163_s8 + $0xb84] ss:$16 sps:$4 sm:$0xff]  }
 0x24b   : > { %4629 = vmatprep.subr.bf16.mxu0 %v6696_v3  ;;  %4957 = vmatprep.subr.bf16.mxu1 %v6699_v4  ;;  %v6791_v3 = vld [vmem:[%s8163_s8 + $0xb8c] ss:$16 sps:$4 sm:$0xff]   ;;  %v6786_v4 = vld [vmem:[%s8163_s8 + $0xb80] ss:$16 sps:$4 sm:$0xff]  }
 0x24e   : > { %4630 = vmatpush1.bf16.msra.mxu0 %v6694_v5  ;;  %4958 = vmatpush1.bf16.msra.mxu1 %v6697_v6  ;;  %v6789_v5 = vld [vmem:[%s8163_s8 + $0xb88] ss:$16 sps:$4 sm:$0xff]   ;;  %v6794_v6 = vld [vmem:[%s8163_s8 + $0xba4] ss:$16 sps:$4 sm:$0xff]  }
 0x24f   : > { %4631 = vmatprep.subr.bf16.mxu0 %v6702_v7  ;;  %4959 = vmatprep.subr.bf16.mxu1 %v6705_v8  ;;  %v6797_v7 = vld [vmem:[%s8163_s8 + $0xbac] ss:$16 sps:$4 sm:$0xff]   ;;  %v6792_v8 = vld [vmem:[%s8163_s8 + $0xba0] ss:$16 sps:$4 sm:$0xff]  }
 0x252   : > { %4632 = vmatpush1.bf16.msra.mxu0 %v6700_v9  ;;  %4960 = vmatpush1.bf16.msra.mxu1 %v6703_v10  ;;  %v6795_v9 = vld [vmem:[%s8163_s8 + $0xba8] ss:$16 sps:$4 sm:$0xff]   ;;  %v6800_v10 = vld [vmem:[%s8163_s8 + $0xbc4] ss:$16 sps:$4 sm:$0xff]  }
 0x253   : > { %4633 = vmatprep.subr.bf16.mxu0 %v6708_v0  ;;  %4961 = vmatprep.subr.bf16.mxu1 %v6711_v12  ;;  %v6803_v0 = vld [vmem:[%s8163_s8 + $0xbcc] ss:$16 sps:$4 sm:$0xff]   ;;  %v6798_v12 = vld [vmem:[%s8163_s8 + $0xbc0] ss:$16 sps:$4 sm:$0xff]  }
 0x256   : > { %4634 = vmatpush1.bf16.msra.mxu0 %v6706_v14  ;;  %4962 = vmatpush1.bf16.msra.mxu1 %v6709_v15  ;;  %v6801_v14 = vld [vmem:[%s8163_s8 + $0xbc8] ss:$16 sps:$4 sm:$0xff]   ;;  %v6806_v15 = vld [vmem:[%s8163_s8 + $0xbe4] ss:$16 sps:$4 sm:$0xff]  }
 0x257   : > { %4644 = vmatprep.subr.bf16.mxu0 %v6716_v16  ;;  %4972 = vmatprep.subr.bf16.mxu1 %v6719_v17  ;;  %v6809_v16 = vld [vmem:[%s8163_s8 + $0xbec] ss:$16 sps:$4 sm:$0xff]   ;;  %v6804_v17 = vld [vmem:[%s8163_s8 + $0xbe0] ss:$16 sps:$4 sm:$0xff]  }
 0x259   : > { %4636 = vmatmul.mubr.bf16.vlgmr.msra.gmra.mrb[0].mxu0 %v5541_v19  ;;  %4964 = vmatmul.mubr.bf16.vlgmr.msra.gmra.mrb[0].mxu1 %v5541_v19  ;;  %v6807_v19 = vld [vmem:[%s8163_s8 + $0xbe8] ss:$16 sps:$4 sm:$0xff]  }
 0x25a   : > { %4645 = vmatpush1.bf16.msra.mxu0 %v6714_v13  ;;  %4973 = vmatpush1.bf16.msra.mxu1 %v6717_v20  ;;  %v6814_v13 = vld [vmem:[%s8163_s8 + $0xc04] ss:$16 sps:$4 sm:$0xff]   ;;  %v6817_v20 = vld [vmem:[%s8163_s8 + $0xc0c] ss:$16 sps:$4 sm:$0xff]  }
 0x25b   : > { %4646 = vmatprep.subr.bf16.mxu0 %v6722_v21  ;;  %4974 = vmatprep.subr.bf16.mxu1 %v6725_v22  ;;  %v5543_v21 = vcombine.low %v8526_v18, %v8526_v18  ;;  %v8601_v22 = vld [vmem:[%s8799_s0 + $0x30] sm:$0xff] }
 0x25c   : > { %4676 = vmatprep.mubr.bf16.mxu0 %v5544_v23  ;;  %5004 = vmatprep.mubr.bf16.mxu1 %v5544_v23  ;;  %v6812_v23 = vld [vmem:[%s8163_s8 + $0xc00] ss:$16 sps:$4 sm:$0xff]   ;;  %v5546_v18 = vcombine.high %v8601_v22, %v8601_v22 }
 0x25e   : > { %4647 = vmatpush1.bf16.msra.mxu0 %v6720_v11  ;;  %4975 = vmatpush1.bf16.msra.mxu1 %v6723_v24  ;;  %v6815_v11 = vld [vmem:[%s8163_s8 + $0xc08] ss:$16 sps:$4 sm:$0xff]   ;;  %v6820_v24 = vld [vmem:[%s8163_s8 + $0xc24] ss:$16 sps:$4 sm:$0xff]  }
 0x25f   : > { %4648 = vmatprep.subr.bf16.mxu0 %v6728_v25  ;;  %4976 = vmatprep.subr.bf16.mxu1 %v6731_v26  ;;  %v6823_v25 = vld [vmem:[%s8163_s8 + $0xc2c] ss:$16 sps:$4 sm:$0xff]   ;;  %v6818_v26 = vld [vmem:[%s8163_s8 + $0xc20] ss:$16 sps:$4 sm:$0xff]  }
 0x262   : > { %4649 = vmatpush1.bf16.msra.mxu0 %v6726_v27  ;;  %4977 = vmatpush1.bf16.msra.mxu1 %v6729_v28  ;;  %v6821_v27 = vld [vmem:[%s8163_s8 + $0xc28] ss:$16 sps:$4 sm:$0xff]   ;;  %v6826_v28 = vld [vmem:[%s8163_s8 + $0xc44] ss:$16 sps:$4 sm:$0xff]  }
 0x263   : > { %4650 = vmatprep.subr.bf16.mxu0 %v6734_v29  ;;  %4978 = vmatprep.subr.bf16.mxu1 %v6737_v30  ;;  %v6829_v29 = vld [vmem:[%s8163_s8 + $0xc4c] ss:$16 sps:$4 sm:$0xff]   ;;  %v6824_v30 = vld [vmem:[%s8163_s8 + $0xc40] ss:$16 sps:$4 sm:$0xff]  }
 0x266   : > { %4651 = vmatpush1.bf16.msra.mxu0 %v6732_v31  ;;  %4979 = vmatpush1.bf16.msra.mxu1 %v6735_v32  ;;  %v6827_v31 = vld [vmem:[%s8163_s8 + $0xc48] ss:$16 sps:$4 sm:$0xff]   ;;  %v6832_v32 = vld [vmem:[%s8163_s8 + $0xc64] ss:$16 sps:$4 sm:$0xff]  }
 0x267   : > { %4652 = vmatprep.subr.bf16.mxu0 %v6740_v33  ;;  %4980 = vmatprep.subr.bf16.mxu1 %v6743_v34  ;;  %v6835_v33 = vld [vmem:[%s8163_s8 + $0xc6c] ss:$16 sps:$4 sm:$0xff]   ;;  %v6830_v34 = vld [vmem:[%s8163_s8 + $0xc60] ss:$16 sps:$4 sm:$0xff]  }
 0x26a   : > { %4653 = vmatpush1.bf16.msra.mxu0 %v6738_v35  ;;  %4981 = vmatpush1.bf16.msra.mxu1 %v6741_v36  ;;  %v6833_v35 = vld [vmem:[%s8163_s8 + $0xc68] ss:$16 sps:$4 sm:$0xff]   ;;  %v6838_v36 = vld [vmem:[%s8163_s8 + $0xc84] ss:$16 sps:$4 sm:$0xff]  }
 0x26b   : > { %4654 = vmatprep.subr.bf16.mxu0 %v6746_v37  ;;  %4982 = vmatprep.subr.bf16.mxu1 %v6749_v38  ;;  %v6841_v37 = vld [vmem:[%s8163_s8 + $0xc8c] ss:$16 sps:$4 sm:$0xff]   ;;  %v6836_v38 = vld [vmem:[%s8163_s8 + $0xc80] ss:$16 sps:$4 sm:$0xff]  }
 0x26e   : > { %4655 = vmatpush1.bf16.msra.mxu0 %v6744_v39  ;;  %4983 = vmatpush1.bf16.msra.mxu1 %v6747_v40  ;;  %v6839_v39 = vld [vmem:[%s8163_s8 + $0xc88] ss:$16 sps:$4 sm:$0xff]   ;;  %v6844_v40 = vld [vmem:[%s8163_s8 + $0xca4] ss:$16 sps:$4 sm:$0xff]  }
 0x26f   : > { %4656 = vmatprep.subr.bf16.mxu0 %v6752_v41  ;;  %4984 = vmatprep.subr.bf16.mxu1 %v6755_v42  ;;  %v6847_v41 = vld [vmem:[%s8163_s8 + $0xcac] ss:$16 sps:$4 sm:$0xff]   ;;  %v6842_v42 = vld [vmem:[%s8163_s8 + $0xca0] ss:$16 sps:$4 sm:$0xff]  }
 0x272   : > { %4657 = vmatpush1.bf16.msra.mxu0 %v6750_v43  ;;  %4985 = vmatpush1.bf16.msra.mxu1 %v6753_v44  ;;  %v6845_v43 = vld [vmem:[%s8163_s8 + $0xca8] ss:$16 sps:$4 sm:$0xff]   ;;  %v6850_v44 = vld [vmem:[%s8163_s8 + $0xcc4] ss:$16 sps:$4 sm:$0xff]  }
 0x273   : > { %4658 = vmatprep.subr.bf16.mxu0 %v6758_v45  ;;  %4986 = vmatprep.subr.bf16.mxu1 %v6761_v46  ;;  %v6853_v45 = vld [vmem:[%s8163_s8 + $0xccc] ss:$16 sps:$4 sm:$0xff]   ;;  %v6848_v46 = vld [vmem:[%s8163_s8 + $0xcc0] ss:$16 sps:$4 sm:$0xff]  }
 0x276   : > { %4659 = vmatpush1.bf16.msra.mxu0 %v6756_v47  ;;  %4987 = vmatpush1.bf16.msra.mxu1 %v6759_v48  ;;  %v6851_v47 = vld [vmem:[%s8163_s8 + $0xcc8] ss:$16 sps:$4 sm:$0xff]   ;;  %v6856_v48 = vld [vmem:[%s8163_s8 + $0xce4] ss:$16 sps:$4 sm:$0xff]  }
 0x277   : > { %4660 = vmatprep.subr.bf16.mxu0 %v6764_v49  ;;  %4988 = vmatprep.subr.bf16.mxu1 %v6767_v50  ;;  %v6859_v49 = vld [vmem:[%s8163_s8 + $0xcec] ss:$16 sps:$4 sm:$0xff]   ;;  %v6854_v50 = vld [vmem:[%s8163_s8 + $0xce0] ss:$16 sps:$4 sm:$0xff]  }
 0x27a   : > { %4661 = vmatpush1.bf16.msra.mxu0 %v6762_v51  ;;  %4989 = vmatpush1.bf16.msra.mxu1 %v6765_v52  ;;  %v6857_v51 = vld [vmem:[%s8163_s8 + $0xce8] ss:$16 sps:$4 sm:$0xff]   ;;  %v6862_v52 = vld [vmem:[%s8163_s8 + $0xd04] ss:$16 sps:$4 sm:$0xff]  }
 0x27b   : > { %4662 = vmatprep.subr.bf16.mxu0 %v6770_v53  ;;  %4990 = vmatprep.subr.bf16.mxu1 %v6773_v54  ;;  %v6865_v53 = vld [vmem:[%s8163_s8 + $0xd0c] ss:$16 sps:$4 sm:$0xff]   ;;  %v6860_v54 = vld [vmem:[%s8163_s8 + $0xd00] ss:$16 sps:$4 sm:$0xff]  }
 0x27e   : > { %4663 = vmatpush1.bf16.msra.mxu0 %v6768_v55  ;;  %4991 = vmatpush1.bf16.msra.mxu1 %v6771_v56  ;;  %v6863_v55 = vld [vmem:[%s8163_s8 + $0xd08] ss:$16 sps:$4 sm:$0xff]   ;;  %v6868_v56 = vld [vmem:[%s8163_s8 + $0xd24] ss:$16 sps:$4 sm:$0xff]  }
 0x27f   : > { %4664 = vmatprep.subr.bf16.mxu0 %v6776_v57  ;;  %4992 = vmatprep.subr.bf16.mxu1 %v6779_v58  ;;  %v6871_v57 = vld [vmem:[%s8163_s8 + $0xd2c] ss:$16 sps:$4 sm:$0xff]   ;;  %v6866_v58 = vld [vmem:[%s8163_s8 + $0xd20] ss:$16 sps:$4 sm:$0xff]  }
 0x282   : > { %4665 = vmatpush1.bf16.msra.mxu0 %v6774_v59  ;;  %4993 = vmatpush1.bf16.msra.mxu1 %v6777_v60  ;;  %v6869_v59 = vld [vmem:[%s8163_s8 + $0xd28] ss:$16 sps:$4 sm:$0xff]   ;;  %v6874_v60 = vld [vmem:[%s8163_s8 + $0xd44] ss:$16 sps:$4 sm:$0xff]  }
 0x283   : > { %4666 = vmatprep.subr.bf16.mxu0 %v6782_v61  ;;  %4994 = vmatprep.subr.bf16.mxu1 %v6785_v62  ;;  %v6877_v61 = vld [vmem:[%s8163_s8 + $0xd4c] ss:$16 sps:$4 sm:$0xff]   ;;  %v6872_v62 = vld [vmem:[%s8163_s8 + $0xd40] ss:$16 sps:$4 sm:$0xff]  }
 0x286   : > { %4667 = vmatpush1.bf16.msra.mxu0 %v6780_v63  ;;  %4995 = vmatpush1.bf16.msra.mxu1 %v6783_v1  ;;  %v6875_v63 = vld [vmem:[%s8163_s8 + $0xd48] ss:$16 sps:$4 sm:$0xff]   ;;  %v6880_v1 = vld [vmem:[%s8163_s8 + $0xd64] ss:$16 sps:$4 sm:$0xff]  }
 0x287   : > { %4668 = vmatprep.subr.bf16.mxu0 %v6788_v2  ;;  %4996 = vmatprep.subr.bf16.mxu1 %v6791_v3  ;;  %v6883_v2 = vld [vmem:[%s8163_s8 + $0xd6c] ss:$16 sps:$4 sm:$0xff]   ;;  %v6878_v3 = vld [vmem:[%s8163_s8 + $0xd60] ss:$16 sps:$4 sm:$0xff]  }
 0x28a   : > { %4669 = vmatpush1.bf16.msra.mxu0 %v6786_v4  ;;  %4997 = vmatpush1.bf16.msra.mxu1 %v6789_v5  ;;  %v6881_v4 = vld [vmem:[%s8163_s8 + $0xd68] ss:$16 sps:$4 sm:$0xff]   ;;  %v6886_v5 = vld [vmem:[%s8163_s8 + $0xd84] ss:$16 sps:$4 sm:$0xff]  }
 0x28b   : > { %4670 = vmatprep.subr.bf16.mxu0 %v6794_v6  ;;  %4998 = vmatprep.subr.bf16.mxu1 %v6797_v7  ;;  %v6889_v6 = vld [vmem:[%s8163_s8 + $0xd8c] ss:$16 sps:$4 sm:$0xff]   ;;  %v6884_v7 = vld [vmem:[%s8163_s8 + $0xd80] ss:$16 sps:$4 sm:$0xff]  }
 0x28e   : > { %4671 = vmatpush1.bf16.msra.mxu0 %v6792_v8  ;;  %4999 = vmatpush1.bf16.msra.mxu1 %v6795_v9  ;;  %v6887_v8 = vld [vmem:[%s8163_s8 + $0xd88] ss:$16 sps:$4 sm:$0xff]   ;;  %v6892_v9 = vld [vmem:[%s8163_s8 + $0xda4] ss:$16 sps:$4 sm:$0xff]  }
 0x28f   : > { %4672 = vmatprep.subr.bf16.mxu0 %v6800_v10  ;;  %5000 = vmatprep.subr.bf16.mxu1 %v6803_v0  ;;  %v6895_v10 = vld [vmem:[%s8163_s8 + $0xdac] ss:$16 sps:$4 sm:$0xff]   ;;  %v6890_v0 = vld [vmem:[%s8163_s8 + $0xda0] ss:$16 sps:$4 sm:$0xff]  }
 0x292   : > { %4673 = vmatpush1.bf16.msra.mxu0 %v6798_v12  ;;  %5001 = vmatpush1.bf16.msra.mxu1 %v6801_v14  ;;  %v6893_v12 = vld [vmem:[%s8163_s8 + $0xda8] ss:$16 sps:$4 sm:$0xff]   ;;  %v6898_v14 = vld [vmem:[%s8163_s8 + $0xdc4] ss:$16 sps:$4 sm:$0xff]  }
 0x293   : > { %4674 = vmatprep.subr.bf16.mxu0 %v6806_v15  ;;  %5002 = vmatprep.subr.bf16.mxu1 %v6809_v16  ;;  %v6901_v15 = vld [vmem:[%s8163_s8 + $0xdcc] ss:$16 sps:$4 sm:$0xff]   ;;  %v6896_v16 = vld [vmem:[%s8163_s8 + $0xdc0] ss:$16 sps:$4 sm:$0xff]  }
 0x296   : > { %4675 = vmatpush1.bf16.msra.mxu0 %v6804_v17  ;;  %5003 = vmatpush1.bf16.msra.mxu1 %v6807_v19  ;;  %v6899_v17 = vld [vmem:[%s8163_s8 + $0xdc8] ss:$16 sps:$4 sm:$0xff]   ;;  %v6904_v19 = vld [vmem:[%s8163_s8 + $0xde4] ss:$16 sps:$4 sm:$0xff]  }
 0x297   : > { %4685 = vmatprep.subr.bf16.mxu0 %v6814_v13  ;;  %5013 = vmatprep.subr.bf16.mxu1 %v6817_v20  ;;  %v6907_v13 = vld [vmem:[%s8163_s8 + $0xdec] ss:$16 sps:$4 sm:$0xff]   ;;  %v6902_v20 = vld [vmem:[%s8163_s8 + $0xde0] ss:$16 sps:$4 sm:$0xff]  }
 0x299   : > { %4677 = vmatmul.mubr.bf16.vlgmr.msra.gmra.mrb[0].mxu0 %v5543_v21  ;;  %5005 = vmatmul.mubr.bf16.vlgmr.msra.gmra.mrb[0].mxu1 %v5543_v21  ;;  %v6905_v21 = vld [vmem:[%s8163_s8 + $0xde8] ss:$16 sps:$4 sm:$0xff]  }
 0x29a   : > { %4686 = vmatpush1.bf16.msra.mxu0 %v6812_v23  ;;  %5014 = vmatpush1.bf16.msra.mxu1 %v6815_v11  ;;  %v6912_v23 = vld [vmem:[%s8163_s8 + $0xe04] ss:$16 sps:$4 sm:$0xff]   ;;  %v6915_v11 = vld [vmem:[%s8163_s8 + $0xe0c] ss:$16 sps:$4 sm:$0xff]  }
 0x29b   : > { %4687 = vmatprep.subr.bf16.mxu0 %v6820_v24  ;;  %5015 = vmatprep.subr.bf16.mxu1 %v6823_v25  ;;  %v5545_v24 = vcombine.low %v8601_v22, %v8601_v22  ;;  %v8680_v25 = vld [vmem:[%s8799_s0 + $0x38] sm:$0xff] }
 0x29c   : > { %4717 = vmatprep.mubr.bf16.mxu0 %v5546_v18  ;;  %5045 = vmatprep.mubr.bf16.mxu1 %v5546_v18  ;;  %v6910_v18 = vld [vmem:[%s8163_s8 + $0xe00] ss:$16 sps:$4 sm:$0xff]   ;;  %v5548_v22 = vcombine.high %v8680_v25, %v8680_v25 }
 0x29e   : > { %4688 = vmatpush1.bf16.msra.mxu0 %v6818_v26  ;;  %5016 = vmatpush1.bf16.msra.mxu1 %v6821_v27  ;;  %v6913_v26 = vld [vmem:[%s8163_s8 + $0xe08] ss:$16 sps:$4 sm:$0xff]   ;;  %v6918_v27 = vld [vmem:[%s8163_s8 + $0xe24] ss:$16 sps:$4 sm:$0xff]  }
 0x29f   : > { %4689 = vmatprep.subr.bf16.mxu0 %v6826_v28  ;;  %5017 = vmatprep.subr.bf16.mxu1 %v6829_v29  ;;  %v6921_v28 = vld [vmem:[%s8163_s8 + $0xe2c] ss:$16 sps:$4 sm:$0xff]   ;;  %v6916_v29 = vld [vmem:[%s8163_s8 + $0xe20] ss:$16 sps:$4 sm:$0xff]  }
 0x2a2   : > { %4690 = vmatpush1.bf16.msra.mxu0 %v6824_v30  ;;  %5018 = vmatpush1.bf16.msra.mxu1 %v6827_v31  ;;  %v6919_v30 = vld [vmem:[%s8163_s8 + $0xe28] ss:$16 sps:$4 sm:$0xff]   ;;  %v6924_v31 = vld [vmem:[%s8163_s8 + $0xe44] ss:$16 sps:$4 sm:$0xff]  }
 0x2a3   : > { %4691 = vmatprep.subr.bf16.mxu0 %v6832_v32  ;;  %5019 = vmatprep.subr.bf16.mxu1 %v6835_v33  ;;  %v6927_v32 = vld [vmem:[%s8163_s8 + $0xe4c] ss:$16 sps:$4 sm:$0xff]   ;;  %v6922_v33 = vld [vmem:[%s8163_s8 + $0xe40] ss:$16 sps:$4 sm:$0xff]  }
 0x2a6   : > { %4692 = vmatpush1.bf16.msra.mxu0 %v6830_v34  ;;  %5020 = vmatpush1.bf16.msra.mxu1 %v6833_v35  ;;  %v6925_v34 = vld [vmem:[%s8163_s8 + $0xe48] ss:$16 sps:$4 sm:$0xff]   ;;  %v6930_v35 = vld [vmem:[%s8163_s8 + $0xe64] ss:$16 sps:$4 sm:$0xff]  }
 0x2a7   : > { %4693 = vmatprep.subr.bf16.mxu0 %v6838_v36  ;;  %5021 = vmatprep.subr.bf16.mxu1 %v6841_v37  ;;  %v6933_v36 = vld [vmem:[%s8163_s8 + $0xe6c] ss:$16 sps:$4 sm:$0xff]   ;;  %v6928_v37 = vld [vmem:[%s8163_s8 + $0xe60] ss:$16 sps:$4 sm:$0xff]  }
 0x2aa   : > { %4694 = vmatpush1.bf16.msra.mxu0 %v6836_v38  ;;  %5022 = vmatpush1.bf16.msra.mxu1 %v6839_v39  ;;  %v6931_v38 = vld [vmem:[%s8163_s8 + $0xe68] ss:$16 sps:$4 sm:$0xff]   ;;  %v6936_v39 = vld [vmem:[%s8163_s8 + $0xe84] ss:$16 sps:$4 sm:$0xff]  }
 0x2ab   : > { %4695 = vmatprep.subr.bf16.mxu0 %v6844_v40  ;;  %5023 = vmatprep.subr.bf16.mxu1 %v6847_v41  ;;  %v6939_v40 = vld [vmem:[%s8163_s8 + $0xe8c] ss:$16 sps:$4 sm:$0xff]   ;;  %v6934_v41 = vld [vmem:[%s8163_s8 + $0xe80] ss:$16 sps:$4 sm:$0xff]  }
 0x2ae   : > { %4696 = vmatpush1.bf16.msra.mxu0 %v6842_v42  ;;  %5024 = vmatpush1.bf16.msra.mxu1 %v6845_v43  ;;  %v6937_v42 = vld [vmem:[%s8163_s8 + $0xe88] ss:$16 sps:$4 sm:$0xff]   ;;  %v6942_v43 = vld [vmem:[%s8163_s8 + $0xea4] ss:$16 sps:$4 sm:$0xff]  }
 0x2af   : > { %4697 = vmatprep.subr.bf16.mxu0 %v6850_v44  ;;  %5025 = vmatprep.subr.bf16.mxu1 %v6853_v45  ;;  %v6945_v44 = vld [vmem:[%s8163_s8 + $0xeac] ss:$16 sps:$4 sm:$0xff]   ;;  %v6940_v45 = vld [vmem:[%s8163_s8 + $0xea0] ss:$16 sps:$4 sm:$0xff]  }
 0x2b2   : > { %4698 = vmatpush1.bf16.msra.mxu0 %v6848_v46  ;;  %5026 = vmatpush1.bf16.msra.mxu1 %v6851_v47  ;;  %v6943_v46 = vld [vmem:[%s8163_s8 + $0xea8] ss:$16 sps:$4 sm:$0xff]   ;;  %v6948_v47 = vld [vmem:[%s8163_s8 + $0xec4] ss:$16 sps:$4 sm:$0xff]  }
 0x2b3   : > { %4699 = vmatprep.subr.bf16.mxu0 %v6856_v48  ;;  %5027 = vmatprep.subr.bf16.mxu1 %v6859_v49  ;;  %v6951_v48 = vld [vmem:[%s8163_s8 + $0xecc] ss:$16 sps:$4 sm:$0xff]   ;;  %v6946_v49 = vld [vmem:[%s8163_s8 + $0xec0] ss:$16 sps:$4 sm:$0xff]  }
 0x2b6   : > { %4700 = vmatpush1.bf16.msra.mxu0 %v6854_v50  ;;  %5028 = vmatpush1.bf16.msra.mxu1 %v6857_v51  ;;  %v6949_v50 = vld [vmem:[%s8163_s8 + $0xec8] ss:$16 sps:$4 sm:$0xff]   ;;  %v6954_v51 = vld [vmem:[%s8163_s8 + $0xee4] ss:$16 sps:$4 sm:$0xff]  }
 0x2b7   : > { %4701 = vmatprep.subr.bf16.mxu0 %v6862_v52  ;;  %5029 = vmatprep.subr.bf16.mxu1 %v6865_v53  ;;  %v6957_v52 = vld [vmem:[%s8163_s8 + $0xeec] ss:$16 sps:$4 sm:$0xff]   ;;  %v6952_v53 = vld [vmem:[%s8163_s8 + $0xee0] ss:$16 sps:$4 sm:$0xff]  }
 0x2ba   : > { %4702 = vmatpush1.bf16.msra.mxu0 %v6860_v54  ;;  %5030 = vmatpush1.bf16.msra.mxu1 %v6863_v55  ;;  %v6955_v54 = vld [vmem:[%s8163_s8 + $0xee8] ss:$16 sps:$4 sm:$0xff]   ;;  %v6960_v55 = vld [vmem:[%s8163_s8 + $0xf04] ss:$16 sps:$4 sm:$0xff]  }
 0x2bb   : > { %4703 = vmatprep.subr.bf16.mxu0 %v6868_v56  ;;  %5031 = vmatprep.subr.bf16.mxu1 %v6871_v57  ;;  %v6963_v56 = vld [vmem:[%s8163_s8 + $0xf0c] ss:$16 sps:$4 sm:$0xff]   ;;  %v6958_v57 = vld [vmem:[%s8163_s8 + $0xf00] ss:$16 sps:$4 sm:$0xff]  }
 0x2be   : > { %4704 = vmatpush1.bf16.msra.mxu0 %v6866_v58  ;;  %5032 = vmatpush1.bf16.msra.mxu1 %v6869_v59  ;;  %v6961_v58 = vld [vmem:[%s8163_s8 + $0xf08] ss:$16 sps:$4 sm:$0xff]   ;;  %v6966_v59 = vld [vmem:[%s8163_s8 + $0xf24] ss:$16 sps:$4 sm:$0xff]  }
 0x2bf   : > { %4705 = vmatprep.subr.bf16.mxu0 %v6874_v60  ;;  %5033 = vmatprep.subr.bf16.mxu1 %v6877_v61  ;;  %v6969_v60 = vld [vmem:[%s8163_s8 + $0xf2c] ss:$16 sps:$4 sm:$0xff]   ;;  %v6964_v61 = vld [vmem:[%s8163_s8 + $0xf20] ss:$16 sps:$4 sm:$0xff]  }
 0x2c2   : > { %4706 = vmatpush1.bf16.msra.mxu0 %v6872_v62  ;;  %5034 = vmatpush1.bf16.msra.mxu1 %v6875_v63  ;;  %v6967_v62 = vld [vmem:[%s8163_s8 + $0xf28] ss:$16 sps:$4 sm:$0xff]   ;;  %v6972_v63 = vld [vmem:[%s8163_s8 + $0xf44] ss:$16 sps:$4 sm:$0xff]  }
 0x2c3   : > { %4707 = vmatprep.subr.bf16.mxu0 %v6880_v1  ;;  %5035 = vmatprep.subr.bf16.mxu1 %v6883_v2  ;;  %v6975_v1 = vld [vmem:[%s8163_s8 + $0xf4c] ss:$16 sps:$4 sm:$0xff]   ;;  %v6970_v2 = vld [vmem:[%s8163_s8 + $0xf40] ss:$16 sps:$4 sm:$0xff]  }
 0x2c6   : > { %4708 = vmatpush1.bf16.msra.mxu0 %v6878_v3  ;;  %5036 = vmatpush1.bf16.msra.mxu1 %v6881_v4  ;;  %v6973_v3 = vld [vmem:[%s8163_s8 + $0xf48] ss:$16 sps:$4 sm:$0xff]   ;;  %v6978_v4 = vld [vmem:[%s8163_s8 + $0xf64] ss:$16 sps:$4 sm:$0xff]  }
 0x2c7   : > { %4709 = vmatprep.subr.bf16.mxu0 %v6886_v5  ;;  %5037 = vmatprep.subr.bf16.mxu1 %v6889_v6  ;;  %v6981_v5 = vld [vmem:[%s8163_s8 + $0xf6c] ss:$16 sps:$4 sm:$0xff]   ;;  %v6976_v6 = vld [vmem:[%s8163_s8 + $0xf60] ss:$16 sps:$4 sm:$0xff]  }
 0x2ca   : > { %4710 = vmatpush1.bf16.msra.mxu0 %v6884_v7  ;;  %5038 = vmatpush1.bf16.msra.mxu1 %v6887_v8  ;;  %v6979_v7 = vld [vmem:[%s8163_s8 + $0xf68] ss:$16 sps:$4 sm:$0xff]   ;;  %v6984_v8 = vld [vmem:[%s8163_s8 + $0xf84] ss:$16 sps:$4 sm:$0xff]  }
 0x2cb   : > { %4711 = vmatprep.subr.bf16.mxu0 %v6892_v9  ;;  %5039 = vmatprep.subr.bf16.mxu1 %v6895_v10  ;;  %v6987_v9 = vld [vmem:[%s8163_s8 + $0xf8c] ss:$16 sps:$4 sm:$0xff]   ;;  %v6982_v10 = vld [vmem:[%s8163_s8 + $0xf80] ss:$16 sps:$4 sm:$0xff]  }
 0x2ce   : > { %4712 = vmatpush1.bf16.msra.mxu0 %v6890_v0  ;;  %5040 = vmatpush1.bf16.msra.mxu1 %v6893_v12  ;;  %v6985_v0 = vld [vmem:[%s8163_s8 + $0xf88] ss:$16 sps:$4 sm:$0xff]   ;;  %v6990_v12 = vld [vmem:[%s8163_s8 + $0xfa4] ss:$16 sps:$4 sm:$0xff]  }
 0x2cf   : > { %4713 = vmatprep.subr.bf16.mxu0 %v6898_v14  ;;  %5041 = vmatprep.subr.bf16.mxu1 %v6901_v15  ;;  %v6993_v14 = vld [vmem:[%s8163_s8 + $0xfac] ss:$16 sps:$4 sm:$0xff]   ;;  %v6988_v15 = vld [vmem:[%s8163_s8 + $0xfa0] ss:$16 sps:$4 sm:$0xff]  }
 0x2d2   : > { %4714 = vmatpush1.bf16.msra.mxu0 %v6896_v16  ;;  %5042 = vmatpush1.bf16.msra.mxu1 %v6899_v17  ;;  %v6991_v16 = vld [vmem:[%s8163_s8 + $0xfa8] ss:$16 sps:$4 sm:$0xff]   ;;  %v6996_v17 = vld [vmem:[%s8163_s8 + $0xfc4] ss:$16 sps:$4 sm:$0xff]  }
 0x2d3   : > { %4715 = vmatprep.subr.bf16.mxu0 %v6904_v19  ;;  %5043 = vmatprep.subr.bf16.mxu1 %v6907_v13  ;;  %v6999_v19 = vld [vmem:[%s8163_s8 + $0xfcc] ss:$16 sps:$4 sm:$0xff]   ;;  %v6994_v13 = vld [vmem:[%s8163_s8 + $0xfc0] ss:$16 sps:$4 sm:$0xff]  }
 0x2d6   : > { %4716 = vmatpush1.bf16.msra.mxu0 %v6902_v20  ;;  %5044 = vmatpush1.bf16.msra.mxu1 %v6905_v21  ;;  %v6997_v20 = vld [vmem:[%s8163_s8 + $0xfc8] ss:$16 sps:$4 sm:$0xff]   ;;  %v7002_v21 = vld [vmem:[%s8163_s8 + $0xfe4] ss:$16 sps:$4 sm:$0xff]  }
 0x2d7   : > { %4726 = vmatprep.subr.bf16.mxu0 %v6912_v23  ;;  %5054 = vmatprep.subr.bf16.mxu1 %v6915_v11  ;;  %v7005_v23 = vld [vmem:[%s8163_s8 + $0xfec] ss:$16 sps:$4 sm:$0xff]   ;;  %v7000_v11 = vld [vmem:[%s8163_s8 + $0xfe0] ss:$16 sps:$4 sm:$0xff]  }
 0x2d9   : > { %4718 = vmatmul.mubr.bf16.vlgmr.msra.gmra.mrb[0].mxu0 %v5545_v24  ;;  %5046 = vmatmul.mubr.bf16.vlgmr.msra.gmra.mrb[0].mxu1 %v5545_v24  ;;  %v7003_v24 = vld [vmem:[%s8163_s8 + $0xfe8] ss:$16 sps:$4 sm:$0xff]  }
 0x2da   : > { %4727 = vmatpush1.bf16.msra.mxu0 %v6910_v18  ;;  %5055 = vmatpush1.bf16.msra.mxu1 %v6913_v26  ;;  %v7008_v18 = vld [vmem:[%s8621_s29 + $0x40] sm:$0xff]  }
 0x2db   : > { %4728 = vmatprep.subr.bf16.mxu0 %v6918_v27  ;;  %5056 = vmatprep.subr.bf16.mxu1 %v6921_v28  ;;  %v7009_v26 = vld [vmem:[%s8621_s29 + $0xc0] sm:$0xff]   ;;  %v5547_v27 = vcombine.low %v8680_v25, %v8680_v25  ;;  %v7015_v25 = vld [vmem:[%s8621_s29 + $0x88] sm:$0xff]  }
 0x2dc   : > { %4758 = vmatprep.mubr.bf16.mxu0 %v5548_v22  ;;  %5086 = vmatprep.mubr.bf16.mxu1 %v5548_v22  ;;  %v7010_v28 = vld [vmem:[%s8621_s29] sm:$0xff]  }
 0x2dd   : > { %v7011_v22 = vld [vmem:[%s8621_s29 + $0x80] sm:$0xff]  }
 0x2de   : > { %4729 = vmatpush1.bf16.msra.mxu0 %v6916_v29  ;;  %5057 = vmatpush1.bf16.msra.mxu1 %v6919_v30  ;;  %v7012_v29 = vld [vmem:[%s8621_s29 + $0x48] sm:$0xff]  }
 0x2df   : > { %4730 = vmatprep.subr.bf16.mxu0 %v6924_v31  ;;  %5058 = vmatprep.subr.bf16.mxu1 %v6927_v32  ;;  %v7013_v30 = vld [vmem:[%s8621_s29 + $0xc8] sm:$0xff]   ;;  %v7016_v32 = vld [vmem:[%s8621_s29 + $0x50] sm:$0xff]  }
 0x2e0   : > { %v7014_v31 = vld [vmem:[%s8621_s29 + $0x8] sm:$0xff]  }
 0x2e2   : > { %4731 = vmatpush1.bf16.msra.mxu0 %v6922_v33  ;;  %5059 = vmatpush1.bf16.msra.mxu1 %v6925_v34  ;;  %v7017_v33 = vld [vmem:[%s8621_s29 + $0xd0] sm:$0xff]  }
 0x2e3   : > { %4732 = vmatprep.subr.bf16.mxu0 %v6930_v35  ;;  %5060 = vmatprep.subr.bf16.mxu1 %v6933_v36  ;;  %v7018_v34 = vld [vmem:[%s8621_s29 + $0x10] sm:$0xff]   ;;  %v7020_v36 = vld [vmem:[%s8621_s29 + $0x58] sm:$0xff]  }
 0x2e4   : > { %v7019_v35 = vld [vmem:[%s8621_s29 + $0x90] sm:$0xff]  }
 0x2e6   : > { %4733 = vmatpush1.bf16.msra.mxu0 %v6928_v37  ;;  %5061 = vmatpush1.bf16.msra.mxu1 %v6931_v38  ;;  %v7021_v37 = vld [vmem:[%s8621_s29 + $0xd8] sm:$0xff]  }
 0x2e7   : > { %4734 = vmatprep.subr.bf16.mxu0 %v6936_v39  ;;  %5062 = vmatprep.subr.bf16.mxu1 %v6939_v40  ;;  %v7022_v38 = vld [vmem:[%s8621_s29 + $0x18] sm:$0xff]   ;;  %v7024_v40 = vld [vmem:[%s8621_s29 + $0x60] sm:$0xff]  }
 0x2e8   : > { %v7023_v39 = vld [vmem:[%s8621_s29 + $0x98] sm:$0xff]  }
 0x2ea   : > { %4735 = vmatpush1.bf16.msra.mxu0 %v6934_v41  ;;  %5063 = vmatpush1.bf16.msra.mxu1 %v6937_v42  ;;  %v7025_v41 = vld [vmem:[%s8621_s29 + $0xe0] sm:$0xff]  }
 0x2eb   : > { %4736 = vmatprep.subr.bf16.mxu0 %v6942_v43  ;;  %5064 = vmatprep.subr.bf16.mxu1 %v6945_v44  ;;  %v7026_v42 = vld [vmem:[%s8621_s29 + $0x20] sm:$0xff]   ;;  %v7028_v44 = vld [vmem:[%s8621_s29 + $0x68] sm:$0xff]  }
 0x2ec   : > { %v7027_v43 = vld [vmem:[%s8621_s29 + $0xa0] sm:$0xff]  }
 0x2ee   : > { %4737 = vmatpush1.bf16.msra.mxu0 %v6940_v45  ;;  %5065 = vmatpush1.bf16.msra.mxu1 %v6943_v46  ;;  %v7029_v45 = vld [vmem:[%s8621_s29 + $0xe8] sm:$0xff]  }
 0x2ef   : > { %4738 = vmatprep.subr.bf16.mxu0 %v6948_v47  ;;  %5066 = vmatprep.subr.bf16.mxu1 %v6951_v48  ;;  %v7030_v46 = vld [vmem:[%s8621_s29 + $0x28] sm:$0xff]   ;;  %v7032_v48 = vld [vmem:[%s8621_s29 + $0x70] sm:$0xff]  }
 0x2f0   : > { %v7031_v47 = vld [vmem:[%s8621_s29 + $0xa8] sm:$0xff]  }
 0x2f2   : > { %4739 = vmatpush1.bf16.msra.mxu0 %v6946_v49  ;;  %5067 = vmatpush1.bf16.msra.mxu1 %v6949_v50  ;;  %v7033_v49 = vld [vmem:[%s8621_s29 + $0xf0] sm:$0xff]  }
 0x2f3   : > { %4740 = vmatprep.subr.bf16.mxu0 %v6954_v51  ;;  %5068 = vmatprep.subr.bf16.mxu1 %v6957_v52  ;;  %v7034_v50 = vld [vmem:[%s8621_s29 + $0x30] sm:$0xff]   ;;  %v7036_v52 = vld [vmem:[%s8621_s29 + $0x78] sm:$0xff]  }
 0x2f4   : > { %v7035_v51 = vld [vmem:[%s8621_s29 + $0xb0] sm:$0xff]  }
 0x2f6   : > { %4741 = vmatpush1.bf16.msra.mxu0 %v6952_v53  ;;  %5069 = vmatpush1.bf16.msra.mxu1 %v6955_v54  ;;  %v7037_v53 = vld [vmem:[%s8621_s29 + $0xf8] sm:$0xff]  }
 0x2f7   : > { %4742 = vmatprep.subr.bf16.mxu0 %v6960_v55  ;;  %5070 = vmatprep.subr.bf16.mxu1 %v6963_v56  ;;  %v7038_v54 = vld [vmem:[%s8621_s29 + $0x38] sm:$0xff]   ;;  %v1803_v56 = vlaneseq }
 0x2f8   : > { %v7039_v55 = vld [vmem:[%s8621_s29 + $0xb8] sm:$0xff]  }
 0x2fa   : > { %4743 = vmatpush1.bf16.msra.mxu0 %v6958_v57  ;;  %5071 = vmatpush1.bf16.msra.mxu1 %v6961_v58  ;;  %v1804_v57 = vshrl.u32 %v1803_v56, 7 }
 0x2fb   : > { %4744 = vmatprep.subr.bf16.mxu0 %v6966_v59  ;;  %5072 = vmatprep.subr.bf16.mxu1 %v6969_v60  ;;  %v1801_v60 = vld [vmem:[%s1268_s9] sm:$0xf] }
 0x2fc   : > { %v1805_v58 = vsub.s32 0, %v1804_v57  ;;  %v1813_v59 = vsub.s32 2, %v1804_v57 }
 0x2fe   : > { %4745 = vmatpush1.bf16.msra.mxu0 %v6964_v61  ;;  %5073 = vmatpush1.bf16.msra.mxu1 %v6967_v62  ;;  %v1809_v61 = vsub.s32 1, %v1804_v57  ;;  %v1817_v62 = vsub.s32 3, %v1804_v57 }
 0x2ff   : > { %4746 = vmatprep.subr.bf16.mxu0 %v6972_v63  ;;  %5074 = vmatprep.subr.bf16.mxu1 %v6975_v1  ;;  %v1806_v63 = vrot.slane %v1801_v60, %v1805_v58  ;;  %v1814_v1 = vrot.slane %v1801_v60, %v1813_v59 }
 0x302   : > { %4747 = vmatpush1.bf16.msra.mxu0 %v6970_v2  ;;  %5075 = vmatpush1.bf16.msra.mxu1 %v6973_v3  ;;  %v1810_v2 = vrot.slane %v1801_v60, %v1809_v61  ;;  %v1818_v3 = vrot.slane %v1801_v60, %v1817_v62 }
 0x303   : > { %4748 = vmatprep.subr.bf16.mxu0 %v6978_v4  ;;  %5076 = vmatprep.subr.bf16.mxu1 %v6981_v5 }
 0x306   : > { %4749 = vmatpush1.bf16.msra.mxu0 %v6976_v6  ;;  %5077 = vmatpush1.bf16.msra.mxu1 %v6979_v7 }
 0x307   : > { %4750 = vmatprep.subr.bf16.mxu0 %v6984_v8  ;;  %5078 = vmatprep.subr.bf16.mxu1 %v6987_v9 }
 0x30a   : > { %4751 = vmatpush1.bf16.msra.mxu0 %v6982_v10  ;;  %5079 = vmatpush1.bf16.msra.mxu1 %v6985_v0 }
 0x30b   : > { %4752 = vmatprep.subr.bf16.mxu0 %v6990_v12  ;;  %5080 = vmatprep.subr.bf16.mxu1 %v6993_v14 }
 0x30e   : > { %4753 = vmatpush1.bf16.msra.mxu0 %v6988_v15  ;;  %5081 = vmatpush1.bf16.msra.mxu1 %v6991_v16 }
 0x30f   : > { %4754 = vmatprep.subr.bf16.mxu0 %v6996_v17  ;;  %5082 = vmatprep.subr.bf16.mxu1 %v6999_v19 }
 0x312   : > { %4755 = vmatpush1.bf16.msra.mxu0 %v6994_v13  ;;  %5083 = vmatpush1.bf16.msra.mxu1 %v6997_v20 }
 0x313   : > { %4756 = vmatprep.subr.bf16.mxu0 %v7002_v21  ;;  %5084 = vmatprep.subr.bf16.mxu1 %v7005_v23 }
 0x316   : > { %4757 = vmatpush1.bf16.msra.mxu0 %v7000_v11  ;;  %5085 = vmatpush1.bf16.msra.mxu1 %v7003_v24 }
 0x317   : > { %6096 = vmatprep.subr.bf16.mxu0 %v7008_v18  ;;  %6118 = vmatprep.subr.bf16.mxu1 %v7009_v26 }
 0x319   : > { %4759 = vmatmul.mubr.bf16.vlgmr.msra.gmra.mrb[0].mxu0 %v5547_v27  ;;  %5087 = vmatmul.mubr.bf16.vlgmr.msra.gmra.mrb[0].mxu1 %v5547_v27 }
 0x31a   : > { %6097 = vmatpush3.bf16.msra.mxu0 %v7010_v28  ;;  %6119 = vmatpush3.bf16.msra.mxu1 %v7011_v22 }
 0x31b   : > { %6098 = vmatprep.subr.bf16.mxu0 %v7012_v29  ;;  %6120 = vmatprep.subr.bf16.mxu1 %v7013_v30 }
 0x31e   : > { %6099 = vmatpush3.bf16.msra.mxu0 %v7014_v31  ;;  %6121 = vmatpush3.bf16.msra.mxu1 %v7015_v25 }
 0x31f   : > { %6100 = vmatprep.subr.bf16.mxu0 %v7016_v32  ;;  %6122 = vmatprep.subr.bf16.mxu1 %v7017_v33 }
 0x322   : > { %6101 = vmatpush3.bf16.msra.mxu0 %v7018_v34  ;;  %6123 = vmatpush3.bf16.msra.mxu1 %v7019_v35 }
 0x323   : > { %6102 = vmatprep.subr.bf16.mxu0 %v7020_v36  ;;  %6124 = vmatprep.subr.bf16.mxu1 %v7021_v37 }
 0x326   : > { %6103 = vmatpush3.bf16.msra.mxu0 %v7022_v38  ;;  %6125 = vmatpush3.bf16.msra.mxu1 %v7023_v39 }
 0x327   : > { %6104 = vmatprep.subr.bf16.mxu0 %v7024_v40  ;;  %6126 = vmatprep.subr.bf16.mxu1 %v7025_v41 }
 0x32a   : > { %6105 = vmatpush3.bf16.msra.mxu0 %v7026_v42  ;;  %6127 = vmatpush3.bf16.msra.mxu1 %v7027_v43 }
 0x32b   : > { %6106 = vmatprep.subr.bf16.mxu0 %v7028_v44  ;;  %6128 = vmatprep.subr.bf16.mxu1 %v7029_v45 }
 0x32e   : > { %6107 = vmatpush3.bf16.msra.mxu0 %v7030_v46  ;;  %6129 = vmatpush3.bf16.msra.mxu1 %v7031_v47 }
 0x32f   : > { %6108 = vmatprep.subr.bf16.mxu0 %v7032_v48  ;;  %6130 = vmatprep.subr.bf16.mxu1 %v7033_v49 }
 0x332   : > { %6109 = vmatpush3.bf16.msra.mxu0 %v7034_v50  ;;  %6131 = vmatpush3.bf16.msra.mxu1 %v7035_v51 }
 0x333   : > { %6110 = vmatprep.subr.bf16.mxu0 %v7036_v52  ;;  %6132 = vmatprep.subr.bf16.mxu1 %v7037_v53 }
 0x336   : > { %6111 = vmatpush3.bf16.msra.mxu0 %v7038_v54  ;;  %6133 = vmatpush3.bf16.msra.mxu1 %v7039_v55 }
 0x3ec   : > { %v4760_v4 = vpop.f32.mrb[0].mxu0  ;;  %v5088_v5 = vpop.f32.mrb[0].mxu1 }
 0x3ed   : > { %v6140_v6 = vadd.f32 %v4760_v4, %v1806_v63  ;;  %v6142_v7 = vadd.f32 %v5088_v5, %v1814_v1  ;;  %v4762_v8 = vpop.f32.mrb[1].mxu0  ;;  %v5090_v9 = vpop.f32.mrb[1].mxu1 }
 0x3ee   : > { %v6141_v10 = vadd.f32 %v4762_v8, %v1810_v2  ;;  %v6143_v0 = vadd.f32 %v5090_v9, %v1818_v3  ;;  %v4764_v12 = vpop.f32.mrb[2].mxu0  ;;  %v5092_v14 = vpop.f32.mrb[2].mxu1 }
 0x3ef   : > { %v5095_v15 = vmax.f32 %v6140_v6, 0.0  ;;  %v5097_v16 = vmax.f32 %v6142_v7, 0.0  ;;  %v4765_v17 = vpop.f32.mrb[3].mxu0  ;;  %v5093_v19 = vpop.f32.mrb[3].mxu1 }
 0x3f0   : > { %v5096_v13 = vmax.f32 %v6141_v10, 0.0  ;;  %v5098_v20 = vmax.f32 %v6143_v0, 0.0 }
 0x3f1   : > { %v5099_v11 = vpack.c.bf16 %v5095_v15, %v5095_v15  ;;  %v5101_v24 = vpack.c.bf16 %v5097_v16, %v5097_v16 }
 0x3f2   : > { %v5100_v21 = vpack.c.bf16 %v5096_v13, %v5096_v13  ;;  %v5102_v23 = vpack.c.bf16 %v5098_v20, %v5098_v20 }
 0x3f4   : > { %5391 = vmatprep.mubr.bf16.mxu0 %v5100_v21  ;;  %5431 = vmatprep.mubr.bf16.mxu1 %v5102_v23 }
 0x3f5   : > { %5392 = vmatmul.mubr.bf16.vlgmr.msra.gmra.mrb[4].mxu0 %v5099_v11  ;;  %5432 = vmatmul.mubr.bf16.vlgmr.msra.gmra.mrb[4].mxu1 %v5101_v24 }
 0x4c8   : > { %v6112_v18 = vpop.f32.mrb[4].mxu0  ;;  %v6134_v26 = vpop.f32.mrb[4].mxu1 }
 0x4c9   : > { %v6113_v27 = vpop.f32.mrb[5].mxu0  ;;  %v6135_v28 = vpop.f32.mrb[5].mxu1 }
 0x4ca   : > { %v6114_v22 = vadd.f32 %v6113_v27, %v6112_v18  ;;  %v6136_v29 = vadd.f32 %v6135_v28, %v6134_v26  ;;  %v6115_v30 = vpop.f32.mrb[6].mxu0  ;;  %v6137_v31 = vpop.f32.mrb[6].mxu1 }
 0x4cb   : > { %v6116_v25 = vpop.f32.mrb[7].mxu0  ;;  %v6138_v32 = vpop.f32.mrb[7].mxu1 }
 0x4cc   : > { %v5434_v33 = vadd.f32 %v6136_v29, %v6114_v22 }
 0x4ce   : > { %5439 = vst [vmem:[%s1279_s13] sm:$0xff] %v5434_v33 }
 0x4cf PF: > { %p11_p11 = scmp.ge.s32.totalorder %s7108_s19, 4   ;;  %s8804_s15 = smov %s7058_s16 }
 0x4d0   : > { %s8805_s16 = smov %s7117_s22  ;;  %s8806_s17 = smov %s7108_s19 }
 0x4d1   :  { %13 = sbr.rel (!%p11_p11) target bundleno = 2 (0x2), region = 100 }

</bundles_post_ra>
